<compile_context>
chip_gen: v5e
topology: v5e:2x2
jax: 0.10.0
libtpu: 0.0.40
codegen_flags: <defaults>
</compile_context>

<pallas_src>
import jax
import jax.numpy as jnp
from jax.experimental import pallas as pl
from jax.experimental.pallas import tpu as pltpu

# ---------------- problem sizes (small, synthetic) ----------------
N_ALL = 1024          # total anchors
N_IN = 512            # anchors inside the image
G = 8                 # gt boxes per image
B = 2                 # batch size
LANES = 128           # anchors per lane-row inside the kernel

POS_IOU_THRESHOLD = 0.7
NEG_IOU_THRESHOLD = 0.3
N_SAMPLE = 256
POS_RATIO = 0.5
N_POS = int(POS_RATIO * N_SAMPLE)    # 128


# ---------------- Pallas kernel ----------------
def _anchor_target_kernel(inside_ref, gt_ref, abg_ref, label_ref, loc_ref):
    """Single grid step handles the whole (tiny) problem.

    inside_ref : (4, C, 128)    VMEM, rows = x1, y1, x2, y2; anchors laid out (C, 128)
    gt_ref     : (B, 4*G)       SMEM, gt boxes flattened per batch row
    abg_ref    : (G, 4)         SMEM, anchor_boxes[:G] (bug-for-bug with the reference
                                indexing anchor_boxes[argmax(ious, axis=1)])
    label_ref  : (B, 1, C, 128) int32 output (pre-sampling ious_label)
    loc_ref    : (B, 4, C, 128) float32 output, rows = (dx, dy, dw, dh)
    """
    n_batch = gt_ref.shape[0]
    n_gt = abg_ref.shape[0]

    xa1 = inside_ref[0]                      # (C, 128)
    ya1 = inside_ref[1]
    xa2 = inside_ref[2]
    ya2 = inside_ref[3]
    anchor_area = (xa2 - xa1) * (ya2 - ya1)  # (C, 128)
    plane = xa1.shape

    # ---- batch-invariant regression precompute (hoisted out of the batch loop) ----
    h = ya2 - ya1
    w = xa2 - xa1
    center_x = xa1 - 0.5 * w                 # bug-for-bug with the reference module
    center_y = ya1 + 0.5 * h
    eps = jnp.float32(jnp.finfo(jnp.float32).eps)
    h = jnp.maximum(h, eps)
    w = jnp.maximum(w, eps)
    inv_w = 1.0 / w                          # two exact divides total (hoisted)
    inv_h = 1.0 / h

    for b in range(n_batch):                 # B = 2, unrolled sequentially (small live set)
        anchor_max = jnp.full(plane, -1.0, jnp.float32)   # IoU >= 0 -> gt 0 always updates
        is_gt_max = jnp.zeros(plane, jnp.bool_)
        best_j = jnp.zeros(plane, jnp.int32)              # running first-occurrence argmax

        # G is tiny -> unrolled VPU loop over gt boxes; one (C, 128) IoU plane
        # live at a time (no (N_IN, G) matrix materialized).
        for j in range(n_gt):
            xg1 = gt_ref[b, 4 * j + 0]
            yg1 = gt_ref[b, 4 * j + 1]
            xg2 = gt_ref[b, 4 * j + 2]
            yg2 = gt_ref[b, 4 * j + 3]
            box_area = (xg2 - xg1) * (yg2 - yg1)           # scalar

            ix1 = jnp.maximum(xa1, xg1)
            iy1 = jnp.maximum(ya1, yg1)
            ix2 = jnp.minimum(xa2, xg2)
            iy2 = jnp.minimum(ya2, yg2)
            valid = (ix1 < ix2) & (iy1 < iy2)
            inter = (ix2 - ix1) * (iy2 - iy1)
            union = anchor_area + box_area - inter
            # exact divide kept so the 0.3 / 0.7 thresholds and the
            # iou == gt_max tie set match the reference behaviour
            iou_j = jnp.where(valid, inter / union, 0.0)   # (C, 128)

            # per-gt max over anchors; the reference labels ALL ties as positive
            # (np.where(ious == gt_max)[0]), so keep the ==-any semantics.
            gt_max_j = jnp.max(iou_j, keepdims=True)       # (1, 1)
            is_gt_max = is_gt_max | (iou_j == gt_max_j)

            # running first-occurrence argmax (strict >); only the index is carried
            upd = iou_j > anchor_max
            anchor_max = jnp.where(upd, iou_j, anchor_max)
            best_j = jnp.where(upd, j, best_j)

        # ---- labels (before random sub-sampling) ----
        label = jnp.full(plane, -1, jnp.int32)
        label = jnp.where(anchor_max < NEG_IOU_THRESHOLD, 0, label)
        label = jnp.where(anchor_max >= POS_IOU_THRESHOLD, 1, label)
        label = jnp.where(is_gt_max, 1, label)
        label_ref[b, 0] = label                            # (C, 128) lane-dense store

        # ---- matched-box gather: 8-way select on the best-gt index ----
        mb_x1 = jnp.zeros(plane, jnp.float32)
        mb_y1 = jnp.zeros(plane, jnp.float32)
        mb_x2 = jnp.zeros(plane, jnp.float32)
        mb_y2 = jnp.zeros(plane, jnp.float32)
        for j in range(n_gt):
            sel = best_j == j
            mb_x1 = jnp.where(sel, abg_ref[j, 0], mb_x1)
            mb_y1 = jnp.where(sel, abg_ref[j, 1], mb_y1)
            mb_x2 = jnp.where(sel, abg_ref[j, 2], mb_x2)
            mb_y2 = jnp.where(sel, abg_ref[j, 3], mb_y2)

        mb_h = mb_y2 - mb_y1
        mb_w = mb_x2 - mb_x1
        mb_cx = mb_x1 + 0.5 * mb_w
        mb_cy = mb_y1 + 0.5 * mb_h

        # four lane-dense row stores (dx, dy, dw, dh); divisions became multiplies
        loc_ref[b, 0] = (mb_cx - center_x) * inv_w
        loc_ref[b, 1] = (mb_cy - center_y) * inv_h
        loc_ref[b, 2] = jnp.log(mb_w * inv_w)
        loc_ref[b, 3] = jnp.log(mb_h * inv_h)


def anchor_target_pallas(inside_planes, anchor_boxes_g, gt_boxes):
    """inside_planes: (4, C, 128) f32; returns (labels (B, N_IN) i32, locs (B, 4, N_IN) f32)."""
    batch, g, _ = gt_boxes.shape
    _, c, lanes = inside_planes.shape
    n_in = c * lanes

    gt_flat = gt_boxes.astype(jnp.float32).reshape(batch, 4 * g)          # (B, 4G)

    labels4, locs4 = pl.pallas_call(
        _anchor_target_kernel,
        out_shape=(
            jax.ShapeDtypeStruct((batch, 1, c, lanes), jnp.int32),
            jax.ShapeDtypeStruct((batch, 4, c, lanes), jnp.float32),
        ),
        grid_spec=pltpu.PrefetchScalarGridSpec(
            num_scalar_prefetch=0,
            grid=(1,),                                                    # single fused step
            in_specs=[
                pl.BlockSpec((4, c, lanes), lambda i: (0, 0, 0)),         # VMEM, lane-dense
                pl.BlockSpec(memory_space=pltpu.MemorySpace.SMEM),        # gt boxes
                pl.BlockSpec(memory_space=pltpu.MemorySpace.SMEM),        # anchor_boxes[:G]
            ],
            out_specs=[
                pl.BlockSpec((batch, 1, c, lanes), lambda i: (0, 0, 0, 0)),
                pl.BlockSpec((batch, 4, c, lanes), lambda i: (0, 0, 0, 0)),
            ],
        ),
        compiler_params=pltpu.CompilerParams(
            dimension_semantics=("arbitrary",)),
    )(inside_planes, gt_flat, anchor_boxes_g)

    labels = labels4.reshape(batch, n_in)          # contiguous reshape, free
    locs = locs4.reshape(batch, 4, n_in)
    return labels, locs


# ---------------- plain-JAX glue: random sub-sampling + full-anchor expand ----------------
# TODO(synk): np.random.choice's exact RNG stream cannot be reproduced; the
# sub-sampling below matches the selection *semantics* of the reference
# (uniform without replacement, same counts) using jax.random instead.
def _rank_of(mask, key):
    n = mask.shape[0]
    scores = jnp.where(mask, jax.random.uniform(key, (n,)), 2.0)
    # rank of each element among the sorted scores, scatter-free
    return jnp.argsort(jnp.argsort(scores)).astype(jnp.int32)


def subsample_labels(labels, key):
    """labels: (N_IN,) int32 with values in {-1, 0, 1}."""
    k1, k2, k3 = jax.random.split(key, 3)
    pos_mask = labels == 1
    neg_mask = labels == 0
    n_pos = jnp.sum(pos_mask)

    # too many positives -> randomly disable the excess
    pos_rank = _rank_of(pos_mask, k1)
    labels_many = jnp.where(pos_mask & (pos_rank >= N_POS), -1, labels)

    # too few positives -> randomly promote negatives to label 1 (reference behaviour)
    neg_rank = _rank_of(neg_mask, k2)
    need = N_POS - n_pos
    labels_few = jnp.where(neg_mask & (neg_rank < need), 1, labels)

    labels1 = jnp.where(n_pos > N_POS, labels_many, labels_few)

    # too many negatives -> randomly disable the excess (reference caps at n_pos)
    neg_mask1 = labels1 == 0
    n_neg = jnp.sum(neg_mask1)
    neg_rank1 = _rank_of(neg_mask1, k3)
    labels2 = jnp.where((n_neg > N_POS) & neg_mask1 & (neg_rank1 >= N_POS),
                        -1, labels1)
    return labels2


class Anchor:
    """Minimal stand-in for the `anchor` argument of the PyTorch module.

    Kernel-ready inputs are precomputed once here (no per-call transpose/cast).
    """

    def __init__(self, anchor_boxes, inside_index):
        self.anchor_boxes = anchor_boxes                       # (N_ALL, 4)
        self.inside_index = inside_index                       # (N_IN,)
        self.inside_anchor_boxes = anchor_boxes[inside_index]  # (N_IN, 4)
        n_all = anchor_boxes.shape[0]
        n_in = inside_index.shape[0]
        assert n_in % LANES == 0
        # (4, C, 128) lane-dense planes: rows x1, y1, x2, y2
        self.inside_anchor_planes = (
            jnp.transpose(self.inside_anchor_boxes.astype(jnp.float32))
            .reshape(4, n_in // LANES, LANES))
        self.anchor_boxes_f32 = anchor_boxes.astype(jnp.float32)
        # inverse map: full-anchor index -> position in the inside list, or n_in
        # (points at a padded "-1 / 0" slot).  Precomputed once so the per-call
        # full-anchor expansion is a gather, not an XLA scatter.
        self.inverse_index = (
            jnp.full((n_all,), n_in, jnp.int32)
            .at[inside_index].set(jnp.arange(n_in, dtype=jnp.int32)))


def anchor_target_layer_forward(rpn_cls_score, anchor, gt_boxes, key):
    batch = rpn_cls_score.shape[0]
    g = gt_boxes.shape[1]

    labels, locs = anchor_target_pallas(
        anchor.inside_anchor_planes, anchor.anchor_boxes_f32[:g], gt_boxes)

    keys = jax.random.split(key, batch)
    labels = jax.vmap(subsample_labels)(labels, keys)          # (B, N_IN)

    # "scatter" to the full anchor set, expressed as a gather with the
    # precomputed inverse index (default -1 labels / zero bbox via padded slot).
    inv = anchor.inverse_index                                 # (N_ALL,)
    labels_pad = jnp.concatenate(
        [labels, jnp.full((batch, 1), -1, jnp.int32)], axis=1)        # (B, N_IN+1)
    anchor_target_labels = jnp.take(labels_pad, inv, axis=1)          # (B, N_ALL)

    locs_pad = jnp.concatenate(
        [locs, jnp.zeros((batch, 4, 1), jnp.float32)], axis=2)        # (B, 4, N_IN+1)
    anchor_target_bbox = jnp.transpose(
        jnp.take(locs_pad, inv, axis=2), (0, 2, 1))                   # (B, N_ALL, 4)
    return anchor_target_labels, anchor_target_bbox


# ---------------- main ----------------
if __name__ == "__main__":
    key = jax.random.PRNGKey(0)
    k_anchor, k_gt, k_score, k_sample = jax.random.split(key, 4)

    # deterministic synthetic anchors: centers in [0, 256), sizes in [16, 64)
    kc, ks = jax.random.split(k_anchor)
    centers = jax.random.uniform(kc, (N_ALL, 2), minval=0.0, maxval=256.0)
    sizes = jax.random.uniform(ks, (N_ALL, 2), minval=16.0, maxval=64.0)
    anchor_boxes = jnp.concatenate(
        [centers - 0.5 * sizes, centers + 0.5 * sizes], axis=1).astype(jnp.float32)
    # fixed "inside" subset (even indices) so shapes stay static
    inside_index = jnp.arange(0, 2 * N_IN, 2, dtype=jnp.int32)
    anchor = Anchor(anchor_boxes, inside_index)

    # deterministic synthetic gt boxes
    kg1, kg2 = jax.random.split(k_gt)
    gt_centers = jax.random.uniform(kg1, (B, G, 2), minval=32.0, maxval=224.0)
    gt_sizes = jax.random.uniform(kg2, (B, G, 2), minval=24.0, maxval=96.0)
    gt_boxes = jnp.concatenate(
        [gt_centers - 0.5 * gt_sizes, gt_centers + 0.5 * gt_sizes],
        axis=2).astype(jnp.float32)

    # rpn_cls_score: NCHW, only batch dim is used (9 anchors * 2 classes)
    rpn_cls_score = jax.random.normal(k_score, (B, 18, 16, 16), dtype=jnp.float32)

    anchor_target_labels, anchor_target_bbox = anchor_target_layer_forward(
        rpn_cls_score, anchor, gt_boxes, k_sample)

    jax.block_until_ready((anchor_target_labels, anchor_target_bbox))
    assert anchor_target_labels.shape == (B, N_ALL)
    assert anchor_target_labels.dtype == jnp.int32
    assert anchor_target_bbox.shape == (B, N_ALL, 4)
    print("KERNEL_OK")
</pallas_src>

<mosaic_0001>
module attributes {stable_mosaic.version = 11 : i64} {
  func.func @_anchor_target_kernel(%arg0: i32, %arg1: memref<4x4x128xf32, #tpu.memory_space<vmem>>, %arg2: memref<2x32xf32, #tpu.memory_space<smem>>, %arg3: memref<8x4xf32, #tpu.memory_space<smem>>, %arg4: memref<2x1x4x128xi32, #tpu.memory_space<vmem>>, %arg5: memref<2x4x4x128xf32, #tpu.memory_space<vmem>>) attributes {dimension_semantics = [#tpu.dimension_semantics<arbitrary>], iteration_bounds = array<i64: 1>, scalar_prefetch = 0 : i64, scratch_operands = 0 : i64, tpu.core_type = #tpu.core_type<tc>, window_params = [{pipeline_mode = #tpu.pipeline_mode<synchronous>, transform_indices = @transform_0, window_bounds = array<i64: 4, 4, 128>}, {transform_indices = @transform_1, window_bounds = array<i64: 2, 32>}, {transform_indices = @transform_2, window_bounds = array<i64: 8, 4>}, {pipeline_mode = #tpu.pipeline_mode<synchronous>, transform_indices = @transform_3, window_bounds = array<i64: 2, 1, 4, 128>}, {pipeline_mode = #tpu.pipeline_mode<synchronous>, transform_indices = @transform_4, window_bounds = array<i64: 2, 4, 4, 128>}]} {
    %c0 = arith.constant 0 : index
    %c0_0 = arith.constant 0 : index
    %c0_1 = arith.constant 0 : index
    %0 = vector.load %arg1[%c0, %c0_0, %c0_1] : memref<4x4x128xf32, #tpu.memory_space<vmem>>, vector<1x4x128xf32>
    %1 = vector.shape_cast %0 : vector<1x4x128xf32> to vector<4x128xf32>
    %c1 = arith.constant 1 : index
    %c0_2 = arith.constant 0 : index
    %c0_3 = arith.constant 0 : index
    %2 = vector.load %arg1[%c1, %c0_2, %c0_3] : memref<4x4x128xf32, #tpu.memory_space<vmem>>, vector<1x4x128xf32>
    %3 = vector.shape_cast %2 : vector<1x4x128xf32> to vector<4x128xf32>
    %c2 = arith.constant 2 : index
    %c0_4 = arith.constant 0 : index
    %c0_5 = arith.constant 0 : index
    %4 = vector.load %arg1[%c2, %c0_4, %c0_5] : memref<4x4x128xf32, #tpu.memory_space<vmem>>, vector<1x4x128xf32>
    %5 = vector.shape_cast %4 : vector<1x4x128xf32> to vector<4x128xf32>
    %c3 = arith.constant 3 : index
    %c0_6 = arith.constant 0 : index
    %c0_7 = arith.constant 0 : index
    %6 = vector.load %arg1[%c3, %c0_6, %c0_7] : memref<4x4x128xf32, #tpu.memory_space<vmem>>, vector<1x4x128xf32>
    %7 = vector.shape_cast %6 : vector<1x4x128xf32> to vector<4x128xf32>
    %8 = arith.subf %5, %1 : vector<4x128xf32>
    %9 = arith.subf %7, %3 : vector<4x128xf32>
    %10 = arith.mulf %8, %9 : vector<4x128xf32>
    %11 = arith.subf %7, %3 : vector<4x128xf32>
    %12 = arith.subf %5, %1 : vector<4x128xf32>
    %cst = arith.constant 5.000000e-01 : f32
    %13 = vector.broadcast %cst : f32 to vector<4x128xf32>
    %14 = arith.mulf %13, %12 : vector<4x128xf32>
    %15 = arith.subf %1, %14 : vector<4x128xf32>
    %cst_8 = arith.constant 5.000000e-01 : f32
    %16 = vector.broadcast %cst_8 : f32 to vector<4x128xf32>
    %17 = arith.mulf %16, %11 : vector<4x128xf32>
    %18 = arith.addf %3, %17 : vector<4x128xf32>
    %cst_9 = arith.constant 1.1920929E-7 : f32
    %19 = vector.broadcast %cst_9 : f32 to vector<4x128xf32>
    %20 = arith.maximumf %11, %19 : vector<4x128xf32>
    %cst_10 = arith.constant 1.1920929E-7 : f32
    %21 = vector.broadcast %cst_10 : f32 to vector<4x128xf32>
    %22 = arith.maximumf %12, %21 : vector<4x128xf32>
    %cst_11 = arith.constant 1.000000e+00 : f32
    %23 = vector.broadcast %cst_11 : f32 to vector<4x128xf32>
    %24 = arith.divf %23, %22 : vector<4x128xf32>
    %cst_12 = arith.constant 1.000000e+00 : f32
    %25 = vector.broadcast %cst_12 : f32 to vector<4x128xf32>
    %26 = arith.divf %25, %20 : vector<4x128xf32>
    %cst_13 = arith.constant -1.000000e+00 : f32
    %27 = vector.broadcast %cst_13 : f32 to vector<4x128xf32>
    %false = arith.constant false
    %28 = vector.broadcast %false : i1 to vector<4x128xi1>
    %c0_i32 = arith.constant 0 : i32
    %29 = vector.broadcast %c0_i32 : i32 to vector<4x128xi32>
    %c0_14 = arith.constant 0 : index
    %c0_15 = arith.constant 0 : index
    %30 = memref.load %arg2[%c0_14, %c0_15] : memref<2x32xf32, #tpu.memory_space<smem>>
    %c0_16 = arith.constant 0 : index
    %c1_17 = arith.constant 1 : index
    %31 = memref.load %arg2[%c0_16, %c1_17] : memref<2x32xf32, #tpu.memory_space<smem>>
    %c0_18 = arith.constant 0 : index
    %c2_19 = arith.constant 2 : index
    %32 = memref.load %arg2[%c0_18, %c2_19] : memref<2x32xf32, #tpu.memory_space<smem>>
    %c0_20 = arith.constant 0 : index
    %c3_21 = arith.constant 3 : index
    %33 = memref.load %arg2[%c0_20, %c3_21] : memref<2x32xf32, #tpu.memory_space<smem>>
    %34 = arith.subf %32, %30 : f32
    %35 = arith.subf %33, %31 : f32
    %36 = arith.mulf %34, %35 : f32
    %37 = vector.broadcast %30 : f32 to vector<4x128xf32>
    %38 = arith.maximumf %1, %37 : vector<4x128xf32>
    %39 = vector.broadcast %31 : f32 to vector<4x128xf32>
    %40 = arith.maximumf %3, %39 : vector<4x128xf32>
    %41 = vector.broadcast %32 : f32 to vector<4x128xf32>
    %42 = arith.minimumf %5, %41 : vector<4x128xf32>
    %43 = vector.broadcast %33 : f32 to vector<4x128xf32>
    %44 = arith.minimumf %7, %43 : vector<4x128xf32>
    %45 = arith.cmpf olt, %38, %42 : vector<4x128xf32>
    %46 = arith.cmpf olt, %40, %44 : vector<4x128xf32>
    %47 = arith.andi %45, %46 : vector<4x128xi1>
    %48 = arith.subf %42, %38 : vector<4x128xf32>
    %49 = arith.subf %44, %40 : vector<4x128xf32>
    %50 = arith.mulf %48, %49 : vector<4x128xf32>
    %51 = vector.broadcast %36 : f32 to vector<4x128xf32>
    %52 = arith.addf %10, %51 : vector<4x128xf32>
    %53 = arith.subf %52, %50 : vector<4x128xf32>
    %54 = arith.divf %50, %53 : vector<4x128xf32>
    %cst_22 = arith.constant 0.000000e+00 : f32
    %55 = vector.broadcast %cst_22 : f32 to vector<4x128xf32>
    %56 = arith.select %47, %54, %55 : vector<4x128xi1>, vector<4x128xf32>
    %57 = vector.shape_cast %56 : vector<4x128xf32> to vector<1x4x128xf32>
    %cst_23 = arith.constant dense<0xFF800000> : vector<1xf32>
    %58 = vector.multi_reduction <maximumf>, %57, %cst_23 [1, 2] : vector<1x4x128xf32> to vector<1xf32>
    %59 = vector.shape_cast %58 : vector<1xf32> to vector<1x1x1xf32>
    %60 = vector.extract %59[0, 0, 0] : f32 from vector<1x1x1xf32>
    %61 = vector.broadcast %60 : f32 to vector<1x1xf32>
    %62 = vector.broadcast %61 : vector<1x1xf32> to vector<4x128xf32>
    %63 = arith.cmpf oeq, %56, %62 : vector<4x128xf32>
    %64 = arith.ori %28, %63 : vector<4x128xi1>
    %65 = arith.cmpf ogt, %56, %27 : vector<4x128xf32>
    %66 = arith.select %65, %56, %27 : vector<4x128xi1>, vector<4x128xf32>
    %c0_i32_24 = arith.constant 0 : i32
    %67 = vector.broadcast %c0_i32_24 : i32 to vector<4x128xi32>
    %68 = arith.select %65, %67, %29 : vector<4x128xi1>, vector<4x128xi32>
    %c0_25 = arith.constant 0 : index
    %c4 = arith.constant 4 : index
    %69 = memref.load %arg2[%c0_25, %c4] : memref<2x32xf32, #tpu.memory_space<smem>>
    %c0_26 = arith.constant 0 : index
    %c5 = arith.constant 5 : index
    %70 = memref.load %arg2[%c0_26, %c5] : memref<2x32xf32, #tpu.memory_space<smem>>
    %c0_27 = arith.constant 0 : index
    %c6 = arith.constant 6 : index
    %71 = memref.load %arg2[%c0_27, %c6] : memref<2x32xf32, #tpu.memory_space<smem>>
    %c0_28 = arith.constant 0 : index
    %c7 = arith.constant 7 : index
    %72 = memref.load %arg2[%c0_28, %c7] : memref<2x32xf32, #tpu.memory_space<smem>>
    %73 = arith.subf %71, %69 : f32
    %74 = arith.subf %72, %70 : f32
    %75 = arith.mulf %73, %74 : f32
    %76 = vector.broadcast %69 : f32 to vector<4x128xf32>
    %77 = arith.maximumf %1, %76 : vector<4x128xf32>
    %78 = vector.broadcast %70 : f32 to vector<4x128xf32>
    %79 = arith.maximumf %3, %78 : vector<4x128xf32>
    %80 = vector.broadcast %71 : f32 to vector<4x128xf32>
    %81 = arith.minimumf %5, %80 : vector<4x128xf32>
    %82 = vector.broadcast %72 : f32 to vector<4x128xf32>
    %83 = arith.minimumf %7, %82 : vector<4x128xf32>
    %84 = arith.cmpf olt, %77, %81 : vector<4x128xf32>
    %85 = arith.cmpf olt, %79, %83 : vector<4x128xf32>
    %86 = arith.andi %84, %85 : vector<4x128xi1>
    %87 = arith.subf %81, %77 : vector<4x128xf32>
    %88 = arith.subf %83, %79 : vector<4x128xf32>
    %89 = arith.mulf %87, %88 : vector<4x128xf32>
    %90 = vector.broadcast %75 : f32 to vector<4x128xf32>
    %91 = arith.addf %10, %90 : vector<4x128xf32>
    %92 = arith.subf %91, %89 : vector<4x128xf32>
    %93 = arith.divf %89, %92 : vector<4x128xf32>
    %cst_29 = arith.constant 0.000000e+00 : f32
    %94 = vector.broadcast %cst_29 : f32 to vector<4x128xf32>
    %95 = arith.select %86, %93, %94 : vector<4x128xi1>, vector<4x128xf32>
    %96 = vector.shape_cast %95 : vector<4x128xf32> to vector<1x4x128xf32>
    %cst_30 = arith.constant dense<0xFF800000> : vector<1xf32>
    %97 = vector.multi_reduction <maximumf>, %96, %cst_30 [1, 2] : vector<1x4x128xf32> to vector<1xf32>
    %98 = vector.shape_cast %97 : vector<1xf32> to vector<1x1x1xf32>
    %99 = vector.extract %98[0, 0, 0] : f32 from vector<1x1x1xf32>
    %100 = vector.broadcast %99 : f32 to vector<1x1xf32>
    %101 = vector.broadcast %100 : vector<1x1xf32> to vector<4x128xf32>
    %102 = arith.cmpf oeq, %95, %101 : vector<4x128xf32>
    %103 = arith.ori %64, %102 : vector<4x128xi1>
    %104 = arith.cmpf ogt, %95, %66 : vector<4x128xf32>
    %105 = arith.select %104, %95, %66 : vector<4x128xi1>, vector<4x128xf32>
    %c1_i32 = arith.constant 1 : i32
    %106 = vector.broadcast %c1_i32 : i32 to vector<4x128xi32>
    %107 = arith.select %104, %106, %68 : vector<4x128xi1>, vector<4x128xi32>
    %c0_31 = arith.constant 0 : index
    %c8 = arith.constant 8 : index
    %108 = memref.load %arg2[%c0_31, %c8] : memref<2x32xf32, #tpu.memory_space<smem>>
    %c0_32 = arith.constant 0 : index
    %c9 = arith.constant 9 : index
    %109 = memref.load %arg2[%c0_32, %c9] : memref<2x32xf32, #tpu.memory_space<smem>>
    %c0_33 = arith.constant 0 : index
    %c10 = arith.constant 10 : index
    %110 = memref.load %arg2[%c0_33, %c10] : memref<2x32xf32, #tpu.memory_space<smem>>
    %c0_34 = arith.constant 0 : index
    %c11 = arith.constant 11 : index
    %111 = memref.load %arg2[%c0_34, %c11] : memref<2x32xf32, #tpu.memory_space<smem>>
    %112 = arith.subf %110, %108 : f32
    %113 = arith.subf %111, %109 : f32
    %114 = arith.mulf %112, %113 : f32
    %115 = vector.broadcast %108 : f32 to vector<4x128xf32>
    %116 = arith.maximumf %1, %115 : vector<4x128xf32>
    %117 = vector.broadcast %109 : f32 to vector<4x128xf32>
    %118 = arith.maximumf %3, %117 : vector<4x128xf32>
    %119 = vector.broadcast %110 : f32 to vector<4x128xf32>
    %120 = arith.minimumf %5, %119 : vector<4x128xf32>
    %121 = vector.broadcast %111 : f32 to vector<4x128xf32>
    %122 = arith.minimumf %7, %121 : vector<4x128xf32>
    %123 = arith.cmpf olt, %116, %120 : vector<4x128xf32>
    %124 = arith.cmpf olt, %118, %122 : vector<4x128xf32>
    %125 = arith.andi %123, %124 : vector<4x128xi1>
    %126 = arith.subf %120, %116 : vector<4x128xf32>
    %127 = arith.subf %122, %118 : vector<4x128xf32>
    %128 = arith.mulf %126, %127 : vector<4x128xf32>
    %129 = vector.broadcast %114 : f32 to vector<4x128xf32>
    %130 = arith.addf %10, %129 : vector<4x128xf32>
    %131 = arith.subf %130, %128 : vector<4x128xf32>
    %132 = arith.divf %128, %131 : vector<4x128xf32>
    %cst_35 = arith.constant 0.000000e+00 : f32
    %133 = vector.broadcast %cst_35 : f32 to vector<4x128xf32>
    %134 = arith.select %125, %132, %133 : vector<4x128xi1>, vector<4x128xf32>
    %135 = vector.shape_cast %134 : vector<4x128xf32> to vector<1x4x128xf32>
    %cst_36 = arith.constant dense<0xFF800000> : vector<1xf32>
    %136 = vector.multi_reduction <maximumf>, %135, %cst_36 [1, 2] : vector<1x4x128xf32> to vector<1xf32>
    %137 = vector.shape_cast %136 : vector<1xf32> to vector<1x1x1xf32>
    %138 = vector.extract %137[0, 0, 0] : f32 from vector<1x1x1xf32>
    %139 = vector.broadcast %138 : f32 to vector<1x1xf32>
    %140 = vector.broadcast %139 : vector<1x1xf32> to vector<4x128xf32>
    %141 = arith.cmpf oeq, %134, %140 : vector<4x128xf32>
    %142 = arith.ori %103, %141 : vector<4x128xi1>
    %143 = arith.cmpf ogt, %134, %105 : vector<4x128xf32>
    %144 = arith.select %143, %134, %105 : vector<4x128xi1>, vector<4x128xf32>
    %c2_i32 = arith.constant 2 : i32
    %145 = vector.broadcast %c2_i32 : i32 to vector<4x128xi32>
    %146 = arith.select %143, %145, %107 : vector<4x128xi1>, vector<4x128xi32>
    %c0_37 = arith.constant 0 : index
    %c12 = arith.constant 12 : index
    %147 = memref.load %arg2[%c0_37, %c12] : memref<2x32xf32, #tpu.memory_space<smem>>
    %c0_38 = arith.constant 0 : index
    %c13 = arith.constant 13 : index
    %148 = memref.load %arg2[%c0_38, %c13] : memref<2x32xf32, #tpu.memory_space<smem>>
    %c0_39 = arith.constant 0 : index
    %c14 = arith.constant 14 : index
    %149 = memref.load %arg2[%c0_39, %c14] : memref<2x32xf32, #tpu.memory_space<smem>>
    %c0_40 = arith.constant 0 : index
    %c15 = arith.constant 15 : index
    %150 = memref.load %arg2[%c0_40, %c15] : memref<2x32xf32, #tpu.memory_space<smem>>
    %151 = arith.subf %149, %147 : f32
    %152 = arith.subf %150, %148 : f32
    %153 = arith.mulf %151, %152 : f32
    %154 = vector.broadcast %147 : f32 to vector<4x128xf32>
    %155 = arith.maximumf %1, %154 : vector<4x128xf32>
    %156 = vector.broadcast %148 : f32 to vector<4x128xf32>
    %157 = arith.maximumf %3, %156 : vector<4x128xf32>
    %158 = vector.broadcast %149 : f32 to vector<4x128xf32>
    %159 = arith.minimumf %5, %158 : vector<4x128xf32>
    %160 = vector.broadcast %150 : f32 to vector<4x128xf32>
    %161 = arith.minimumf %7, %160 : vector<4x128xf32>
    %162 = arith.cmpf olt, %155, %159 : vector<4x128xf32>
    %163 = arith.cmpf olt, %157, %161 : vector<4x128xf32>
    %164 = arith.andi %162, %163 : vector<4x128xi1>
    %165 = arith.subf %159, %155 : vector<4x128xf32>
    %166 = arith.subf %161, %157 : vector<4x128xf32>
    %167 = arith.mulf %165, %166 : vector<4x128xf32>
    %168 = vector.broadcast %153 : f32 to vector<4x128xf32>
    %169 = arith.addf %10, %168 : vector<4x128xf32>
    %170 = arith.subf %169, %167 : vector<4x128xf32>
    %171 = arith.divf %167, %170 : vector<4x128xf32>
    %cst_41 = arith.constant 0.000000e+00 : f32
    %172 = vector.broadcast %cst_41 : f32 to vector<4x128xf32>
    %173 = arith.select %164, %171, %172 : vector<4x128xi1>, vector<4x128xf32>
    %174 = vector.shape_cast %173 : vector<4x128xf32> to vector<1x4x128xf32>
    %cst_42 = arith.constant dense<0xFF800000> : vector<1xf32>
    %175 = vector.multi_reduction <maximumf>, %174, %cst_42 [1, 2] : vector<1x4x128xf32> to vector<1xf32>
    %176 = vector.shape_cast %175 : vector<1xf32> to vector<1x1x1xf32>
    %177 = vector.extract %176[0, 0, 0] : f32 from vector<1x1x1xf32>
    %178 = vector.broadcast %177 : f32 to vector<1x1xf32>
    %179 = vector.broadcast %178 : vector<1x1xf32> to vector<4x128xf32>
    %180 = arith.cmpf oeq, %173, %179 : vector<4x128xf32>
    %181 = arith.ori %142, %180 : vector<4x128xi1>
    %182 = arith.cmpf ogt, %173, %144 : vector<4x128xf32>
    %183 = arith.select %182, %173, %144 : vector<4x128xi1>, vector<4x128xf32>
    %c3_i32 = arith.constant 3 : i32
    %184 = vector.broadcast %c3_i32 : i32 to vector<4x128xi32>
    %185 = arith.select %182, %184, %146 : vector<4x128xi1>, vector<4x128xi32>
    %c0_43 = arith.constant 0 : index
    %c16 = arith.constant 16 : index
    %186 = memref.load %arg2[%c0_43, %c16] : memref<2x32xf32, #tpu.memory_space<smem>>
    %c0_44 = arith.constant 0 : index
    %c17 = arith.constant 17 : index
    %187 = memref.load %arg2[%c0_44, %c17] : memref<2x32xf32, #tpu.memory_space<smem>>
    %c0_45 = arith.constant 0 : index
    %c18 = arith.constant 18 : index
    %188 = memref.load %arg2[%c0_45, %c18] : memref<2x32xf32, #tpu.memory_space<smem>>
    %c0_46 = arith.constant 0 : index
    %c19 = arith.constant 19 : index
    %189 = memref.load %arg2[%c0_46, %c19] : memref<2x32xf32, #tpu.memory_space<smem>>
    %190 = arith.subf %188, %186 : f32
    %191 = arith.subf %189, %187 : f32
    %192 = arith.mulf %190, %191 : f32
    %193 = vector.broadcast %186 : f32 to vector<4x128xf32>
    %194 = arith.maximumf %1, %193 : vector<4x128xf32>
    %195 = vector.broadcast %187 : f32 to vector<4x128xf32>
    %196 = arith.maximumf %3, %195 : vector<4x128xf32>
    %197 = vector.broadcast %188 : f32 to vector<4x128xf32>
    %198 = arith.minimumf %5, %197 : vector<4x128xf32>
    %199 = vector.broadcast %189 : f32 to vector<4x128xf32>
    %200 = arith.minimumf %7, %199 : vector<4x128xf32>
    %201 = arith.cmpf olt, %194, %198 : vector<4x128xf32>
    %202 = arith.cmpf olt, %196, %200 : vector<4x128xf32>
    %203 = arith.andi %201, %202 : vector<4x128xi1>
    %204 = arith.subf %198, %194 : vector<4x128xf32>
    %205 = arith.subf %200, %196 : vector<4x128xf32>
    %206 = arith.mulf %204, %205 : vector<4x128xf32>
    %207 = vector.broadcast %192 : f32 to vector<4x128xf32>
    %208 = arith.addf %10, %207 : vector<4x128xf32>
    %209 = arith.subf %208, %206 : vector<4x128xf32>
    %210 = arith.divf %206, %209 : vector<4x128xf32>
    %cst_47 = arith.constant 0.000000e+00 : f32
    %211 = vector.broadcast %cst_47 : f32 to vector<4x128xf32>
    %212 = arith.select %203, %210, %211 : vector<4x128xi1>, vector<4x128xf32>
    %213 = vector.shape_cast %212 : vector<4x128xf32> to vector<1x4x128xf32>
    %cst_48 = arith.constant dense<0xFF800000> : vector<1xf32>
    %214 = vector.multi_reduction <maximumf>, %213, %cst_48 [1, 2] : vector<1x4x128xf32> to vector<1xf32>
    %215 = vector.shape_cast %214 : vector<1xf32> to vector<1x1x1xf32>
    %216 = vector.extract %215[0, 0, 0] : f32 from vector<1x1x1xf32>
    %217 = vector.broadcast %216 : f32 to vector<1x1xf32>
    %218 = vector.broadcast %217 : vector<1x1xf32> to vector<4x128xf32>
    %219 = arith.cmpf oeq, %212, %218 : vector<4x128xf32>
    %220 = arith.ori %181, %219 : vector<4x128xi1>
    %221 = arith.cmpf ogt, %212, %183 : vector<4x128xf32>
    %222 = arith.select %221, %212, %183 : vector<4x128xi1>, vector<4x128xf32>
    %c4_i32 = arith.constant 4 : i32
    %223 = vector.broadcast %c4_i32 : i32 to vector<4x128xi32>
    %224 = arith.select %221, %223, %185 : vector<4x128xi1>, vector<4x128xi32>
    %c0_49 = arith.constant 0 : index
    %c20 = arith.constant 20 : index
    %225 = memref.load %arg2[%c0_49, %c20] : memref<2x32xf32, #tpu.memory_space<smem>>
    %c0_50 = arith.constant 0 : index
    %c21 = arith.constant 21 : index
    %226 = memref.load %arg2[%c0_50, %c21] : memref<2x32xf32, #tpu.memory_space<smem>>
    %c0_51 = arith.constant 0 : index
    %c22 = arith.constant 22 : index
    %227 = memref.load %arg2[%c0_51, %c22] : memref<2x32xf32, #tpu.memory_space<smem>>
    %c0_52 = arith.constant 0 : index
    %c23 = arith.constant 23 : index
    %228 = memref.load %arg2[%c0_52, %c23] : memref<2x32xf32, #tpu.memory_space<smem>>
    %229 = arith.subf %227, %225 : f32
    %230 = arith.subf %228, %226 : f32
    %231 = arith.mulf %229, %230 : f32
    %232 = vector.broadcast %225 : f32 to vector<4x128xf32>
    %233 = arith.maximumf %1, %232 : vector<4x128xf32>
    %234 = vector.broadcast %226 : f32 to vector<4x128xf32>
    %235 = arith.maximumf %3, %234 : vector<4x128xf32>
    %236 = vector.broadcast %227 : f32 to vector<4x128xf32>
    %237 = arith.minimumf %5, %236 : vector<4x128xf32>
    %238 = vector.broadcast %228 : f32 to vector<4x128xf32>
    %239 = arith.minimumf %7, %238 : vector<4x128xf32>
    %240 = arith.cmpf olt, %233, %237 : vector<4x128xf32>
    %241 = arith.cmpf olt, %235, %239 : vector<4x128xf32>
    %242 = arith.andi %240, %241 : vector<4x128xi1>
    %243 = arith.subf %237, %233 : vector<4x128xf32>
    %244 = arith.subf %239, %235 : vector<4x128xf32>
    %245 = arith.mulf %243, %244 : vector<4x128xf32>
    %246 = vector.broadcast %231 : f32 to vector<4x128xf32>
    %247 = arith.addf %10, %246 : vector<4x128xf32>
    %248 = arith.subf %247, %245 : vector<4x128xf32>
    %249 = arith.divf %245, %248 : vector<4x128xf32>
    %cst_53 = arith.constant 0.000000e+00 : f32
    %250 = vector.broadcast %cst_53 : f32 to vector<4x128xf32>
    %251 = arith.select %242, %249, %250 : vector<4x128xi1>, vector<4x128xf32>
    %252 = vector.shape_cast %251 : vector<4x128xf32> to vector<1x4x128xf32>
    %cst_54 = arith.constant dense<0xFF800000> : vector<1xf32>
    %253 = vector.multi_reduction <maximumf>, %252, %cst_54 [1, 2] : vector<1x4x128xf32> to vector<1xf32>
    %254 = vector.shape_cast %253 : vector<1xf32> to vector<1x1x1xf32>
    %255 = vector.extract %254[0, 0, 0] : f32 from vector<1x1x1xf32>
    %256 = vector.broadcast %255 : f32 to vector<1x1xf32>
    %257 = vector.broadcast %256 : vector<1x1xf32> to vector<4x128xf32>
    %258 = arith.cmpf oeq, %251, %257 : vector<4x128xf32>
    %259 = arith.ori %220, %258 : vector<4x128xi1>
    %260 = arith.cmpf ogt, %251, %222 : vector<4x128xf32>
    %261 = arith.select %260, %251, %222 : vector<4x128xi1>, vector<4x128xf32>
    %c5_i32 = arith.constant 5 : i32
    %262 = vector.broadcast %c5_i32 : i32 to vector<4x128xi32>
    %263 = arith.select %260, %262, %224 : vector<4x128xi1>, vector<4x128xi32>
    %c0_55 = arith.constant 0 : index
    %c24 = arith.constant 24 : index
    %264 = memref.load %arg2[%c0_55, %c24] : memref<2x32xf32, #tpu.memory_space<smem>>
    %c0_56 = arith.constant 0 : index
    %c25 = arith.constant 25 : index
    %265 = memref.load %arg2[%c0_56, %c25] : memref<2x32xf32, #tpu.memory_space<smem>>
    %c0_57 = arith.constant 0 : index
    %c26 = arith.constant 26 : index
    %266 = memref.load %arg2[%c0_57, %c26] : memref<2x32xf32, #tpu.memory_space<smem>>
    %c0_58 = arith.constant 0 : index
    %c27 = arith.constant 27 : index
    %267 = memref.load %arg2[%c0_58, %c27] : memref<2x32xf32, #tpu.memory_space<smem>>
    %268 = arith.subf %266, %264 : f32
    %269 = arith.subf %267, %265 : f32
    %270 = arith.mulf %268, %269 : f32
    %271 = vector.broadcast %264 : f32 to vector<4x128xf32>
    %272 = arith.maximumf %1, %271 : vector<4x128xf32>
    %273 = vector.broadcast %265 : f32 to vector<4x128xf32>
    %274 = arith.maximumf %3, %273 : vector<4x128xf32>
    %275 = vector.broadcast %266 : f32 to vector<4x128xf32>
    %276 = arith.minimumf %5, %275 : vector<4x128xf32>
    %277 = vector.broadcast %267 : f32 to vector<4x128xf32>
    %278 = arith.minimumf %7, %277 : vector<4x128xf32>
    %279 = arith.cmpf olt, %272, %276 : vector<4x128xf32>
    %280 = arith.cmpf olt, %274, %278 : vector<4x128xf32>
    %281 = arith.andi %279, %280 : vector<4x128xi1>
    %282 = arith.subf %276, %272 : vector<4x128xf32>
    %283 = arith.subf %278, %274 : vector<4x128xf32>
    %284 = arith.mulf %282, %283 : vector<4x128xf32>
    %285 = vector.broadcast %270 : f32 to vector<4x128xf32>
    %286 = arith.addf %10, %285 : vector<4x128xf32>
    %287 = arith.subf %286, %284 : vector<4x128xf32>
    %288 = arith.divf %284, %287 : vector<4x128xf32>
    %cst_59 = arith.constant 0.000000e+00 : f32
    %289 = vector.broadcast %cst_59 : f32 to vector<4x128xf32>
    %290 = arith.select %281, %288, %289 : vector<4x128xi1>, vector<4x128xf32>
    %291 = vector.shape_cast %290 : vector<4x128xf32> to vector<1x4x128xf32>
    %cst_60 = arith.constant dense<0xFF800000> : vector<1xf32>
    %292 = vector.multi_reduction <maximumf>, %291, %cst_60 [1, 2] : vector<1x4x128xf32> to vector<1xf32>
    %293 = vector.shape_cast %292 : vector<1xf32> to vector<1x1x1xf32>
    %294 = vector.extract %293[0, 0, 0] : f32 from vector<1x1x1xf32>
    %295 = vector.broadcast %294 : f32 to vector<1x1xf32>
    %296 = vector.broadcast %295 : vector<1x1xf32> to vector<4x128xf32>
    %297 = arith.cmpf oeq, %290, %296 : vector<4x128xf32>
    %298 = arith.ori %259, %297 : vector<4x128xi1>
    %299 = arith.cmpf ogt, %290, %261 : vector<4x128xf32>
    %300 = arith.select %299, %290, %261 : vector<4x128xi1>, vector<4x128xf32>
    %c6_i32 = arith.constant 6 : i32
    %301 = vector.broadcast %c6_i32 : i32 to vector<4x128xi32>
    %302 = arith.select %299, %301, %263 : vector<4x128xi1>, vector<4x128xi32>
    %c0_61 = arith.constant 0 : index
    %c28 = arith.constant 28 : index
    %303 = memref.load %arg2[%c0_61, %c28] : memref<2x32xf32, #tpu.memory_space<smem>>
    %c0_62 = arith.constant 0 : index
    %c29 = arith.constant 29 : index
    %304 = memref.load %arg2[%c0_62, %c29] : memref<2x32xf32, #tpu.memory_space<smem>>
    %c0_63 = arith.constant 0 : index
    %c30 = arith.constant 30 : index
    %305 = memref.load %arg2[%c0_63, %c30] : memref<2x32xf32, #tpu.memory_space<smem>>
    %c0_64 = arith.constant 0 : index
    %c31 = arith.constant 31 : index
    %306 = memref.load %arg2[%c0_64, %c31] : memref<2x32xf32, #tpu.memory_space<smem>>
    %307 = arith.subf %305, %303 : f32
    %308 = arith.subf %306, %304 : f32
    %309 = arith.mulf %307, %308 : f32
    %310 = vector.broadcast %303 : f32 to vector<4x128xf32>
    %311 = arith.maximumf %1, %310 : vector<4x128xf32>
    %312 = vector.broadcast %304 : f32 to vector<4x128xf32>
    %313 = arith.maximumf %3, %312 : vector<4x128xf32>
    %314 = vector.broadcast %305 : f32 to vector<4x128xf32>
    %315 = arith.minimumf %5, %314 : vector<4x128xf32>
    %316 = vector.broadcast %306 : f32 to vector<4x128xf32>
    %317 = arith.minimumf %7, %316 : vector<4x128xf32>
    %318 = arith.cmpf olt, %311, %315 : vector<4x128xf32>
    %319 = arith.cmpf olt, %313, %317 : vector<4x128xf32>
    %320 = arith.andi %318, %319 : vector<4x128xi1>
    %321 = arith.subf %315, %311 : vector<4x128xf32>
    %322 = arith.subf %317, %313 : vector<4x128xf32>
    %323 = arith.mulf %321, %322 : vector<4x128xf32>
    %324 = vector.broadcast %309 : f32 to vector<4x128xf32>
    %325 = arith.addf %10, %324 : vector<4x128xf32>
    %326 = arith.subf %325, %323 : vector<4x128xf32>
    %327 = arith.divf %323, %326 : vector<4x128xf32>
    %cst_65 = arith.constant 0.000000e+00 : f32
    %328 = vector.broadcast %cst_65 : f32 to vector<4x128xf32>
    %329 = arith.select %320, %327, %328 : vector<4x128xi1>, vector<4x128xf32>
    %330 = vector.shape_cast %329 : vector<4x128xf32> to vector<1x4x128xf32>
    %cst_66 = arith.constant dense<0xFF800000> : vector<1xf32>
    %331 = vector.multi_reduction <maximumf>, %330, %cst_66 [1, 2] : vector<1x4x128xf32> to vector<1xf32>
    %332 = vector.shape_cast %331 : vector<1xf32> to vector<1x1x1xf32>
    %333 = vector.extract %332[0, 0, 0] : f32 from vector<1x1x1xf32>
    %334 = vector.broadcast %333 : f32 to vector<1x1xf32>
    %335 = vector.broadcast %334 : vector<1x1xf32> to vector<4x128xf32>
    %336 = arith.cmpf oeq, %329, %335 : vector<4x128xf32>
    %337 = arith.ori %298, %336 : vector<4x128xi1>
    %338 = arith.cmpf ogt, %329, %300 : vector<4x128xf32>
    %339 = arith.select %338, %329, %300 : vector<4x128xi1>, vector<4x128xf32>
    %c7_i32 = arith.constant 7 : i32
    %340 = vector.broadcast %c7_i32 : i32 to vector<4x128xi32>
    %341 = arith.select %338, %340, %302 : vector<4x128xi1>, vector<4x128xi32>
    %c-1_i32 = arith.constant -1 : i32
    %342 = vector.broadcast %c-1_i32 : i32 to vector<4x128xi32>
    %cst_67 = arith.constant 3.000000e-01 : f32
    %343 = vector.broadcast %cst_67 : f32 to vector<4x128xf32>
    %344 = arith.cmpf olt, %339, %343 : vector<4x128xf32>
    %c0_i32_68 = arith.constant 0 : i32
    %345 = vector.broadcast %c0_i32_68 : i32 to vector<4x128xi32>
    %346 = arith.select %344, %345, %342 : vector<4x128xi1>, vector<4x128xi32>
    %cst_69 = arith.constant 0.699999988 : f32
    %347 = vector.broadcast %cst_69 : f32 to vector<4x128xf32>
    %348 = arith.cmpf oge, %339, %347 : vector<4x128xf32>
    %c1_i32_70 = arith.constant 1 : i32
    %349 = vector.broadcast %c1_i32_70 : i32 to vector<4x128xi32>
    %350 = arith.select %348, %349, %346 : vector<4x128xi1>, vector<4x128xi32>
    %c1_i32_71 = arith.constant 1 : i32
    %351 = vector.broadcast %c1_i32_71 : i32 to vector<4x128xi32>
    %352 = arith.select %337, %351, %350 : vector<4x128xi1>, vector<4x128xi32>
    %c0_72 = arith.constant 0 : index
    %c0_73 = arith.constant 0 : index
    %c0_74 = arith.constant 0 : index
    %c0_75 = arith.constant 0 : index
    %353 = vector.load %arg4[%c0_72, %c0_73, %c0_74, %c0_75] : memref<2x1x4x128xi32, #tpu.memory_space<vmem>>, vector<1x1x4x128xi32>
    %354 = vector.shape_cast %353 : vector<1x1x4x128xi32> to vector<4x128xi32>
    %355 = vector.shape_cast %352 : vector<4x128xi32> to vector<1x1x4x128xi32>
    tpu.vector_store %arg4[%c0_72, %c0_73, %c0_74, %c0_75], %355 {strides = array<i32>} : memref<2x1x4x128xi32, #tpu.memory_space<vmem>>, vector<1x1x4x128xi32>,
    %cst_76 = arith.constant 0.000000e+00 : f32
    %356 = vector.broadcast %cst_76 : f32 to vector<4x128xf32>
    %cst_77 = arith.constant 0.000000e+00 : f32
    %357 = vector.broadcast %cst_77 : f32 to vector<4x128xf32>
    %cst_78 = arith.constant 0.000000e+00 : f32
    %358 = vector.broadcast %cst_78 : f32 to vector<4x128xf32>
    %cst_79 = arith.constant 0.000000e+00 : f32
    %359 = vector.broadcast %cst_79 : f32 to vector<4x128xf32>
    %c0_i32_80 = arith.constant 0 : i32
    %360 = vector.broadcast %c0_i32_80 : i32 to vector<4x128xi32>
    %361 = arith.cmpi eq, %341, %360 : vector<4x128xi32>
    %c0_81 = arith.constant 0 : index
    %c0_82 = arith.constant 0 : index
    %362 = memref.load %arg3[%c0_81, %c0_82] : memref<8x4xf32, #tpu.memory_space<smem>>
    %363 = vector.broadcast %362 : f32 to vector<4x128xf32>
    %364 = arith.select %361, %363, %356 : vector<4x128xi1>, vector<4x128xf32>
    %c0_83 = arith.constant 0 : index
    %c1_84 = arith.constant 1 : index
    %365 = memref.load %arg3[%c0_83, %c1_84] : memref<8x4xf32, #tpu.memory_space<smem>>
    %366 = vector.broadcast %365 : f32 to vector<4x128xf32>
    %367 = arith.select %361, %366, %357 : vector<4x128xi1>, vector<4x128xf32>
    %c0_85 = arith.constant 0 : index
    %c2_86 = arith.constant 2 : index
    %368 = memref.load %arg3[%c0_85, %c2_86] : memref<8x4xf32, #tpu.memory_space<smem>>
    %369 = vector.broadcast %368 : f32 to vector<4x128xf32>
    %370 = arith.select %361, %369, %358 : vector<4x128xi1>, vector<4x128xf32>
    %c0_87 = arith.constant 0 : index
    %c3_88 = arith.constant 3 : index
    %371 = memref.load %arg3[%c0_87, %c3_88] : memref<8x4xf32, #tpu.memory_space<smem>>
    %372 = vector.broadcast %371 : f32 to vector<4x128xf32>
    %373 = arith.select %361, %372, %359 : vector<4x128xi1>, vector<4x128xf32>
    %c1_i32_89 = arith.constant 1 : i32
    %374 = vector.broadcast %c1_i32_89 : i32 to vector<4x128xi32>
    %375 = arith.cmpi eq, %341, %374 : vector<4x128xi32>
    %c1_90 = arith.constant 1 : index
    %c0_91 = arith.constant 0 : index
    %376 = memref.load %arg3[%c1_90, %c0_91] : memref<8x4xf32, #tpu.memory_space<smem>>
    %377 = vector.broadcast %376 : f32 to vector<4x128xf32>
    %378 = arith.select %375, %377, %364 : vector<4x128xi1>, vector<4x128xf32>
    %c1_92 = arith.constant 1 : index
    %c1_93 = arith.constant 1 : index
    %379 = memref.load %arg3[%c1_92, %c1_93] : memref<8x4xf32, #tpu.memory_space<smem>>
    %380 = vector.broadcast %379 : f32 to vector<4x128xf32>
    %381 = arith.select %375, %380, %367 : vector<4x128xi1>, vector<4x128xf32>
    %c1_94 = arith.constant 1 : index
    %c2_95 = arith.constant 2 : index
    %382 = memref.load %arg3[%c1_94, %c2_95] : memref<8x4xf32, #tpu.memory_space<smem>>
    %383 = vector.broadcast %382 : f32 to vector<4x128xf32>
    %384 = arith.select %375, %383, %370 : vector<4x128xi1>, vector<4x128xf32>
    %c1_96 = arith.constant 1 : index
    %c3_97 = arith.constant 3 : index
    %385 = memref.load %arg3[%c1_96, %c3_97] : memref<8x4xf32, #tpu.memory_space<smem>>
    %386 = vector.broadcast %385 : f32 to vector<4x128xf32>
    %387 = arith.select %375, %386, %373 : vector<4x128xi1>, vector<4x128xf32>
    %c2_i32_98 = arith.constant 2 : i32
    %388 = vector.broadcast %c2_i32_98 : i32 to vector<4x128xi32>
    %389 = arith.cmpi eq, %341, %388 : vector<4x128xi32>
    %c2_99 = arith.constant 2 : index
    %c0_100 = arith.constant 0 : index
    %390 = memref.load %arg3[%c2_99, %c0_100] : memref<8x4xf32, #tpu.memory_space<smem>>
    %391 = vector.broadcast %390 : f32 to vector<4x128xf32>
    %392 = arith.select %389, %391, %378 : vector<4x128xi1>, vector<4x128xf32>
    %c2_101 = arith.constant 2 : index
    %c1_102 = arith.constant 1 : index
    %393 = memref.load %arg3[%c2_101, %c1_102] : memref<8x4xf32, #tpu.memory_space<smem>>
    %394 = vector.broadcast %393 : f32 to vector<4x128xf32>
    %395 = arith.select %389, %394, %381 : vector<4x128xi1>, vector<4x128xf32>
    %c2_103 = arith.constant 2 : index
    %c2_104 = arith.constant 2 : index
    %396 = memref.load %arg3[%c2_103, %c2_104] : memref<8x4xf32, #tpu.memory_space<smem>>
    %397 = vector.broadcast %396 : f32 to vector<4x128xf32>
    %398 = arith.select %389, %397, %384 : vector<4x128xi1>, vector<4x128xf32>
    %c2_105 = arith.constant 2 : index
    %c3_106 = arith.constant 3 : index
    %399 = memref.load %arg3[%c2_105, %c3_106] : memref<8x4xf32, #tpu.memory_space<smem>>
    %400 = vector.broadcast %399 : f32 to vector<4x128xf32>
    %401 = arith.select %389, %400, %387 : vector<4x128xi1>, vector<4x128xf32>
    %c3_i32_107 = arith.constant 3 : i32
    %402 = vector.broadcast %c3_i32_107 : i32 to vector<4x128xi32>
    %403 = arith.cmpi eq, %341, %402 : vector<4x128xi32>
    %c3_108 = arith.constant 3 : index
    %c0_109 = arith.constant 0 : index
    %404 = memref.load %arg3[%c3_108, %c0_109] : memref<8x4xf32, #tpu.memory_space<smem>>
    %405 = vector.broadcast %404 : f32 to vector<4x128xf32>
    %406 = arith.select %403, %405, %392 : vector<4x128xi1>, vector<4x128xf32>
    %c3_110 = arith.constant 3 : index
    %c1_111 = arith.constant 1 : index
    %407 = memref.load %arg3[%c3_110, %c1_111] : memref<8x4xf32, #tpu.memory_space<smem>>
    %408 = vector.broadcast %407 : f32 to vector<4x128xf32>
    %409 = arith.select %403, %408, %395 : vector<4x128xi1>, vector<4x128xf32>
    %c3_112 = arith.constant 3 : index
    %c2_113 = arith.constant 2 : index
    %410 = memref.load %arg3[%c3_112, %c2_113] : memref<8x4xf32, #tpu.memory_space<smem>>
    %411 = vector.broadcast %410 : f32 to vector<4x128xf32>
    %412 = arith.select %403, %411, %398 : vector<4x128xi1>, vector<4x128xf32>
    %c3_114 = arith.constant 3 : index
    %c3_115 = arith.constant 3 : index
    %413 = memref.load %arg3[%c3_114, %c3_115] : memref<8x4xf32, #tpu.memory_space<smem>>
    %414 = vector.broadcast %413 : f32 to vector<4x128xf32>
    %415 = arith.select %403, %414, %401 : vector<4x128xi1>, vector<4x128xf32>
    %c4_i32_116 = arith.constant 4 : i32
    %416 = vector.broadcast %c4_i32_116 : i32 to vector<4x128xi32>
    %417 = arith.cmpi eq, %341, %416 : vector<4x128xi32>
    %c4_117 = arith.constant 4 : index
    %c0_118 = arith.constant 0 : index
    %418 = memref.load %arg3[%c4_117, %c0_118] : memref<8x4xf32, #tpu.memory_space<smem>>
    %419 = vector.broadcast %418 : f32 to vector<4x128xf32>
    %420 = arith.select %417, %419, %406 : vector<4x128xi1>, vector<4x128xf32>
    %c4_119 = arith.constant 4 : index
    %c1_120 = arith.constant 1 : index
    %421 = memref.load %arg3[%c4_119, %c1_120] : memref<8x4xf32, #tpu.memory_space<smem>>
    %422 = vector.broadcast %421 : f32 to vector<4x128xf32>
    %423 = arith.select %417, %422, %409 : vector<4x128xi1>, vector<4x128xf32>
    %c4_121 = arith.constant 4 : index
    %c2_122 = arith.constant 2 : index
    %424 = memref.load %arg3[%c4_121, %c2_122] : memref<8x4xf32, #tpu.memory_space<smem>>
    %425 = vector.broadcast %424 : f32 to vector<4x128xf32>
    %426 = arith.select %417, %425, %412 : vector<4x128xi1>, vector<4x128xf32>
    %c4_123 = arith.constant 4 : index
    %c3_124 = arith.constant 3 : index
    %427 = memref.load %arg3[%c4_123, %c3_124] : memref<8x4xf32, #tpu.memory_space<smem>>
    %428 = vector.broadcast %427 : f32 to vector<4x128xf32>
    %429 = arith.select %417, %428, %415 : vector<4x128xi1>, vector<4x128xf32>
    %c5_i32_125 = arith.constant 5 : i32
    %430 = vector.broadcast %c5_i32_125 : i32 to vector<4x128xi32>
    %431 = arith.cmpi eq, %341, %430 : vector<4x128xi32>
    %c5_126 = arith.constant 5 : index
    %c0_127 = arith.constant 0 : index
    %432 = memref.load %arg3[%c5_126, %c0_127] : memref<8x4xf32, #tpu.memory_space<smem>>
    %433 = vector.broadcast %432 : f32 to vector<4x128xf32>
    %434 = arith.select %431, %433, %420 : vector<4x128xi1>, vector<4x128xf32>
    %c5_128 = arith.constant 5 : index
    %c1_129 = arith.constant 1 : index
    %435 = memref.load %arg3[%c5_128, %c1_129] : memref<8x4xf32, #tpu.memory_space<smem>>
    %436 = vector.broadcast %435 : f32 to vector<4x128xf32>
    %437 = arith.select %431, %436, %423 : vector<4x128xi1>, vector<4x128xf32>
    %c5_130 = arith.constant 5 : index
    %c2_131 = arith.constant 2 : index
    %438 = memref.load %arg3[%c5_130, %c2_131] : memref<8x4xf32, #tpu.memory_space<smem>>
    %439 = vector.broadcast %438 : f32 to vector<4x128xf32>
    %440 = arith.select %431, %439, %426 : vector<4x128xi1>, vector<4x128xf32>
    %c5_132 = arith.constant 5 : index
    %c3_133 = arith.constant 3 : index
    %441 = memref.load %arg3[%c5_132, %c3_133] : memref<8x4xf32, #tpu.memory_space<smem>>
    %442 = vector.broadcast %441 : f32 to vector<4x128xf32>
    %443 = arith.select %431, %442, %429 : vector<4x128xi1>, vector<4x128xf32>
    %c6_i32_134 = arith.constant 6 : i32
    %444 = vector.broadcast %c6_i32_134 : i32 to vector<4x128xi32>
    %445 = arith.cmpi eq, %341, %444 : vector<4x128xi32>
    %c6_135 = arith.constant 6 : index
    %c0_136 = arith.constant 0 : index
    %446 = memref.load %arg3[%c6_135, %c0_136] : memref<8x4xf32, #tpu.memory_space<smem>>
    %447 = vector.broadcast %446 : f32 to vector<4x128xf32>
    %448 = arith.select %445, %447, %434 : vector<4x128xi1>, vector<4x128xf32>
    %c6_137 = arith.constant 6 : index
    %c1_138 = arith.constant 1 : index
    %449 = memref.load %arg3[%c6_137, %c1_138] : memref<8x4xf32, #tpu.memory_space<smem>>
    %450 = vector.broadcast %449 : f32 to vector<4x128xf32>
    %451 = arith.select %445, %450, %437 : vector<4x128xi1>, vector<4x128xf32>
    %c6_139 = arith.constant 6 : index
    %c2_140 = arith.constant 2 : index
    %452 = memref.load %arg3[%c6_139, %c2_140] : memref<8x4xf32, #tpu.memory_space<smem>>
    %453 = vector.broadcast %452 : f32 to vector<4x128xf32>
    %454 = arith.select %445, %453, %440 : vector<4x128xi1>, vector<4x128xf32>
    %c6_141 = arith.constant 6 : index
    %c3_142 = arith.constant 3 : index
    %455 = memref.load %arg3[%c6_141, %c3_142] : memref<8x4xf32, #tpu.memory_space<smem>>
    %456 = vector.broadcast %455 : f32 to vector<4x128xf32>
    %457 = arith.select %445, %456, %443 : vector<4x128xi1>, vector<4x128xf32>
    %c7_i32_143 = arith.constant 7 : i32
    %458 = vector.broadcast %c7_i32_143 : i32 to vector<4x128xi32>
    %459 = arith.cmpi eq, %341, %458 : vector<4x128xi32>
    %c7_144 = arith.constant 7 : index
    %c0_145 = arith.constant 0 : index
    %460 = memref.load %arg3[%c7_144, %c0_145] : memref<8x4xf32, #tpu.memory_space<smem>>
    %461 = vector.broadcast %460 : f32 to vector<4x128xf32>
    %462 = arith.select %459, %461, %448 : vector<4x128xi1>, vector<4x128xf32>
    %c7_146 = arith.constant 7 : index
    %c1_147 = arith.constant 1 : index
    %463 = memref.load %arg3[%c7_146, %c1_147] : memref<8x4xf32, #tpu.memory_space<smem>>
    %464 = vector.broadcast %463 : f32 to vector<4x128xf32>
    %465 = arith.select %459, %464, %451 : vector<4x128xi1>, vector<4x128xf32>
    %c7_148 = arith.constant 7 : index
    %c2_149 = arith.constant 2 : index
    %466 = memref.load %arg3[%c7_148, %c2_149] : memref<8x4xf32, #tpu.memory_space<smem>>
    %467 = vector.broadcast %466 : f32 to vector<4x128xf32>
    %468 = arith.select %459, %467, %454 : vector<4x128xi1>, vector<4x128xf32>
    %c7_150 = arith.constant 7 : index
    %c3_151 = arith.constant 3 : index
    %469 = memref.load %arg3[%c7_150, %c3_151] : memref<8x4xf32, #tpu.memory_space<smem>>
    %470 = vector.broadcast %469 : f32 to vector<4x128xf32>
    %471 = arith.select %459, %470, %457 : vector<4x128xi1>, vector<4x128xf32>
    %472 = arith.subf %471, %465 : vector<4x128xf32>
    %473 = arith.subf %468, %462 : vector<4x128xf32>
    %cst_152 = arith.constant 5.000000e-01 : f32
    %474 = vector.broadcast %cst_152 : f32 to vector<4x128xf32>
    %475 = arith.mulf %474, %473 : vector<4x128xf32>
    %476 = arith.addf %462, %475 : vector<4x128xf32>
    %cst_153 = arith.constant 5.000000e-01 : f32
    %477 = vector.broadcast %cst_153 : f32 to vector<4x128xf32>
    %478 = arith.mulf %477, %472 : vector<4x128xf32>
    %479 = arith.addf %465, %478 : vector<4x128xf32>
    %480 = arith.subf %476, %15 : vector<4x128xf32>
    %481 = arith.mulf %480, %24 : vector<4x128xf32>
    %c0_154 = arith.constant 0 : index
    %c0_155 = arith.constant 0 : index
    %c0_156 = arith.constant 0 : index
    %c0_157 = arith.constant 0 : index
    %482 = vector.load %arg5[%c0_154, %c0_155, %c0_156, %c0_157] : memref<2x4x4x128xf32, #tpu.memory_space<vmem>>, vector<1x1x4x128xf32>
    %483 = vector.shape_cast %482 : vector<1x1x4x128xf32> to vector<4x128xf32>
    %484 = vector.shape_cast %481 : vector<4x128xf32> to vector<1x1x4x128xf32>
    tpu.vector_store %arg5[%c0_154, %c0_155, %c0_156, %c0_157], %484 {strides = array<i32>} : memref<2x4x4x128xf32, #tpu.memory_space<vmem>>, vector<1x1x4x128xf32>,
    %485 = arith.subf %479, %18 : vector<4x128xf32>
    %486 = arith.mulf %485, %26 : vector<4x128xf32>
    %c0_158 = arith.constant 0 : index
    %c1_159 = arith.constant 1 : index
    %c0_160 = arith.constant 0 : index
    %c0_161 = arith.constant 0 : index
    %487 = vector.load %arg5[%c0_158, %c1_159, %c0_160, %c0_161] : memref<2x4x4x128xf32, #tpu.memory_space<vmem>>, vector<1x1x4x128xf32>
    %488 = vector.shape_cast %487 : vector<1x1x4x128xf32> to vector<4x128xf32>
    %489 = vector.shape_cast %486 : vector<4x128xf32> to vector<1x1x4x128xf32>
    tpu.vector_store %arg5[%c0_158, %c1_159, %c0_160, %c0_161], %489 {strides = array<i32>} : memref<2x4x4x128xf32, #tpu.memory_space<vmem>>, vector<1x1x4x128xf32>,
    %490 = arith.mulf %473, %24 : vector<4x128xf32>
    %491 = math.log %490 : vector<4x128xf32>
    %c0_162 = arith.constant 0 : index
    %c2_163 = arith.constant 2 : index
    %c0_164 = arith.constant 0 : index
    %c0_165 = arith.constant 0 : index
    %492 = vector.load %arg5[%c0_162, %c2_163, %c0_164, %c0_165] : memref<2x4x4x128xf32, #tpu.memory_space<vmem>>, vector<1x1x4x128xf32>
    %493 = vector.shape_cast %492 : vector<1x1x4x128xf32> to vector<4x128xf32>
    %494 = vector.shape_cast %491 : vector<4x128xf32> to vector<1x1x4x128xf32>
    tpu.vector_store %arg5[%c0_162, %c2_163, %c0_164, %c0_165], %494 {strides = array<i32>} : memref<2x4x4x128xf32, #tpu.memory_space<vmem>>, vector<1x1x4x128xf32>,
    %495 = arith.mulf %472, %26 : vector<4x128xf32>
    %496 = math.log %495 : vector<4x128xf32>
    %c0_166 = arith.constant 0 : index
    %c3_167 = arith.constant 3 : index
    %c0_168 = arith.constant 0 : index
    %c0_169 = arith.constant 0 : index
    %497 = vector.load %arg5[%c0_166, %c3_167, %c0_168, %c0_169] : memref<2x4x4x128xf32, #tpu.memory_space<vmem>>, vector<1x1x4x128xf32>
    %498 = vector.shape_cast %497 : vector<1x1x4x128xf32> to vector<4x128xf32>
    %499 = vector.shape_cast %496 : vector<4x128xf32> to vector<1x1x4x128xf32>
    tpu.vector_store %arg5[%c0_166, %c3_167, %c0_168, %c0_169], %499 {strides = array<i32>} : memref<2x4x4x128xf32, #tpu.memory_space<vmem>>, vector<1x1x4x128xf32>,
    %cst_170 = arith.constant -1.000000e+00 : f32
    %500 = vector.broadcast %cst_170 : f32 to vector<4x128xf32>
    %false_171 = arith.constant false
    %501 = vector.broadcast %false_171 : i1 to vector<4x128xi1>
    %c0_i32_172 = arith.constant 0 : i32
    %502 = vector.broadcast %c0_i32_172 : i32 to vector<4x128xi32>
    %c1_173 = arith.constant 1 : index
    %c0_174 = arith.constant 0 : index
    %503 = memref.load %arg2[%c1_173, %c0_174] : memref<2x32xf32, #tpu.memory_space<smem>>
    %c1_175 = arith.constant 1 : index
    %c1_176 = arith.constant 1 : index
    %504 = memref.load %arg2[%c1_175, %c1_176] : memref<2x32xf32, #tpu.memory_space<smem>>
    %c1_177 = arith.constant 1 : index
    %c2_178 = arith.constant 2 : index
    %505 = memref.load %arg2[%c1_177, %c2_178] : memref<2x32xf32, #tpu.memory_space<smem>>
    %c1_179 = arith.constant 1 : index
    %c3_180 = arith.constant 3 : index
    %506 = memref.load %arg2[%c1_179, %c3_180] : memref<2x32xf32, #tpu.memory_space<smem>>
    %507 = arith.subf %505, %503 : f32
    %508 = arith.subf %506, %504 : f32
    %509 = arith.mulf %507, %508 : f32
    %510 = vector.broadcast %503 : f32 to vector<4x128xf32>
    %511 = arith.maximumf %1, %510 : vector<4x128xf32>
    %512 = vector.broadcast %504 : f32 to vector<4x128xf32>
    %513 = arith.maximumf %3, %512 : vector<4x128xf32>
    %514 = vector.broadcast %505 : f32 to vector<4x128xf32>
    %515 = arith.minimumf %5, %514 : vector<4x128xf32>
    %516 = vector.broadcast %506 : f32 to vector<4x128xf32>
    %517 = arith.minimumf %7, %516 : vector<4x128xf32>
    %518 = arith.cmpf olt, %511, %515 : vector<4x128xf32>
    %519 = arith.cmpf olt, %513, %517 : vector<4x128xf32>
    %520 = arith.andi %518, %519 : vector<4x128xi1>
    %521 = arith.subf %515, %511 : vector<4x128xf32>
    %522 = arith.subf %517, %513 : vector<4x128xf32>
    %523 = arith.mulf %521, %522 : vector<4x128xf32>
    %524 = vector.broadcast %509 : f32 to vector<4x128xf32>
    %525 = arith.addf %10, %524 : vector<4x128xf32>
    %526 = arith.subf %525, %523 : vector<4x128xf32>
    %527 = arith.divf %523, %526 : vector<4x128xf32>
    %cst_181 = arith.constant 0.000000e+00 : f32
    %528 = vector.broadcast %cst_181 : f32 to vector<4x128xf32>
    %529 = arith.select %520, %527, %528 : vector<4x128xi1>, vector<4x128xf32>
    %530 = vector.shape_cast %529 : vector<4x128xf32> to vector<1x4x128xf32>
    %cst_182 = arith.constant dense<0xFF800000> : vector<1xf32>
    %531 = vector.multi_reduction <maximumf>, %530, %cst_182 [1, 2] : vector<1x4x128xf32> to vector<1xf32>
    %532 = vector.shape_cast %531 : vector<1xf32> to vector<1x1x1xf32>
    %533 = vector.extract %532[0, 0, 0] : f32 from vector<1x1x1xf32>
    %534 = vector.broadcast %533 : f32 to vector<1x1xf32>
    %535 = vector.broadcast %534 : vector<1x1xf32> to vector<4x128xf32>
    %536 = arith.cmpf oeq, %529, %535 : vector<4x128xf32>
    %537 = arith.ori %501, %536 : vector<4x128xi1>
    %538 = arith.cmpf ogt, %529, %500 : vector<4x128xf32>
    %539 = arith.select %538, %529, %500 : vector<4x128xi1>, vector<4x128xf32>
    %c0_i32_183 = arith.constant 0 : i32
    %540 = vector.broadcast %c0_i32_183 : i32 to vector<4x128xi32>
    %541 = arith.select %538, %540, %502 : vector<4x128xi1>, vector<4x128xi32>
    %c1_184 = arith.constant 1 : index
    %c4_185 = arith.constant 4 : index
    %542 = memref.load %arg2[%c1_184, %c4_185] : memref<2x32xf32, #tpu.memory_space<smem>>
    %c1_186 = arith.constant 1 : index
    %c5_187 = arith.constant 5 : index
    %543 = memref.load %arg2[%c1_186, %c5_187] : memref<2x32xf32, #tpu.memory_space<smem>>
    %c1_188 = arith.constant 1 : index
    %c6_189 = arith.constant 6 : index
    %544 = memref.load %arg2[%c1_188, %c6_189] : memref<2x32xf32, #tpu.memory_space<smem>>
    %c1_190 = arith.constant 1 : index
    %c7_191 = arith.constant 7 : index
    %545 = memref.load %arg2[%c1_190, %c7_191] : memref<2x32xf32, #tpu.memory_space<smem>>
    %546 = arith.subf %544, %542 : f32
    %547 = arith.subf %545, %543 : f32
    %548 = arith.mulf %546, %547 : f32
    %549 = vector.broadcast %542 : f32 to vector<4x128xf32>
    %550 = arith.maximumf %1, %549 : vector<4x128xf32>
    %551 = vector.broadcast %543 : f32 to vector<4x128xf32>
    %552 = arith.maximumf %3, %551 : vector<4x128xf32>
    %553 = vector.broadcast %544 : f32 to vector<4x128xf32>
    %554 = arith.minimumf %5, %553 : vector<4x128xf32>
    %555 = vector.broadcast %545 : f32 to vector<4x128xf32>
    %556 = arith.minimumf %7, %555 : vector<4x128xf32>
    %557 = arith.cmpf olt, %550, %554 : vector<4x128xf32>
    %558 = arith.cmpf olt, %552, %556 : vector<4x128xf32>
    %559 = arith.andi %557, %558 : vector<4x128xi1>
    %560 = arith.subf %554, %550 : vector<4x128xf32>
    %561 = arith.subf %556, %552 : vector<4x128xf32>
    %562 = arith.mulf %560, %561 : vector<4x128xf32>
    %563 = vector.broadcast %548 : f32 to vector<4x128xf32>
    %564 = arith.addf %10, %563 : vector<4x128xf32>
    %565 = arith.subf %564, %562 : vector<4x128xf32>
    %566 = arith.divf %562, %565 : vector<4x128xf32>
    %cst_192 = arith.constant 0.000000e+00 : f32
    %567 = vector.broadcast %cst_192 : f32 to vector<4x128xf32>
    %568 = arith.select %559, %566, %567 : vector<4x128xi1>, vector<4x128xf32>
    %569 = vector.shape_cast %568 : vector<4x128xf32> to vector<1x4x128xf32>
    %cst_193 = arith.constant dense<0xFF800000> : vector<1xf32>
    %570 = vector.multi_reduction <maximumf>, %569, %cst_193 [1, 2] : vector<1x4x128xf32> to vector<1xf32>
    %571 = vector.shape_cast %570 : vector<1xf32> to vector<1x1x1xf32>
    %572 = vector.extract %571[0, 0, 0] : f32 from vector<1x1x1xf32>
    %573 = vector.broadcast %572 : f32 to vector<1x1xf32>
    %574 = vector.broadcast %573 : vector<1x1xf32> to vector<4x128xf32>
    %575 = arith.cmpf oeq, %568, %574 : vector<4x128xf32>
    %576 = arith.ori %537, %575 : vector<4x128xi1>
    %577 = arith.cmpf ogt, %568, %539 : vector<4x128xf32>
    %578 = arith.select %577, %568, %539 : vector<4x128xi1>, vector<4x128xf32>
    %c1_i32_194 = arith.constant 1 : i32
    %579 = vector.broadcast %c1_i32_194 : i32 to vector<4x128xi32>
    %580 = arith.select %577, %579, %541 : vector<4x128xi1>, vector<4x128xi32>
    %c1_195 = arith.constant 1 : index
    %c8_196 = arith.constant 8 : index
    %581 = memref.load %arg2[%c1_195, %c8_196] : memref<2x32xf32, #tpu.memory_space<smem>>
    %c1_197 = arith.constant 1 : index
    %c9_198 = arith.constant 9 : index
    %582 = memref.load %arg2[%c1_197, %c9_198] : memref<2x32xf32, #tpu.memory_space<smem>>
    %c1_199 = arith.constant 1 : index
    %c10_200 = arith.constant 10 : index
    %583 = memref.load %arg2[%c1_199, %c10_200] : memref<2x32xf32, #tpu.memory_space<smem>>
    %c1_201 = arith.constant 1 : index
    %c11_202 = arith.constant 11 : index
    %584 = memref.load %arg2[%c1_201, %c11_202] : memref<2x32xf32, #tpu.memory_space<smem>>
    %585 = arith.subf %583, %581 : f32
    %586 = arith.subf %584, %582 : f32
    %587 = arith.mulf %585, %586 : f32
    %588 = vector.broadcast %581 : f32 to vector<4x128xf32>
    %589 = arith.maximumf %1, %588 : vector<4x128xf32>
    %590 = vector.broadcast %582 : f32 to vector<4x128xf32>
    %591 = arith.maximumf %3, %590 : vector<4x128xf32>
    %592 = vector.broadcast %583 : f32 to vector<4x128xf32>
    %593 = arith.minimumf %5, %592 : vector<4x128xf32>
    %594 = vector.broadcast %584 : f32 to vector<4x128xf32>
    %595 = arith.minimumf %7, %594 : vector<4x128xf32>
    %596 = arith.cmpf olt, %589, %593 : vector<4x128xf32>
    %597 = arith.cmpf olt, %591, %595 : vector<4x128xf32>
    %598 = arith.andi %596, %597 : vector<4x128xi1>
    %599 = arith.subf %593, %589 : vector<4x128xf32>
    %600 = arith.subf %595, %591 : vector<4x128xf32>
    %601 = arith.mulf %599, %600 : vector<4x128xf32>
    %602 = vector.broadcast %587 : f32 to vector<4x128xf32>
    %603 = arith.addf %10, %602 : vector<4x128xf32>
    %604 = arith.subf %603, %601 : vector<4x128xf32>
    %605 = arith.divf %601, %604 : vector<4x128xf32>
    %cst_203 = arith.constant 0.000000e+00 : f32
    %606 = vector.broadcast %cst_203 : f32 to vector<4x128xf32>
    %607 = arith.select %598, %605, %606 : vector<4x128xi1>, vector<4x128xf32>
    %608 = vector.shape_cast %607 : vector<4x128xf32> to vector<1x4x128xf32>
    %cst_204 = arith.constant dense<0xFF800000> : vector<1xf32>
    %609 = vector.multi_reduction <maximumf>, %608, %cst_204 [1, 2] : vector<1x4x128xf32> to vector<1xf32>
    %610 = vector.shape_cast %609 : vector<1xf32> to vector<1x1x1xf32>
    %611 = vector.extract %610[0, 0, 0] : f32 from vector<1x1x1xf32>
    %612 = vector.broadcast %611 : f32 to vector<1x1xf32>
    %613 = vector.broadcast %612 : vector<1x1xf32> to vector<4x128xf32>
    %614 = arith.cmpf oeq, %607, %613 : vector<4x128xf32>
    %615 = arith.ori %576, %614 : vector<4x128xi1>
    %616 = arith.cmpf ogt, %607, %578 : vector<4x128xf32>
    %617 = arith.select %616, %607, %578 : vector<4x128xi1>, vector<4x128xf32>
    %c2_i32_205 = arith.constant 2 : i32
    %618 = vector.broadcast %c2_i32_205 : i32 to vector<4x128xi32>
    %619 = arith.select %616, %618, %580 : vector<4x128xi1>, vector<4x128xi32>
    %c1_206 = arith.constant 1 : index
    %c12_207 = arith.constant 12 : index
    %620 = memref.load %arg2[%c1_206, %c12_207] : memref<2x32xf32, #tpu.memory_space<smem>>
    %c1_208 = arith.constant 1 : index
    %c13_209 = arith.constant 13 : index
    %621 = memref.load %arg2[%c1_208, %c13_209] : memref<2x32xf32, #tpu.memory_space<smem>>
    %c1_210 = arith.constant 1 : index
    %c14_211 = arith.constant 14 : index
    %622 = memref.load %arg2[%c1_210, %c14_211] : memref<2x32xf32, #tpu.memory_space<smem>>
    %c1_212 = arith.constant 1 : index
    %c15_213 = arith.constant 15 : index
    %623 = memref.load %arg2[%c1_212, %c15_213] : memref<2x32xf32, #tpu.memory_space<smem>>
    %624 = arith.subf %622, %620 : f32
    %625 = arith.subf %623, %621 : f32
    %626 = arith.mulf %624, %625 : f32
    %627 = vector.broadcast %620 : f32 to vector<4x128xf32>
    %628 = arith.maximumf %1, %627 : vector<4x128xf32>
    %629 = vector.broadcast %621 : f32 to vector<4x128xf32>
    %630 = arith.maximumf %3, %629 : vector<4x128xf32>
    %631 = vector.broadcast %622 : f32 to vector<4x128xf32>
    %632 = arith.minimumf %5, %631 : vector<4x128xf32>
    %633 = vector.broadcast %623 : f32 to vector<4x128xf32>
    %634 = arith.minimumf %7, %633 : vector<4x128xf32>
    %635 = arith.cmpf olt, %628, %632 : vector<4x128xf32>
    %636 = arith.cmpf olt, %630, %634 : vector<4x128xf32>
    %637 = arith.andi %635, %636 : vector<4x128xi1>
    %638 = arith.subf %632, %628 : vector<4x128xf32>
    %639 = arith.subf %634, %630 : vector<4x128xf32>
    %640 = arith.mulf %638, %639 : vector<4x128xf32>
    %641 = vector.broadcast %626 : f32 to vector<4x128xf32>
    %642 = arith.addf %10, %641 : vector<4x128xf32>
    %643 = arith.subf %642, %640 : vector<4x128xf32>
    %644 = arith.divf %640, %643 : vector<4x128xf32>
    %cst_214 = arith.constant 0.000000e+00 : f32
    %645 = vector.broadcast %cst_214 : f32 to vector<4x128xf32>
    %646 = arith.select %637, %644, %645 : vector<4x128xi1>, vector<4x128xf32>
    %647 = vector.shape_cast %646 : vector<4x128xf32> to vector<1x4x128xf32>
    %cst_215 = arith.constant dense<0xFF800000> : vector<1xf32>
    %648 = vector.multi_reduction <maximumf>, %647, %cst_215 [1, 2] : vector<1x4x128xf32> to vector<1xf32>
    %649 = vector.shape_cast %648 : vector<1xf32> to vector<1x1x1xf32>
    %650 = vector.extract %649[0, 0, 0] : f32 from vector<1x1x1xf32>
    %651 = vector.broadcast %650 : f32 to vector<1x1xf32>
    %652 = vector.broadcast %651 : vector<1x1xf32> to vector<4x128xf32>
    %653 = arith.cmpf oeq, %646, %652 : vector<4x128xf32>
    %654 = arith.ori %615, %653 : vector<4x128xi1>
    %655 = arith.cmpf ogt, %646, %617 : vector<4x128xf32>
    %656 = arith.select %655, %646, %617 : vector<4x128xi1>, vector<4x128xf32>
    %c3_i32_216 = arith.constant 3 : i32
    %657 = vector.broadcast %c3_i32_216 : i32 to vector<4x128xi32>
    %658 = arith.select %655, %657, %619 : vector<4x128xi1>, vector<4x128xi32>
    %c1_217 = arith.constant 1 : index
    %c16_218 = arith.constant 16 : index
    %659 = memref.load %arg2[%c1_217, %c16_218] : memref<2x32xf32, #tpu.memory_space<smem>>
    %c1_219 = arith.constant 1 : index
    %c17_220 = arith.constant 17 : index
    %660 = memref.load %arg2[%c1_219, %c17_220] : memref<2x32xf32, #tpu.memory_space<smem>>
    %c1_221 = arith.constant 1 : index
    %c18_222 = arith.constant 18 : index
    %661 = memref.load %arg2[%c1_221, %c18_222] : memref<2x32xf32, #tpu.memory_space<smem>>
    %c1_223 = arith.constant 1 : index
    %c19_224 = arith.constant 19 : index
    %662 = memref.load %arg2[%c1_223, %c19_224] : memref<2x32xf32, #tpu.memory_space<smem>>
    %663 = arith.subf %661, %659 : f32
    %664 = arith.subf %662, %660 : f32
    %665 = arith.mulf %663, %664 : f32
    %666 = vector.broadcast %659 : f32 to vector<4x128xf32>
    %667 = arith.maximumf %1, %666 : vector<4x128xf32>
    %668 = vector.broadcast %660 : f32 to vector<4x128xf32>
    %669 = arith.maximumf %3, %668 : vector<4x128xf32>
    %670 = vector.broadcast %661 : f32 to vector<4x128xf32>
    %671 = arith.minimumf %5, %670 : vector<4x128xf32>
    %672 = vector.broadcast %662 : f32 to vector<4x128xf32>
    %673 = arith.minimumf %7, %672 : vector<4x128xf32>
    %674 = arith.cmpf olt, %667, %671 : vector<4x128xf32>
    %675 = arith.cmpf olt, %669, %673 : vector<4x128xf32>
    %676 = arith.andi %674, %675 : vector<4x128xi1>
    %677 = arith.subf %671, %667 : vector<4x128xf32>
    %678 = arith.subf %673, %669 : vector<4x128xf32>
    %679 = arith.mulf %677, %678 : vector<4x128xf32>
    %680 = vector.broadcast %665 : f32 to vector<4x128xf32>
    %681 = arith.addf %10, %680 : vector<4x128xf32>
    %682 = arith.subf %681, %679 : vector<4x128xf32>
    %683 = arith.divf %679, %682 : vector<4x128xf32>
    %cst_225 = arith.constant 0.000000e+00 : f32
    %684 = vector.broadcast %cst_225 : f32 to vector<4x128xf32>
    %685 = arith.select %676, %683, %684 : vector<4x128xi1>, vector<4x128xf32>
    %686 = vector.shape_cast %685 : vector<4x128xf32> to vector<1x4x128xf32>
    %cst_226 = arith.constant dense<0xFF800000> : vector<1xf32>
    %687 = vector.multi_reduction <maximumf>, %686, %cst_226 [1, 2] : vector<1x4x128xf32> to vector<1xf32>
    %688 = vector.shape_cast %687 : vector<1xf32> to vector<1x1x1xf32>
    %689 = vector.extract %688[0, 0, 0] : f32 from vector<1x1x1xf32>
    %690 = vector.broadcast %689 : f32 to vector<1x1xf32>
    %691 = vector.broadcast %690 : vector<1x1xf32> to vector<4x128xf32>
    %692 = arith.cmpf oeq, %685, %691 : vector<4x128xf32>
    %693 = arith.ori %654, %692 : vector<4x128xi1>
    %694 = arith.cmpf ogt, %685, %656 : vector<4x128xf32>
    %695 = arith.select %694, %685, %656 : vector<4x128xi1>, vector<4x128xf32>
    %c4_i32_227 = arith.constant 4 : i32
    %696 = vector.broadcast %c4_i32_227 : i32 to vector<4x128xi32>
    %697 = arith.select %694, %696, %658 : vector<4x128xi1>, vector<4x128xi32>
    %c1_228 = arith.constant 1 : index
    %c20_229 = arith.constant 20 : index
    %698 = memref.load %arg2[%c1_228, %c20_229] : memref<2x32xf32, #tpu.memory_space<smem>>
    %c1_230 = arith.constant 1 : index
    %c21_231 = arith.constant 21 : index
    %699 = memref.load %arg2[%c1_230, %c21_231] : memref<2x32xf32, #tpu.memory_space<smem>>
    %c1_232 = arith.constant 1 : index
    %c22_233 = arith.constant 22 : index
    %700 = memref.load %arg2[%c1_232, %c22_233] : memref<2x32xf32, #tpu.memory_space<smem>>
    %c1_234 = arith.constant 1 : index
    %c23_235 = arith.constant 23 : index
    %701 = memref.load %arg2[%c1_234, %c23_235] : memref<2x32xf32, #tpu.memory_space<smem>>
    %702 = arith.subf %700, %698 : f32
    %703 = arith.subf %701, %699 : f32
    %704 = arith.mulf %702, %703 : f32
    %705 = vector.broadcast %698 : f32 to vector<4x128xf32>
    %706 = arith.maximumf %1, %705 : vector<4x128xf32>
    %707 = vector.broadcast %699 : f32 to vector<4x128xf32>
    %708 = arith.maximumf %3, %707 : vector<4x128xf32>
    %709 = vector.broadcast %700 : f32 to vector<4x128xf32>
    %710 = arith.minimumf %5, %709 : vector<4x128xf32>
    %711 = vector.broadcast %701 : f32 to vector<4x128xf32>
    %712 = arith.minimumf %7, %711 : vector<4x128xf32>
    %713 = arith.cmpf olt, %706, %710 : vector<4x128xf32>
    %714 = arith.cmpf olt, %708, %712 : vector<4x128xf32>
    %715 = arith.andi %713, %714 : vector<4x128xi1>
    %716 = arith.subf %710, %706 : vector<4x128xf32>
    %717 = arith.subf %712, %708 : vector<4x128xf32>
    %718 = arith.mulf %716, %717 : vector<4x128xf32>
    %719 = vector.broadcast %704 : f32 to vector<4x128xf32>
    %720 = arith.addf %10, %719 : vector<4x128xf32>
    %721 = arith.subf %720, %718 : vector<4x128xf32>
    %722 = arith.divf %718, %721 : vector<4x128xf32>
    %cst_236 = arith.constant 0.000000e+00 : f32
    %723 = vector.broadcast %cst_236 : f32 to vector<4x128xf32>
    %724 = arith.select %715, %722, %723 : vector<4x128xi1>, vector<4x128xf32>
    %725 = vector.shape_cast %724 : vector<4x128xf32> to vector<1x4x128xf32>
    %cst_237 = arith.constant dense<0xFF800000> : vector<1xf32>
    %726 = vector.multi_reduction <maximumf>, %725, %cst_237 [1, 2] : vector<1x4x128xf32> to vector<1xf32>
    %727 = vector.shape_cast %726 : vector<1xf32> to vector<1x1x1xf32>
    %728 = vector.extract %727[0, 0, 0] : f32 from vector<1x1x1xf32>
    %729 = vector.broadcast %728 : f32 to vector<1x1xf32>
    %730 = vector.broadcast %729 : vector<1x1xf32> to vector<4x128xf32>
    %731 = arith.cmpf oeq, %724, %730 : vector<4x128xf32>
    %732 = arith.ori %693, %731 : vector<4x128xi1>
    %733 = arith.cmpf ogt, %724, %695 : vector<4x128xf32>
    %734 = arith.select %733, %724, %695 : vector<4x128xi1>, vector<4x128xf32>
    %c5_i32_238 = arith.constant 5 : i32
    %735 = vector.broadcast %c5_i32_238 : i32 to vector<4x128xi32>
    %736 = arith.select %733, %735, %697 : vector<4x128xi1>, vector<4x128xi32>
    %c1_239 = arith.constant 1 : index
    %c24_240 = arith.constant 24 : index
    %737 = memref.load %arg2[%c1_239, %c24_240] : memref<2x32xf32, #tpu.memory_space<smem>>
    %c1_241 = arith.constant 1 : index
    %c25_242 = arith.constant 25 : index
    %738 = memref.load %arg2[%c1_241, %c25_242] : memref<2x32xf32, #tpu.memory_space<smem>>
    %c1_243 = arith.constant 1 : index
    %c26_244 = arith.constant 26 : index
    %739 = memref.load %arg2[%c1_243, %c26_244] : memref<2x32xf32, #tpu.memory_space<smem>>
    %c1_245 = arith.constant 1 : index
    %c27_246 = arith.constant 27 : index
    %740 = memref.load %arg2[%c1_245, %c27_246] : memref<2x32xf32, #tpu.memory_space<smem>>
    %741 = arith.subf %739, %737 : f32
    %742 = arith.subf %740, %738 : f32
    %743 = arith.mulf %741, %742 : f32
    %744 = vector.broadcast %737 : f32 to vector<4x128xf32>
    %745 = arith.maximumf %1, %744 : vector<4x128xf32>
    %746 = vector.broadcast %738 : f32 to vector<4x128xf32>
    %747 = arith.maximumf %3, %746 : vector<4x128xf32>
    %748 = vector.broadcast %739 : f32 to vector<4x128xf32>
    %749 = arith.minimumf %5, %748 : vector<4x128xf32>
    %750 = vector.broadcast %740 : f32 to vector<4x128xf32>
    %751 = arith.minimumf %7, %750 : vector<4x128xf32>
    %752 = arith.cmpf olt, %745, %749 : vector<4x128xf32>
    %753 = arith.cmpf olt, %747, %751 : vector<4x128xf32>
    %754 = arith.andi %752, %753 : vector<4x128xi1>
    %755 = arith.subf %749, %745 : vector<4x128xf32>
    %756 = arith.subf %751, %747 : vector<4x128xf32>
    %757 = arith.mulf %755, %756 : vector<4x128xf32>
    %758 = vector.broadcast %743 : f32 to vector<4x128xf32>
    %759 = arith.addf %10, %758 : vector<4x128xf32>
    %760 = arith.subf %759, %757 : vector<4x128xf32>
    %761 = arith.divf %757, %760 : vector<4x128xf32>
    %cst_247 = arith.constant 0.000000e+00 : f32
    %762 = vector.broadcast %cst_247 : f32 to vector<4x128xf32>
    %763 = arith.select %754, %761, %762 : vector<4x128xi1>, vector<4x128xf32>
    %764 = vector.shape_cast %763 : vector<4x128xf32> to vector<1x4x128xf32>
    %cst_248 = arith.constant dense<0xFF800000> : vector<1xf32>
    %765 = vector.multi_reduction <maximumf>, %764, %cst_248 [1, 2] : vector<1x4x128xf32> to vector<1xf32>
    %766 = vector.shape_cast %765 : vector<1xf32> to vector<1x1x1xf32>
    %767 = vector.extract %766[0, 0, 0] : f32 from vector<1x1x1xf32>
    %768 = vector.broadcast %767 : f32 to vector<1x1xf32>
    %769 = vector.broadcast %768 : vector<1x1xf32> to vector<4x128xf32>
    %770 = arith.cmpf oeq, %763, %769 : vector<4x128xf32>
    %771 = arith.ori %732, %770 : vector<4x128xi1>
    %772 = arith.cmpf ogt, %763, %734 : vector<4x128xf32>
    %773 = arith.select %772, %763, %734 : vector<4x128xi1>, vector<4x128xf32>
    %c6_i32_249 = arith.constant 6 : i32
    %774 = vector.broadcast %c6_i32_249 : i32 to vector<4x128xi32>
    %775 = arith.select %772, %774, %736 : vector<4x128xi1>, vector<4x128xi32>
    %c1_250 = arith.constant 1 : index
    %c28_251 = arith.constant 28 : index
    %776 = memref.load %arg2[%c1_250, %c28_251] : memref<2x32xf32, #tpu.memory_space<smem>>
    %c1_252 = arith.constant 1 : index
    %c29_253 = arith.constant 29 : index
    %777 = memref.load %arg2[%c1_252, %c29_253] : memref<2x32xf32, #tpu.memory_space<smem>>
    %c1_254 = arith.constant 1 : index
    %c30_255 = arith.constant 30 : index
    %778 = memref.load %arg2[%c1_254, %c30_255] : memref<2x32xf32, #tpu.memory_space<smem>>
    %c1_256 = arith.constant 1 : index
    %c31_257 = arith.constant 31 : index
    %779 = memref.load %arg2[%c1_256, %c31_257] : memref<2x32xf32, #tpu.memory_space<smem>>
    %780 = arith.subf %778, %776 : f32
    %781 = arith.subf %779, %777 : f32
    %782 = arith.mulf %780, %781 : f32
    %783 = vector.broadcast %776 : f32 to vector<4x128xf32>
    %784 = arith.maximumf %1, %783 : vector<4x128xf32>
    %785 = vector.broadcast %777 : f32 to vector<4x128xf32>
    %786 = arith.maximumf %3, %785 : vector<4x128xf32>
    %787 = vector.broadcast %778 : f32 to vector<4x128xf32>
    %788 = arith.minimumf %5, %787 : vector<4x128xf32>
    %789 = vector.broadcast %779 : f32 to vector<4x128xf32>
    %790 = arith.minimumf %7, %789 : vector<4x128xf32>
    %791 = arith.cmpf olt, %784, %788 : vector<4x128xf32>
    %792 = arith.cmpf olt, %786, %790 : vector<4x128xf32>
    %793 = arith.andi %791, %792 : vector<4x128xi1>
    %794 = arith.subf %788, %784 : vector<4x128xf32>
    %795 = arith.subf %790, %786 : vector<4x128xf32>
    %796 = arith.mulf %794, %795 : vector<4x128xf32>
    %797 = vector.broadcast %782 : f32 to vector<4x128xf32>
    %798 = arith.addf %10, %797 : vector<4x128xf32>
    %799 = arith.subf %798, %796 : vector<4x128xf32>
    %800 = arith.divf %796, %799 : vector<4x128xf32>
    %cst_258 = arith.constant 0.000000e+00 : f32
    %801 = vector.broadcast %cst_258 : f32 to vector<4x128xf32>
    %802 = arith.select %793, %800, %801 : vector<4x128xi1>, vector<4x128xf32>
    %803 = vector.shape_cast %802 : vector<4x128xf32> to vector<1x4x128xf32>
    %cst_259 = arith.constant dense<0xFF800000> : vector<1xf32>
    %804 = vector.multi_reduction <maximumf>, %803, %cst_259 [1, 2] : vector<1x4x128xf32> to vector<1xf32>
    %805 = vector.shape_cast %804 : vector<1xf32> to vector<1x1x1xf32>
    %806 = vector.extract %805[0, 0, 0] : f32 from vector<1x1x1xf32>
    %807 = vector.broadcast %806 : f32 to vector<1x1xf32>
    %808 = vector.broadcast %807 : vector<1x1xf32> to vector<4x128xf32>
    %809 = arith.cmpf oeq, %802, %808 : vector<4x128xf32>
    %810 = arith.ori %771, %809 : vector<4x128xi1>
    %811 = arith.cmpf ogt, %802, %773 : vector<4x128xf32>
    %812 = arith.select %811, %802, %773 : vector<4x128xi1>, vector<4x128xf32>
    %c7_i32_260 = arith.constant 7 : i32
    %813 = vector.broadcast %c7_i32_260 : i32 to vector<4x128xi32>
    %814 = arith.select %811, %813, %775 : vector<4x128xi1>, vector<4x128xi32>
    %c-1_i32_261 = arith.constant -1 : i32
    %815 = vector.broadcast %c-1_i32_261 : i32 to vector<4x128xi32>
    %cst_262 = arith.constant 3.000000e-01 : f32
    %816 = vector.broadcast %cst_262 : f32 to vector<4x128xf32>
    %817 = arith.cmpf olt, %812, %816 : vector<4x128xf32>
    %c0_i32_263 = arith.constant 0 : i32
    %818 = vector.broadcast %c0_i32_263 : i32 to vector<4x128xi32>
    %819 = arith.select %817, %818, %815 : vector<4x128xi1>, vector<4x128xi32>
    %cst_264 = arith.constant 0.699999988 : f32
    %820 = vector.broadcast %cst_264 : f32 to vector<4x128xf32>
    %821 = arith.cmpf oge, %812, %820 : vector<4x128xf32>
    %c1_i32_265 = arith.constant 1 : i32
    %822 = vector.broadcast %c1_i32_265 : i32 to vector<4x128xi32>
    %823 = arith.select %821, %822, %819 : vector<4x128xi1>, vector<4x128xi32>
    %c1_i32_266 = arith.constant 1 : i32
    %824 = vector.broadcast %c1_i32_266 : i32 to vector<4x128xi32>
    %825 = arith.select %810, %824, %823 : vector<4x128xi1>, vector<4x128xi32>
    %c1_267 = arith.constant 1 : index
    %c0_268 = arith.constant 0 : index
    %c0_269 = arith.constant 0 : index
    %c0_270 = arith.constant 0 : index
    %826 = vector.load %arg4[%c1_267, %c0_268, %c0_269, %c0_270] : memref<2x1x4x128xi32, #tpu.memory_space<vmem>>, vector<1x1x4x128xi32>
    %827 = vector.shape_cast %826 : vector<1x1x4x128xi32> to vector<4x128xi32>
    %828 = vector.shape_cast %825 : vector<4x128xi32> to vector<1x1x4x128xi32>
    tpu.vector_store %arg4[%c1_267, %c0_268, %c0_269, %c0_270], %828 {strides = array<i32>} : memref<2x1x4x128xi32, #tpu.memory_space<vmem>>, vector<1x1x4x128xi32>,
    %cst_271 = arith.constant 0.000000e+00 : f32
    %829 = vector.broadcast %cst_271 : f32 to vector<4x128xf32>
    %cst_272 = arith.constant 0.000000e+00 : f32
    %830 = vector.broadcast %cst_272 : f32 to vector<4x128xf32>
    %cst_273 = arith.constant 0.000000e+00 : f32
    %831 = vector.broadcast %cst_273 : f32 to vector<4x128xf32>
    %cst_274 = arith.constant 0.000000e+00 : f32
    %832 = vector.broadcast %cst_274 : f32 to vector<4x128xf32>
    %c0_i32_275 = arith.constant 0 : i32
    %833 = vector.broadcast %c0_i32_275 : i32 to vector<4x128xi32>
    %834 = arith.cmpi eq, %814, %833 : vector<4x128xi32>
    %c0_276 = arith.constant 0 : index
    %c0_277 = arith.constant 0 : index
    %835 = memref.load %arg3[%c0_276, %c0_277] : memref<8x4xf32, #tpu.memory_space<smem>>
    %836 = vector.broadcast %835 : f32 to vector<4x128xf32>
    %837 = arith.select %834, %836, %829 : vector<4x128xi1>, vector<4x128xf32>
    %c0_278 = arith.constant 0 : index
    %c1_279 = arith.constant 1 : index
    %838 = memref.load %arg3[%c0_278, %c1_279] : memref<8x4xf32, #tpu.memory_space<smem>>
    %839 = vector.broadcast %838 : f32 to vector<4x128xf32>
    %840 = arith.select %834, %839, %830 : vector<4x128xi1>, vector<4x128xf32>
    %c0_280 = arith.constant 0 : index
    %c2_281 = arith.constant 2 : index
    %841 = memref.load %arg3[%c0_280, %c2_281] : memref<8x4xf32, #tpu.memory_space<smem>>
    %842 = vector.broadcast %841 : f32 to vector<4x128xf32>
    %843 = arith.select %834, %842, %831 : vector<4x128xi1>, vector<4x128xf32>
    %c0_282 = arith.constant 0 : index
    %c3_283 = arith.constant 3 : index
    %844 = memref.load %arg3[%c0_282, %c3_283] : memref<8x4xf32, #tpu.memory_space<smem>>
    %845 = vector.broadcast %844 : f32 to vector<4x128xf32>
    %846 = arith.select %834, %845, %832 : vector<4x128xi1>, vector<4x128xf32>
    %c1_i32_284 = arith.constant 1 : i32
    %847 = vector.broadcast %c1_i32_284 : i32 to vector<4x128xi32>
    %848 = arith.cmpi eq, %814, %847 : vector<4x128xi32>
    %c1_285 = arith.constant 1 : index
    %c0_286 = arith.constant 0 : index
    %849 = memref.load %arg3[%c1_285, %c0_286] : memref<8x4xf32, #tpu.memory_space<smem>>
    %850 = vector.broadcast %849 : f32 to vector<4x128xf32>
    %851 = arith.select %848, %850, %837 : vector<4x128xi1>, vector<4x128xf32>
    %c1_287 = arith.constant 1 : index
    %c1_288 = arith.constant 1 : index
    %852 = memref.load %arg3[%c1_287, %c1_288] : memref<8x4xf32, #tpu.memory_space<smem>>
    %853 = vector.broadcast %852 : f32 to vector<4x128xf32>
    %854 = arith.select %848, %853, %840 : vector<4x128xi1>, vector<4x128xf32>
    %c1_289 = arith.constant 1 : index
    %c2_290 = arith.constant 2 : index
    %855 = memref.load %arg3[%c1_289, %c2_290] : memref<8x4xf32, #tpu.memory_space<smem>>
    %856 = vector.broadcast %855 : f32 to vector<4x128xf32>
    %857 = arith.select %848, %856, %843 : vector<4x128xi1>, vector<4x128xf32>
    %c1_291 = arith.constant 1 : index
    %c3_292 = arith.constant 3 : index
    %858 = memref.load %arg3[%c1_291, %c3_292] : memref<8x4xf32, #tpu.memory_space<smem>>
    %859 = vector.broadcast %858 : f32 to vector<4x128xf32>
    %860 = arith.select %848, %859, %846 : vector<4x128xi1>, vector<4x128xf32>
    %c2_i32_293 = arith.constant 2 : i32
    %861 = vector.broadcast %c2_i32_293 : i32 to vector<4x128xi32>
    %862 = arith.cmpi eq, %814, %861 : vector<4x128xi32>
    %c2_294 = arith.constant 2 : index
    %c0_295 = arith.constant 0 : index
    %863 = memref.load %arg3[%c2_294, %c0_295] : memref<8x4xf32, #tpu.memory_space<smem>>
    %864 = vector.broadcast %863 : f32 to vector<4x128xf32>
    %865 = arith.select %862, %864, %851 : vector<4x128xi1>, vector<4x128xf32>
    %c2_296 = arith.constant 2 : index
    %c1_297 = arith.constant 1 : index
    %866 = memref.load %arg3[%c2_296, %c1_297] : memref<8x4xf32, #tpu.memory_space<smem>>
    %867 = vector.broadcast %866 : f32 to vector<4x128xf32>
    %868 = arith.select %862, %867, %854 : vector<4x128xi1>, vector<4x128xf32>
    %c2_298 = arith.constant 2 : index
    %c2_299 = arith.constant 2 : index
    %869 = memref.load %arg3[%c2_298, %c2_299] : memref<8x4xf32, #tpu.memory_space<smem>>
    %870 = vector.broadcast %869 : f32 to vector<4x128xf32>
    %871 = arith.select %862, %870, %857 : vector<4x128xi1>, vector<4x128xf32>
    %c2_300 = arith.constant 2 : index
    %c3_301 = arith.constant 3 : index
    %872 = memref.load %arg3[%c2_300, %c3_301] : memref<8x4xf32, #tpu.memory_space<smem>>
    %873 = vector.broadcast %872 : f32 to vector<4x128xf32>
    %874 = arith.select %862, %873, %860 : vector<4x128xi1>, vector<4x128xf32>
    %c3_i32_302 = arith.constant 3 : i32
    %875 = vector.broadcast %c3_i32_302 : i32 to vector<4x128xi32>
    %876 = arith.cmpi eq, %814, %875 : vector<4x128xi32>
    %c3_303 = arith.constant 3 : index
    %c0_304 = arith.constant 0 : index
    %877 = memref.load %arg3[%c3_303, %c0_304] : memref<8x4xf32, #tpu.memory_space<smem>>
    %878 = vector.broadcast %877 : f32 to vector<4x128xf32>
    %879 = arith.select %876, %878, %865 : vector<4x128xi1>, vector<4x128xf32>
    %c3_305 = arith.constant 3 : index
    %c1_306 = arith.constant 1 : index
    %880 = memref.load %arg3[%c3_305, %c1_306] : memref<8x4xf32, #tpu.memory_space<smem>>
    %881 = vector.broadcast %880 : f32 to vector<4x128xf32>
    %882 = arith.select %876, %881, %868 : vector<4x128xi1>, vector<4x128xf32>
    %c3_307 = arith.constant 3 : index
    %c2_308 = arith.constant 2 : index
    %883 = memref.load %arg3[%c3_307, %c2_308] : memref<8x4xf32, #tpu.memory_space<smem>>
    %884 = vector.broadcast %883 : f32 to vector<4x128xf32>
    %885 = arith.select %876, %884, %871 : vector<4x128xi1>, vector<4x128xf32>
    %c3_309 = arith.constant 3 : index
    %c3_310 = arith.constant 3 : index
    %886 = memref.load %arg3[%c3_309, %c3_310] : memref<8x4xf32, #tpu.memory_space<smem>>
    %887 = vector.broadcast %886 : f32 to vector<4x128xf32>
    %888 = arith.select %876, %887, %874 : vector<4x128xi1>, vector<4x128xf32>
    %c4_i32_311 = arith.constant 4 : i32
    %889 = vector.broadcast %c4_i32_311 : i32 to vector<4x128xi32>
    %890 = arith.cmpi eq, %814, %889 : vector<4x128xi32>
    %c4_312 = arith.constant 4 : index
    %c0_313 = arith.constant 0 : index
    %891 = memref.load %arg3[%c4_312, %c0_313] : memref<8x4xf32, #tpu.memory_space<smem>>
    %892 = vector.broadcast %891 : f32 to vector<4x128xf32>
    %893 = arith.select %890, %892, %879 : vector<4x128xi1>, vector<4x128xf32>
    %c4_314 = arith.constant 4 : index
    %c1_315 = arith.constant 1 : index
    %894 = memref.load %arg3[%c4_314, %c1_315] : memref<8x4xf32, #tpu.memory_space<smem>>
    %895 = vector.broadcast %894 : f32 to vector<4x128xf32>
    %896 = arith.select %890, %895, %882 : vector<4x128xi1>, vector<4x128xf32>
    %c4_316 = arith.constant 4 : index
    %c2_317 = arith.constant 2 : index
    %897 = memref.load %arg3[%c4_316, %c2_317] : memref<8x4xf32, #tpu.memory_space<smem>>
    %898 = vector.broadcast %897 : f32 to vector<4x128xf32>
    %899 = arith.select %890, %898, %885 : vector<4x128xi1>, vector<4x128xf32>
    %c4_318 = arith.constant 4 : index
    %c3_319 = arith.constant 3 : index
    %900 = memref.load %arg3[%c4_318, %c3_319] : memref<8x4xf32, #tpu.memory_space<smem>>
    %901 = vector.broadcast %900 : f32 to vector<4x128xf32>
    %902 = arith.select %890, %901, %888 : vector<4x128xi1>, vector<4x128xf32>
    %c5_i32_320 = arith.constant 5 : i32
    %903 = vector.broadcast %c5_i32_320 : i32 to vector<4x128xi32>
    %904 = arith.cmpi eq, %814, %903 : vector<4x128xi32>
    %c5_321 = arith.constant 5 : index
    %c0_322 = arith.constant 0 : index
    %905 = memref.load %arg3[%c5_321, %c0_322] : memref<8x4xf32, #tpu.memory_space<smem>>
    %906 = vector.broadcast %905 : f32 to vector<4x128xf32>
    %907 = arith.select %904, %906, %893 : vector<4x128xi1>, vector<4x128xf32>
    %c5_323 = arith.constant 5 : index
    %c1_324 = arith.constant 1 : index
    %908 = memref.load %arg3[%c5_323, %c1_324] : memref<8x4xf32, #tpu.memory_space<smem>>
    %909 = vector.broadcast %908 : f32 to vector<4x128xf32>
    %910 = arith.select %904, %909, %896 : vector<4x128xi1>, vector<4x128xf32>
    %c5_325 = arith.constant 5 : index
    %c2_326 = arith.constant 2 : index
    %911 = memref.load %arg3[%c5_325, %c2_326] : memref<8x4xf32, #tpu.memory_space<smem>>
    %912 = vector.broadcast %911 : f32 to vector<4x128xf32>
    %913 = arith.select %904, %912, %899 : vector<4x128xi1>, vector<4x128xf32>
    %c5_327 = arith.constant 5 : index
    %c3_328 = arith.constant 3 : index
    %914 = memref.load %arg3[%c5_327, %c3_328] : memref<8x4xf32, #tpu.memory_space<smem>>
    %915 = vector.broadcast %914 : f32 to vector<4x128xf32>
    %916 = arith.select %904, %915, %902 : vector<4x128xi1>, vector<4x128xf32>
    %c6_i32_329 = arith.constant 6 : i32
    %917 = vector.broadcast %c6_i32_329 : i32 to vector<4x128xi32>
    %918 = arith.cmpi eq, %814, %917 : vector<4x128xi32>
    %c6_330 = arith.constant 6 : index
    %c0_331 = arith.constant 0 : index
    %919 = memref.load %arg3[%c6_330, %c0_331] : memref<8x4xf32, #tpu.memory_space<smem>>
    %920 = vector.broadcast %919 : f32 to vector<4x128xf32>
    %921 = arith.select %918, %920, %907 : vector<4x128xi1>, vector<4x128xf32>
    %c6_332 = arith.constant 6 : index
    %c1_333 = arith.constant 1 : index
    %922 = memref.load %arg3[%c6_332, %c1_333] : memref<8x4xf32, #tpu.memory_space<smem>>
    %923 = vector.broadcast %922 : f32 to vector<4x128xf32>
    %924 = arith.select %918, %923, %910 : vector<4x128xi1>, vector<4x128xf32>
    %c6_334 = arith.constant 6 : index
    %c2_335 = arith.constant 2 : index
    %925 = memref.load %arg3[%c6_334, %c2_335] : memref<8x4xf32, #tpu.memory_space<smem>>
    %926 = vector.broadcast %925 : f32 to vector<4x128xf32>
    %927 = arith.select %918, %926, %913 : vector<4x128xi1>, vector<4x128xf32>
    %c6_336 = arith.constant 6 : index
    %c3_337 = arith.constant 3 : index
    %928 = memref.load %arg3[%c6_336, %c3_337] : memref<8x4xf32, #tpu.memory_space<smem>>
    %929 = vector.broadcast %928 : f32 to vector<4x128xf32>
    %930 = arith.select %918, %929, %916 : vector<4x128xi1>, vector<4x128xf32>
    %c7_i32_338 = arith.constant 7 : i32
    %931 = vector.broadcast %c7_i32_338 : i32 to vector<4x128xi32>
    %932 = arith.cmpi eq, %814, %931 : vector<4x128xi32>
    %c7_339 = arith.constant 7 : index
    %c0_340 = arith.constant 0 : index
    %933 = memref.load %arg3[%c7_339, %c0_340] : memref<8x4xf32, #tpu.memory_space<smem>>
    %934 = vector.broadcast %933 : f32 to vector<4x128xf32>
    %935 = arith.select %932, %934, %921 : vector<4x128xi1>, vector<4x128xf32>
    %c7_341 = arith.constant 7 : index
    %c1_342 = arith.constant 1 : index
    %936 = memref.load %arg3[%c7_341, %c1_342] : memref<8x4xf32, #tpu.memory_space<smem>>
    %937 = vector.broadcast %936 : f32 to vector<4x128xf32>
    %938 = arith.select %932, %937, %924 : vector<4x128xi1>, vector<4x128xf32>
    %c7_343 = arith.constant 7 : index
    %c2_344 = arith.constant 2 : index
    %939 = memref.load %arg3[%c7_343, %c2_344] : memref<8x4xf32, #tpu.memory_space<smem>>
    %940 = vector.broadcast %939 : f32 to vector<4x128xf32>
    %941 = arith.select %932, %940, %927 : vector<4x128xi1>, vector<4x128xf32>
    %c7_345 = arith.constant 7 : index
    %c3_346 = arith.constant 3 : index
    %942 = memref.load %arg3[%c7_345, %c3_346] : memref<8x4xf32, #tpu.memory_space<smem>>
    %943 = vector.broadcast %942 : f32 to vector<4x128xf32>
    %944 = arith.select %932, %943, %930 : vector<4x128xi1>, vector<4x128xf32>
    %945 = arith.subf %944, %938 : vector<4x128xf32>
    %946 = arith.subf %941, %935 : vector<4x128xf32>
    %cst_347 = arith.constant 5.000000e-01 : f32
    %947 = vector.broadcast %cst_347 : f32 to vector<4x128xf32>
    %948 = arith.mulf %947, %946 : vector<4x128xf32>
    %949 = arith.addf %935, %948 : vector<4x128xf32>
    %cst_348 = arith.constant 5.000000e-01 : f32
    %950 = vector.broadcast %cst_348 : f32 to vector<4x128xf32>
    %951 = arith.mulf %950, %945 : vector<4x128xf32>
    %952 = arith.addf %938, %951 : vector<4x128xf32>
    %953 = arith.subf %949, %15 : vector<4x128xf32>
    %954 = arith.mulf %953, %24 : vector<4x128xf32>
    %c1_349 = arith.constant 1 : index
    %c0_350 = arith.constant 0 : index
    %c0_351 = arith.constant 0 : index
    %c0_352 = arith.constant 0 : index
    %955 = vector.load %arg5[%c1_349, %c0_350, %c0_351, %c0_352] : memref<2x4x4x128xf32, #tpu.memory_space<vmem>>, vector<1x1x4x128xf32>
    %956 = vector.shape_cast %955 : vector<1x1x4x128xf32> to vector<4x128xf32>
    %957 = vector.shape_cast %954 : vector<4x128xf32> to vector<1x1x4x128xf32>
    tpu.vector_store %arg5[%c1_349, %c0_350, %c0_351, %c0_352], %957 {strides = array<i32>} : memref<2x4x4x128xf32, #tpu.memory_space<vmem>>, vector<1x1x4x128xf32>,
    %958 = arith.subf %952, %18 : vector<4x128xf32>
    %959 = arith.mulf %958, %26 : vector<4x128xf32>
    %c1_353 = arith.constant 1 : index
    %c1_354 = arith.constant 1 : index
    %c0_355 = arith.constant 0 : index
    %c0_356 = arith.constant 0 : index
    %960 = vector.load %arg5[%c1_353, %c1_354, %c0_355, %c0_356] : memref<2x4x4x128xf32, #tpu.memory_space<vmem>>, vector<1x1x4x128xf32>
    %961 = vector.shape_cast %960 : vector<1x1x4x128xf32> to vector<4x128xf32>
    %962 = vector.shape_cast %959 : vector<4x128xf32> to vector<1x1x4x128xf32>
    tpu.vector_store %arg5[%c1_353, %c1_354, %c0_355, %c0_356], %962 {strides = array<i32>} : memref<2x4x4x128xf32, #tpu.memory_space<vmem>>, vector<1x1x4x128xf32>,
    %963 = arith.mulf %946, %24 : vector<4x128xf32>
    %964 = math.log %963 : vector<4x128xf32>
    %c1_357 = arith.constant 1 : index
    %c2_358 = arith.constant 2 : index
    %c0_359 = arith.constant 0 : index
    %c0_360 = arith.constant 0 : index
    %965 = vector.load %arg5[%c1_357, %c2_358, %c0_359, %c0_360] : memref<2x4x4x128xf32, #tpu.memory_space<vmem>>, vector<1x1x4x128xf32>
    %966 = vector.shape_cast %965 : vector<1x1x4x128xf32> to vector<4x128xf32>
    %967 = vector.shape_cast %964 : vector<4x128xf32> to vector<1x1x4x128xf32>
    tpu.vector_store %arg5[%c1_357, %c2_358, %c0_359, %c0_360], %967 {strides = array<i32>} : memref<2x4x4x128xf32, #tpu.memory_space<vmem>>, vector<1x1x4x128xf32>,
    %968 = arith.mulf %945, %26 : vector<4x128xf32>
    %969 = math.log %968 : vector<4x128xf32>
    %c1_361 = arith.constant 1 : index
    %c3_362 = arith.constant 3 : index
    %c0_363 = arith.constant 0 : index
    %c0_364 = arith.constant 0 : index
    %970 = vector.load %arg5[%c1_361, %c3_362, %c0_363, %c0_364] : memref<2x4x4x128xf32, #tpu.memory_space<vmem>>, vector<1x1x4x128xf32>
    %971 = vector.shape_cast %970 : vector<1x1x4x128xf32> to vector<4x128xf32>
    %972 = vector.shape_cast %969 : vector<4x128xf32> to vector<1x1x4x128xf32>
    tpu.vector_store %arg5[%c1_361, %c3_362, %c0_363, %c0_364], %972 {strides = array<i32>} : memref<2x4x4x128xf32, #tpu.memory_space<vmem>>, vector<1x1x4x128xf32>,
    return
  }
  func.func @transform_0(%arg0: i32) -> (i32, i32, i32) {
    %c0_i32 = arith.constant 0 : i32
    %c0_i32_0 = arith.constant 0 : i32
    %c0_i32_1 = arith.constant 0 : i32
    %c0_i32_2 = arith.constant 0 : i32
    return %c0_i32, %c0_i32_0, %c0_i32_1 : i32, i32, i32
  }
  func.func @transform_1(%arg0: i32) -> (i32, i32) {
    %c0_i32 = arith.constant 0 : i32
    %c0_i32_0 = arith.constant 0 : i32
    %c0_i32_1 = arith.constant 0 : i32
    return %c0_i32, %c0_i32_0 : i32, i32
  }
  func.func @transform_2(%arg0: i32) -> (i32, i32) {
    %c0_i32 = arith.constant 0 : i32
    %c0_i32_0 = arith.constant 0 : i32
    %c0_i32_1 = arith.constant 0 : i32
    return %c0_i32, %c0_i32_0 : i32, i32
  }
  func.func @transform_3(%arg0: i32) -> (i32, i32, i32, i32) {
    %c0_i32 = arith.constant 0 : i32
    %c0_i32_0 = arith.constant 0 : i32
    %c0_i32_1 = arith.constant 0 : i32
    %c0_i32_2 = arith.constant 0 : i32
    %c0_i32_3 = arith.constant 0 : i32
    return %c0_i32, %c0_i32_0, %c0_i32_1, %c0_i32_2 : i32, i32, i32, i32
  }
  func.func @transform_4(%arg0: i32) -> (i32, i32, i32, i32) {
    %c0_i32 = arith.constant 0 : i32
    %c0_i32_0 = arith.constant 0 : i32
    %c0_i32_1 = arith.constant 0 : i32
    %c0_i32_2 = arith.constant 0 : i32
    %c0_i32_3 = arith.constant 0 : i32
    return %c0_i32, %c0_i32_0, %c0_i32_1, %c0_i32_2 : i32, i32, i32, i32
  }
}

</mosaic_0001>

<bundles_post_ra>
// kernel: tpu_custom_call.1
= control target key start
LH: loop header
LB: loop body
LE: loop exit
PB: predicated region body
PF: predicated region fallthrough
CT: control target
= control target key end

     0   :  { %s3336_s0 = inlined_call_operand.hbm [shape: f32[4,4,128], index: 0, kind: input, shape index: {}]   ;;  %s3337_s1 = inlined_call_operand.vmem [shape: f32[2,32], index: 1, kind: input, shape index: {}]   ;;  %s3338_s2 = inlined_call_operand.vmem [shape: f32[8,4], index: 2, kind: input, shape index: {}]   ;;  %s3339_s3 = inlined_call_operand.hbm [shape: s32[2,1,4,128], index: 3, kind: output, shape index: {0}]   ;;  %s3340_s4 = inlined_call_operand.hbm [shape: f32[2,4,4,128], index: 4, kind: output, shape index: {1}]  }
   0x1   :  { %3345 = sst [smem:[#allocation17_spill]] %s3339_s3 }
   0x2   :  { %3346 = sst [smem:[#allocation18_spill]] %s3340_s4 }
   0x3   :  { %10 = vsyncpa [#allocation3], 0 }
   0x4   :  { %11 = vsyncpa [#allocation5], 0 }
   0x5   :  { %12 = vsyncpa [#allocation8], 0 }
   0x6   :  { %13 = vsyncpa [#allocation4], 0 }
   0x7   :  { %14 = vsyncpa [#allocation11], 0  ;;  %s19_s17 = sshll.u32 %s3336_s0, 4  ;;  %s1627_s18 = smov [#allocation2]   ;;  %s20_s17 = int_to_ptr.hbm [resolvable:$true] %s19_s17 }
   0x8   :  { %s21_s19 = sshll.u32 %s1627_s18, 4  ;;  %s33_s22 = sshll.u32 %s3337_s1, 4  ;;  %s22_s19 = int_to_ptr.vmem [resolvable:$true] %s21_s19  ;;  %s34_s22 = int_to_ptr.vmem [resolvable:$true] %s33_s22 }
   0x9   :  { %s3341_s23 = smov 64   ;;  %s3343_s24 = smov 4  }
   0xa   :  { %27 = dma.hbm_to_vmem [thread:$0]  %s20_s17, 256, %s22_s19, [#allocation3], %s3341_s23, %s3341_s23, %s3343_s24  }
   0xb   :  { %s1630_s25 = smov [#allocation6]   ;;  %s42_s0 = sshll.u32 %s3338_s2, 4  ;;  %s43_s0 = int_to_ptr.vmem [resolvable:$true] %s42_s0 }
   0xc   :  { %36 = dma.vmem_to_smem %s34_s22, 32, %s1630_s25, [#allocation5]  }
   0xd   :  { %s1631_s28 = smov [#allocation7]  }
   0xe   :  { %45 = dma.vmem_to_smem %s43_s0, 128, %s1631_s28, [#allocation8]  }
   0xf   :  { %1617 = dma.done.wait [#allocation3], 256  }
  0x10   :  { %1618 = vsyncadd [#allocation3], 4294967040 }
  0x11   :  { %1619 = dma.done.wait [#allocation5], 32  }
  0x12   :  { %1620 = vsyncadd [#allocation5], 4294967264 }
  0x13   :  { %1621 = dma.done.wait [#allocation8], 128  }
  0x14   :  { %1622 = vsyncadd [#allocation8], 4294967168 }
  0x15   :  { %58 = sfence }
  0x16   :  { %s1312_s1 = sld [smem:[#allocation6 + $0x8]]  ;;  %v1673_v0 = vld [vmem:[#allocation2] sm:$0xf]  ;;  %v1675_v1 = vld [vmem:[#allocation2 + $0x4] sm:$0xf]  ;;  %vm145_vm3 = vcmask 1043456  }
  0x17   :  { %s1313_s29 = sld [smem:[#allocation6 + $0x9]]  ;;  %v1677_v2 = vld [vmem:[#allocation2 + $0x8] sm:$0xf]  ;;  %v1679_v3 = vld [vmem:[#allocation2 + $0xc] sm:$0xf] }
  0x18   :  { %s1314_s30 = sld [smem:[#allocation6 + $0xa]]  ;;  %v1687_v4 = vsub.f32 %v1677_v2, %v1673_v0  ;;  %v1691_v5 = vsub.f32 %v1679_v3, %v1675_v1 }
  0x19   :  { %s1315_s2 = sld [smem:[#allocation6 + $0xb]] }
  0x1a   :  { %s1681_s5 = sld [smem:[#allocation6]]  ;;  %v1708_v13 = vmul.f32 %v1691_v5, %v1687_v4 }
  0x1b   :  { %s1683_s6 = sld [smem:[#allocation6 + $0x1]] }
  0x1c   :  { %v223_v6 = vstv %s1312_s1  ;;  %s1693_s7 = sld [smem:[#allocation6 + $0x2]] }
  0x1d   :  { %v1696_v7 = vmax.f32 %v1673_v0, %v223_v6  ;;  %v225_v8 = vstv %s1313_s29  ;;  %s1698_s8 = sld [smem:[#allocation6 + $0x3]] }
  0x1e   :  { %s220_s9 = ssub.f32 %s1314_s30, %s1312_s1  ;;  %v1701_v9 = vmax.f32 %v1675_v1, %v225_v8  ;;  %v227_v10 = vstv %s1314_s30 }
  0x1f   :  { %s221_s10 = ssub.f32 %s1315_s2, %s1313_s29  ;;  %v1704_v11 = vmin.f32 %v1677_v2, %v227_v10  ;;  %v229_v12 = vstv %s1315_s2 }
  0x20   :  { %v1711_v14 = vmin.f32 %v1679_v3, %v229_v12  ;;  %v112_v15 = vstv %s1681_s5  ;;  %s1714_s11 = sld [smem:[#allocation6 + $0x10]] }
  0x21   :  { %s222_s12 = smul.f32 %s221_s10, %s220_s9  ;;  %v234_v16 = vsub.f32 %v1704_v11, %v1696_v7  ;;  %v1719_v17 = vmax.f32 %v1673_v0, %v112_v15  ;;  %v114_v18 = vstv %s1683_s6  ;;  %s1722_s13 = sld [smem:[#allocation6 + $0x11]]  ;;  %vm231_vm0 = vcmp.lt.f32.partialorder %v1696_v7, %v1704_v11 }
  0x22   :  { %v235_v19 = vsub.f32 %v1711_v14, %v1701_v9  ;;  %s109_s14 = ssub.f32 %s1693_s7, %s1681_s5  ;;  %v1729_v20 = vmax.f32 %v1675_v1, %v114_v18  ;;  %v116_v21 = vstv %s1693_s7  ;;  %vm232_vm1 = vcmp.lt.f32.partialorder %v1701_v9, %v1711_v14 }
  0x23   :  { %v237_v22 = vstv %s222_s12  ;;  %s110_s15 = ssub.f32 %s1698_s8, %s1683_s6  ;;  %v1735_v23 = vmin.f32 %v1677_v2, %v116_v21  ;;  %v118_v24 = vstv %s1698_s8  ;;  %vm1878_vm11 = vmand %vm231_vm0, %vm232_vm1 }
  0x24   :  { %v1738_v25 = vmul.f32 %v235_v19, %v234_v16  ;;  %v238_v26 = vadd.f32 %v237_v22, %v1708_v13  ;;  %v1742_v27 = vmin.f32 %v1679_v3, %v118_v24  ;;  %s1322_s16 = sld [smem:[#allocation6 + $0x12]] }
  0x25   :  { %s111_s17 = smul.f32 %s110_s15, %s109_s14  ;;  %v123_v28 = vsub.f32 %v1735_v23, %v1719_v17  ;;  %s1323_s18 = sld [smem:[#allocation6 + $0x13]]  ;;  %vm120_vm5 = vcmp.lt.f32.partialorder %v1719_v17, %v1735_v23 }
  0x26   :  { %v1747_v29 = vsub.f32 %v238_v26, %v1738_v25  ;;  %v124_v30 = vsub.f32 %v1742_v27, %v1729_v20  ;;  %s1751_s19 = sld [smem:[#allocation6 + $0xc]]  ;;  %v335_v32 = vstv %s1714_s11  ;;  %vm121_vm10 = vcmp.lt.f32.partialorder %v1729_v20, %v1742_v27 }
  0x27   :  { %v126_v31 = vstv %s111_s17  ;;  %v337_v33 = vstv %s1722_s13  ;;  %s1755_s20 = sld [smem:[#allocation6 + $0xd]]  ;;  %v1767_v36 = vmax.f32 %v1673_v0, %v335_v32  ;;  %vm122_vm15 = vmand %vm120_vm5, %vm121_vm10 }
  0x28   :  { %1471 = vrcp.f32 %v1747_v29  ;;  %s1758_s21 = sld [smem:[#allocation6 + $0xe]]  ;;  %v1760_v34 = vmul.f32 %v124_v30, %v123_v28  ;;  %v127_v35 = vadd.f32 %v126_v31, %v1708_v13  ;;  %v1770_v37 = vmax.f32 %v1675_v1, %v337_v33 }
  0x29   :  { %s1763_s22 = sld [smem:[#allocation6 + $0xf]]  ;;  %vm245_vm2 = vweird.f32 %v1747_v29  ;;  %v249_v48 = vand.u32 2147483647, %v1747_v29  ;;  %v251_v49 = vand.u32 2147483648, %v1747_v29 }
  0x2a   :  { %s332_s25 = ssub.f32 %s1322_s16, %s1714_s11  ;;  %v339_v38 = vstv %s1322_s16  ;;  %v1773_v39 = vsub.f32 %v127_v35, %v1760_v34 }
  0x2b   :  { %s333_s26 = ssub.f32 %s1323_s18, %s1722_s13  ;;  %v1777_v40 = vmin.f32 %v1677_v2, %v339_v38  ;;  %v341_v41 = vstv %s1323_s18  ;;  %v252_v62 = vor.u32 1.1754944e-38, %v251_v49  ;;  %vm1851_vm7 = vcmp.eq.f32.partialorder %v249_v48, 8.507059e+37 }
  0x2c   :  { %v1780_v42 = vmin.f32 %v1679_v3, %v341_v41  ;;  %s1782_s27 = sld [smem:[#allocation6 + $0x4]]  ;;  %1473 = vrcp.f32 %v1773_v39  ;;  %v279_v43 = vstv %s1751_s19  ;;  %v140_v12 = vand.u32 2147483648, %v1773_v39 }
  0x2d   :  { %s334_s0 = smul.f32 %s333_s26, %s332_s25  ;;  %s1786_s28 = sld [smem:[#allocation6 + $0x5]]  ;;  %v346_v45 = vsub.f32 %v1777_v40, %v1767_v36  ;;  %v1807_v52 = vmax.f32 %v1673_v0, %v279_v43  ;;  %v281_v53 = vstv %s1755_s20  ;;  %vm134_vm8 = vweird.f32 %v1773_v39 }
  0x2e   :  { %v1472_v44 = vpop.eup %1471  ;;  %v347_v46 = vsub.f32 %v1780_v42, %v1770_v37  ;;  %s276_s1 = ssub.f32 %s1758_s21, %s1751_s19  ;;  %v283_v56 = vstv %s1758_s21  ;;  %v1821_v57 = vmax.f32 %v1675_v1, %v281_v53  ;;  %v138_v22 = vand.u32 2147483647, %v1773_v39 }
  0x2f   :  { %v241_v47 = vmul.f32 %v1472_v44, %v1747_v29  ;;  %s277_s29 = ssub.f32 %s1763_s22, %s1755_s20  ;;  %v349_v51 = vstv %s334_s0  ;;  %vm246_vm4 = vweird.f32 %v1472_v44  ;;  %v1824_v58 = vmin.f32 %v1677_v2, %v283_v56 }
  0x30   :  { %v1804_v50 = vmul.f32 %v347_v46, %v346_v45  ;;  %s1810_s30 = sld [smem:[#allocation6 + $0x6]]  ;;  %v350_v55 = vadd.f32 %v349_v51, %v1708_v13  ;;  %v285_v59 = vstv %s1763_s22  ;;  %vm1840_vm6 = vmor %vm245_vm2, %vm246_vm4  ;;  %v141_v33 = vor.u32 1.1754944e-38, %v140_v12 }
  0x31   :  { %v242_v54 = vsub.f32 1.0, %v241_v47  ;;  %s1813_s2 = smul.f32 %s277_s29, %s276_s1  ;;  %s1816_s5 = sld [smem:[#allocation6 + $0x7]]  ;;  %v1833_v6 = vmin.f32 %v1679_v3, %v285_v59  ;;  %v290_v15 = vsub.f32 %v1824_v58, %v1807_v52  ;;  %vm1899_vm13 = vcmp.eq.f32.partialorder %v138_v22, 8.507059e+37 }
  0x32   :  { %s1827_s6 = sld [smem:[#allocation6 + $0x14]]  ;;  %v1474_v60 = vpop.eup %1473  ;;  %v1830_v63 = vsub.f32 %v350_v55, %v1804_v50  ;;  %v167_v29 = vstv %s1782_s27  ;;  %vm343_vm1 = vcmp.lt.f32.partialorder %v1767_v36, %v1777_v40  ;;  %vm344_vm2 = vcmp.lt.f32.partialorder %v1770_v37, %v1780_v42 }
  0x33   :  { %v243_v61 = vmul.f32 %v1472_v44, %v242_v54  ;;  %s1835_s7 = sld [smem:[#allocation6 + $0x15]]  ;;  %v130_v10 = vmul.f32 %v1474_v60, %v1773_v39  ;;  %v293_v16 = vstv %s1813_s2  ;;  %vm135_vm9 = vweird.f32 %v1474_v60 }
  0x34   :  { %s1849_s8 = sld [smem:[#allocation6 + $0x16]]  ;;  %1475 = vrcp.f32 %v1830_v63  ;;  %v291_v24 = vsub.f32 %v1833_v6, %v1821_v57  ;;  %v294_v28 = vadd.f32 %v293_v16, %v1708_v13  ;;  %vm1890_vm12 = vmor %vm134_vm8, %vm135_vm9  ;;  %v169_v7 = vstv %s1786_s28 }
  0x35   :  { %v244_v18 = vadd.f32 %v1472_v44, %v243_v61  ;;  %s1857_s9 = sld [smem:[#allocation6 + $0x17]]  ;;  %v131_v21 = vsub.f32 1.0, %v130_v10  ;;  %v1914_v46 = vmax.f32 %v1675_v1, %v169_v7  ;;  %vm357_vm14 = vweird.f32 %v1830_v63 }
  0x36   :  { %s164_s10 = ssub.f32 %s1810_s30, %s1782_s27  ;;  %v1884_v35 = vmul.f32 %v291_v24, %v290_v15  ;;  %v171_v11 = vstv %s1810_s30  ;;  %v363_v55 = vand.u32 2147483648, %v1830_v63  ;;  %v361_v20 = vand.u32 2147483647, %v1830_v63 }
  0x37   :  { %v248_v26 = vsel %vm1840_vm6, %v1472_v44, %v244_v18  ;;  %s165_s11 = ssub.f32 %s1816_s5, %s1786_s28  ;;  %v132_v32 = vmul.f32 %v1474_v60, %v131_v21  ;;  %v173_v14 = vstv %s1816_s5  ;;  %v1917_v47 = vmin.f32 %v1677_v2, %v171_v11 }
  0x38   :  { %v253_v31 = vsel %vm1851_vm7, %v252_v62, %v248_v26  ;;  %v1904_v44 = vsub.f32 %v294_v28, %v1884_v35  ;;  %v1920_v48 = vmin.f32 %v1679_v3, %v173_v14  ;;  %s1922_s13 = sld [smem:[#allocation6 + $0x1c]]  ;;  %v364_v10 = vor.u32 1.1754944e-38, %v363_v55  ;;  %vm2010_vm7 = vmand %vm343_vm1, %vm344_vm2 }
  0x39   :  { %v254_v38 = vmul.f32 %v253_v31, %v1738_v25  ;;  %s1894_s12 = smul.f32 %s165_s11, %s164_s10  ;;  %v133_v41 = vadd.f32 %v1474_v60, %v132_v32  ;;  %v1907_v25 = vmax.f32 %v1673_v0, %v167_v29  ;;  %s1930_s14 = sld [smem:[#allocation6 + $0x1d]]  ;;  %v391_v15 = vstv %s1827_s6 }
  0x3a   :  { %v1476_v39 = vpop.eup %1475  ;;  %1477 = vrcp.f32 %v1904_v44  ;;  %s388_s15 = ssub.f32 %s1849_s8, %s1827_s6  ;;  %v179_v23 = vsub.f32 %v1920_v48, %v1914_v46  ;;  %vm1975_vm5 = vcmp.eq.f32.partialorder %v361_v20, 8.507059e+37  ;;  %vm287_vm6 = vcmp.lt.f32.partialorder %v1807_v52, %v1824_v58 }
  0x3b   :  { %v1911_v45 = vsel %vm1878_vm11, %v254_v38, 0.0  ;;  %v137_v51 = vsel %vm1890_vm12, %v1474_v60, %v133_v41  ;;  %v353_v53 = vmul.f32 %v1476_v39, %v1830_v63  ;;  %v181_v56 = vstv %s1894_s12  ;;  %s389_s16 = ssub.f32 %s1857_s9, %s1835_s7 }
  0x3c   :  { %v256_v49 = vsel %vm145_vm3, %v1911_v45, -inf  ;;  %v142_v54 = vsel %vm1899_vm13, %v141_v33, %v137_v51  ;;  %vm358_vm0 = vweird.f32 %v1476_v39  ;;  %v178_v17 = vsub.f32 %v1917_v47, %v1907_v25  ;;  %s1955_s17 = sld [smem:[#allocation6 + $0x1e]] }
  0x3d   :  { %257 = vmax.xlane.f32.xlu1 %v256_v49  ;;  %v143_v59 = vmul.f32 %v142_v54, %v1760_v34  ;;  %v354_v60 = vsub.f32 1.0, %v353_v53  ;;  %v182_v61 = vadd.f32 %v181_v56, %v1708_v13  ;;  %s1962_s18 = sld [smem:[#allocation6 + $0x1f]]  ;;  %vm1968_vm4 = vmor %vm357_vm14, %vm358_vm0  ;;  %v305_v63 = vand.u32 2147483647, %v1904_v44  ;;  %s1986_s19 = smul.f32 %s389_s16, %s388_s15 }
  0x3e   :  { %v1972_v12 = vmul.f32 %v179_v23, %v178_v17  ;;  %v393_v19 = vstv %s1835_s7  ;;  %v1989_v24 = vmax.f32 %v1673_v0, %v391_v15  ;;  %v395_v26 = vstv %s1849_s8  ;;  %s1993_s20 = sld [smem:[#allocation6 + $0x18]] }
  0x3f   :  { %v1957_v27 = vsel %vm122_vm15, %v143_v59, 0.0  ;;  %v355_v34 = vmul.f32 %v1476_v39, %v354_v60  ;;  %v397_v28 = vstv %s1857_s9  ;;  %v307_v31 = vand.u32 2147483648, %v1904_v44  ;;  %s2002_s21 = sld [smem:[#allocation6 + $0x19]] }
  0x40   :  { %v146_v62 = vsel %vm145_vm3, %v1957_v27, -inf  ;;  %v1478_v21 = vpop.eup %1477  ;;  %v1984_v22 = vsub.f32 %v182_v61, %v1972_v12  ;;  %v2000_v32 = vmin.f32 %v1677_v2, %v395_v26  ;;  %vm301_vm8 = vweird.f32 %v1904_v44  ;;  %s2021_s22 = sld [smem:[#allocation6 + $0x1a]] }
  0x41   :  { %147 = vmax.xlane.f32.xlu0 %v146_v62  ;;  %v356_v16 = vadd.f32 %v1476_v39, %v355_v34  ;;  %v297_v30 = vmul.f32 %v1478_v21, %v1904_v44  ;;  %v2019_v9 = vmax.f32 %v1675_v1, %v393_v19  ;;  %vm302_vm9 = vweird.f32 %v1478_v21  ;;  %s2027_s25 = sld [smem:[#allocation6 + $0x1b]] }
  0x42   :  { %1479 = vrcp.f32 %v1984_v22  ;;  %v2025_v40 = vmin.f32 %v1679_v3, %v397_v28  ;;  %vm288_vm10 = vcmp.lt.f32.partialorder %v1821_v57, %v1833_v6  ;;  %vm2031_vm11 = vcmp.eq.f32.partialorder %v305_v63, 8.507059e+37  ;;  %s500_s26 = ssub.f32 %s1955_s17, %s1922_s13  ;;  %vm2051_vm13 = vmor %vm301_vm8, %vm302_vm9 }
  0x43   :  { %v360_v29 = vsel %vm1968_vm4, %v1476_v39, %v356_v16  ;;  %v298_v37 = vsub.f32 1.0, %v297_v30  ;;  %v402_v7 = vsub.f32 %v2000_v32, %v1989_v24  ;;  %v308_v41 = vor.u32 1.1754944e-38, %v307_v31  ;;  %s501_s27 = ssub.f32 %s1962_s18, %s1930_s14  ;;  %vm289_vm14 = vmand %vm287_vm6, %vm288_vm10 }
  0x44   :  { %v365_v38 = vsel %vm1975_vm5, %v364_v10, %v360_v29  ;;  %vm189_vm12 = vweird.f32 %v1984_v22  ;;  %v403_v49 = vsub.f32 %v2025_v40, %v2019_v9  ;;  %v503_v53 = vstv %s1922_s13  ;;  %s2080_s28 = sld [smem:[#allocation6 + $0x80]] }
  0x45   :  { %v366_v36 = vmul.f32 %v365_v38, %v1804_v50  ;;  %v405_v50 = vstv %s1986_s19  ;;  %v299_v14 = vmul.f32 %v1478_v21, %v298_v37  ;;  %v2060_v55 = vmax.f32 %v1673_v0, %v503_v53  ;;  %s502_s0 = smul.f32 %s501_s27, %s500_s26  ;;  %s2108_s30 = sld [smem:[#allocation6 + $0x81]] }
  0x46   :  { %v406_v51 = vadd.f32 %v405_v50, %v1708_v13  ;;  %v505_v56 = vstv %s1930_s14  ;;  %v507_v59 = vstv %s1955_s17  ;;  %v2064_v44 = vmul.f32 %v403_v49, %v402_v7  ;;  %s444_s1 = ssub.f32 %s2021_s22, %s1993_s20 }
  0x47   :  { %v2042_v11 = vsel %vm2010_vm7, %v366_v36, 0.0  ;;  %v300_v54 = vadd.f32 %v1478_v21, %v299_v14  ;;  %v2067_v20 = vmax.f32 %v1675_v1, %v505_v56  ;;  %v2070_v17 = vmin.f32 %v1677_v2, %v507_v59  ;;  %s445_s29 = ssub.f32 %s2027_s25, %s2002_s21 }
  0x48   :  { %v368_v43 = vsel %vm145_vm3, %v2042_v11, -inf  ;;  %v1480_v60 = vpop.eup %1479  ;;  %v509_v23 = vstv %s1962_s18  ;;  %v193_v62 = vand.u32 2147483647, %v1984_v22  ;;  %v195_v15 = vand.u32 2147483648, %v1984_v22  ;;  %s2114_s2 = sld [smem:[#allocation6 + $0x82]] }
  0x49   :  { %369 = vmax.xlane.f32.xlu2 %v368_v43  ;;  %v304_v34 = vsel %vm2051_vm13, %v1478_v21, %v300_v54  ;;  %v185_v61 = vmul.f32 %v1480_v60, %v1984_v22  ;;  %v2078_v8 = vmin.f32 %v1679_v3, %v509_v23  ;;  %v2092_v16 = vsub.f32 %v406_v51, %v2064_v44  ;;  %s2129_s5 = sld [smem:[#allocation6 + $0x83]]  ;;  %s2131_s6 = smul.f32 %s445_s29, %s444_s1 }
  0x4a   :  { %v309_v10 = vsel %vm2031_vm11, %v308_v41, %v304_v34  ;;  %v514_v18 = vsub.f32 %v2070_v17, %v2060_v55  ;;  %vm190_vm15 = vweird.f32 %v1480_v60  ;;  %vm175_vm0 = vcmp.lt.f32.partialorder %v1907_v25, %v1917_v47  ;;  %s2148_s7 = sld [smem:[#allocation6 + $0x88]] }
  0x4b   :  { %v310_v63 = vmul.f32 %v309_v10, %v1884_v35  ;;  %v186_v19 = vsub.f32 1.0, %v185_v61  ;;  %v515_v52 = vsub.f32 %v2078_v8, %v2067_v20  ;;  %vm176_vm1 = vcmp.lt.f32.partialorder %v1914_v46, %v1920_v48  ;;  %vm2120_vm2 = vmor %vm189_vm12, %vm190_vm15  ;;  %s2162_s8 = sld [smem:[#allocation6 + $0x89]] }
  0x4c   :  { %1481 = vrcp.f32 %v2092_v16  ;;  %v517_v35 = vstv %s502_s0  ;;  %vm2124_vm4 = vcmp.eq.f32.partialorder %v193_v62, 8.507059e+37  ;;  %v196_v29 = vor.u32 1.1754944e-38, %v195_v15  ;;  %vm177_vm5 = vmand %vm175_vm0, %vm176_vm1  ;;  %s2167_s9 = sld [smem:[#allocation6 + $0x8a]] }
  0x4d   :  { %v2110_v57 = vsel %vm289_vm14, %v310_v63, 0.0  ;;  %v187_v58 = vmul.f32 %v1480_v60, %v186_v19  ;;  %v2112_v6 = vmul.f32 %v515_v52, %v514_v18  ;;  %v518_v30 = vadd.f32 %v517_v35, %v1708_v13  ;;  %s2176_s10 = sld [smem:[#allocation6 + $0x8b]] }
  0x4e   :  { %v312_v21 = vsel %vm145_vm3, %v2110_v57, -inf  ;;  %v447_v33 = vstv %s1993_s20  ;;  %v449_v22 = vstv %s2002_s21  ;;  %v451_v38 = vstv %s2021_s22  ;;  %s689_s11 = ssub.f32 %s2114_s2, %s2080_s28 }
  0x4f   :  { %313 = vmax.xlane.f32.xlu1 %v312_v21  ;;  %v188_v31 = vadd.f32 %v1480_v60, %v187_v58  ;;  %v2137_v36 = vsub.f32 %v518_v30, %v2112_v6  ;;  %v2140_v37 = vmax.f32 %v1673_v0, %v447_v33  ;;  %v2143_v42 = vmin.f32 %v1677_v2, %v451_v38  ;;  %s690_s12 = ssub.f32 %s2129_s5, %s2108_s30 }
  0x50   :  { %v453_v50 = vstv %s2027_s25  ;;  %v2160_v43 = vmax.f32 %v1675_v1, %v449_v22  ;;  %v461_v25 = vstv %s2131_s6  ;;  %v417_v47 = vand.u32 2147483647, %v2092_v16  ;;  %s2207_s13 = sld [smem:[#allocation6 + $0x84]] }
  0x51   :  { %v192_v7 = vsel %vm2120_vm2, %v1480_v60, %v188_v31  ;;  %1483 = vrcp.f32 %v2137_v36  ;;  %v419_v48 = vand.u32 2147483648, %v2092_v16  ;;  %v2172_v49 = vmin.f32 %v1679_v3, %v453_v50  ;;  %s2214_s14 = smul.f32 %s690_s12, %s689_s11  ;;  %s2217_s15 = sld [smem:[#allocation6 + $0x85]] }
  0x52   :  { %v1482_v14 = vpop.eup %1481  ;;  %v197_v41 = vsel %vm2124_vm4, %v196_v29, %v192_v7  ;;  %v458_v51 = vsub.f32 %v2143_v42, %v2140_v37  ;;  %vm413_vm6 = vweird.f32 %v2092_v16  ;;  %v462_v59 = vadd.f32 %v461_v25, %v1708_v13  ;;  %s799_s16 = ssub.f32 %s2167_s9, %s2148_s7 }
  0x53   :  { %v198_v39 = vmul.f32 %v197_v41, %v1972_v12  ;;  %v409_v46 = vmul.f32 %v1482_v14, %v2092_v16  ;;  %vm414_vm7 = vweird.f32 %v1482_v14  ;;  %v459_v56 = vsub.f32 %v2172_v49, %v2160_v43  ;;  %s800_s17 = ssub.f32 %s2176_s10, %s2162_s8 }
  0x54   :  { %vm399_vm8 = vcmp.lt.f32.partialorder %v1989_v24, %v2000_v32  ;;  %vm400_vm9 = vcmp.lt.f32.partialorder %v2019_v9, %v2025_v40  ;;  %vm2194_vm10 = vmor %vm413_vm6, %vm414_vm7  ;;  %vm2198_vm11 = vcmp.eq.f32.partialorder %v417_v47, 8.507059e+37  ;;  %v420_v62 = vor.u32 1.1754944e-38, %v419_v48  ;;  %s2250_s18 = sld [smem:[#allocation6 + $0x86]] }
  0x55   :  { %v2178_v12 = vsel %vm177_vm5, %v198_v39, 0.0  ;;  %v410_v53 = vsub.f32 1.0, %v409_v46  ;;  %v2202_v10 = vmul.f32 %v459_v56, %v458_v51  ;;  %vm525_vm12 = vweird.f32 %v2137_v36  ;;  %vm2230_vm14 = vmand %vm399_vm8, %vm400_vm9  ;;  %s2263_s19 = sld [smem:[#allocation6 + $0x87]]  ;;  %s801_s22 = smul.f32 %s800_s17, %s799_s16 }
  0x56   :  { %v200_v54 = vsel %vm145_vm3, %v2178_v12, -inf  ;;  %v692_v18 = vstv %s2080_s28  ;;  %v529_v63 = vand.u32 2147483647, %v2137_v36  ;;  %v531_v19 = vand.u32 2147483648, %v2137_v36  ;;  %s2282_s20 = sld [smem:[#allocation6 + $0x8c]] }
  0x57   :  { %201 = vmax.xlane.f32.xlu0 %v200_v54  ;;  %v411_v60 = vmul.f32 %v1482_v14, %v410_v53  ;;  %v1484_v23 = vpop.eup %1483  ;;  %v2212_v52 = vsub.f32 %v462_v59, %v2202_v10  ;;  %v694_v58 = vstv %s2108_s30  ;;  %v696_v26 = vstv %s2114_s2  ;;  %s2290_s21 = sld [smem:[#allocation6 + $0x8d]] }
  0x58   :  { %v521_v16 = vmul.f32 %v1484_v23, %v2137_v36  ;;  %vm526_vm13 = vweird.f32 %v1484_v23  ;;  %vm511_vm15 = vcmp.lt.f32.partialorder %v2060_v55, %v2070_v17  ;;  %v2240_v30 = vmax.f32 %v1673_v0, %v692_v18  ;;  %s2313_s25 = sld [smem:[#allocation6 + $0x8e]] }
  0x59   :  { %v412_v15 = vadd.f32 %v1482_v14, %v411_v60  ;;  %1485 = vrcp.f32 %v2212_v52  ;;  %vm512_vm0 = vcmp.lt.f32.partialorder %v2067_v20, %v2078_v8  ;;  %v2248_v32 = vmax.f32 %v1675_v1, %v694_v58  ;;  %vm2254_vm1 = vmor %vm525_vm12, %vm526_vm13  ;;  %s2319_s26 = sld [smem:[#allocation6 + $0x8f]] }
  0x5a   :  { %v522_v21 = vsub.f32 1.0, %v521_v16  ;;  %v532_v31 = vor.u32 1.1754944e-38, %v531_v19  ;;  %v2259_v33 = vmin.f32 %v1677_v2, %v696_v26  ;;  %v706_v22 = vstv %s2214_s14  ;;  %vm2298_vm5 = vmand %vm511_vm15, %vm512_vm0  ;;  %s743_s27 = ssub.f32 %s2250_s18, %s2207_s13 }
  0x5b   :  { %v416_v35 = vsel %vm2194_vm10, %v1482_v14, %v412_v15  ;;  %vm2269_vm2 = vcmp.eq.f32.partialorder %v529_v63, 8.507059e+37  ;;  %vm469_vm4 = vweird.f32 %v2212_v52  ;;  %v473_v41 = vand.u32 2147483647, %v2212_v52  ;;  %s744_s0 = ssub.f32 %s2263_s19, %s2217_s15 }
  0x5c   :  { %v421_v29 = vsel %vm2198_vm11, %v420_v62, %v416_v35  ;;  %v523_v24 = vmul.f32 %v1484_v23, %v522_v21  ;;  %v703_v39 = vsub.f32 %v2259_v33, %v2240_v30  ;;  %v475_v25 = vand.u32 2147483648, %v2212_v52  ;;  %s2406_s30 = sld [smem:[#allocation6 + $0x94]] }
  0x5d   :  { %v422_v9 = vmul.f32 %v421_v29, %v2064_v44  ;;  %v698_v44 = vstv %s2129_s5  ;;  %v707_v48 = vadd.f32 %v706_v22, %v1708_v13  ;;  %v802_v56 = vstv %s2148_s7  ;;  %s2367_s28 = smul.f32 %s744_s0, %s743_s27  ;;  %s2412_s2 = sld [smem:[#allocation6 + $0x95]] }
  0x5e   :  { %v524_v7 = vadd.f32 %v1484_v23, %v523_v24  ;;  %v2274_v36 = vmin.f32 %v1679_v3, %v698_v44  ;;  %v804_v59 = vstv %s2162_s8  ;;  %v806_v60 = vstv %s2167_s9  ;;  %s855_s1 = ssub.f32 %s2313_s25, %s2282_s20 }
  0x5f   :  { %v2267_v38 = vsel %vm2230_vm14, %v422_v9, 0.0  ;;  %v1486_v51 = vpop.eup %1485  ;;  %v2322_v8 = vmax.f32 %v1673_v0, %v802_v56  ;;  %v2328_v34 = vmin.f32 %v1677_v2, %v806_v60  ;;  %v808_v61 = vstv %s2176_s10  ;;  %s856_s29 = ssub.f32 %s2319_s26, %s2290_s21 }
  0x60   :  { %v424_v14 = vsel %vm145_vm3, %v2267_v38, -inf  ;;  %v528_v46 = vsel %vm2254_vm1, %v1484_v23, %v524_v7  ;;  %v704_v47 = vsub.f32 %v2274_v36, %v2248_v32  ;;  %v465_v20 = vmul.f32 %v1486_v51, %v2212_v52  ;;  %s2423_s6 = sld [smem:[#allocation6 + $0x96]] }
  0x61   :  { %425 = vmax.xlane.f32.xlu2 %v424_v14  ;;  %v533_v54 = vsel %vm2269_vm2, %v532_v31, %v528_v46  ;;  %vm470_vm6 = vweird.f32 %v1486_v51  ;;  %v2325_v23 = vmax.f32 %v1675_v1, %v804_v59  ;;  %v2339_v16 = vmin.f32 %v1679_v3, %v808_v61  ;;  %s2420_s5 = smul.f32 %s856_s29, %s855_s1  ;;  %s2429_s7 = sld [smem:[#allocation6 + $0x97]] }
  0x62   :  { %v534_v55 = vmul.f32 %v533_v54, %v2112_v6  ;;  %v2317_v17 = vmul.f32 %v704_v47, %v703_v39  ;;  %v466_v62 = vsub.f32 1.0, %v465_v20  ;;  %v813_v63 = vsub.f32 %v2328_v34, %v2322_v8  ;;  %vm2355_vm8 = vmor %vm469_vm4, %vm470_vm6  ;;  %s2459_s8 = sld [smem:[#allocation6 + $0x90]] }
  0x63   :  { %v816_v19 = vstv %s801_s22  ;;  %vm455_vm7 = vcmp.lt.f32.partialorder %v2140_v37, %v2143_v42  ;;  %v476_v21 = vor.u32 1.1754944e-38, %v475_v25  ;;  %v814_v26 = vsub.f32 %v2339_v16, %v2325_v23  ;;  %s2468_s9 = sld [smem:[#allocation6 + $0x91]] }
  0x64   :  { %v2333_v6 = vsel %vm2298_vm5, %v534_v55, 0.0  ;;  %v2336_v15 = vsub.f32 %v707_v48, %v2317_v17  ;;  %v467_v58 = vmul.f32 %v1486_v51, %v466_v62  ;;  %v817_v28 = vadd.f32 %v816_v19, %v1708_v13  ;;  %s2476_s10 = sld [smem:[#allocation6 + $0x92]] }
  0x65   :  { %v536_v18 = vsel %vm145_vm3, %v2333_v6, -inf  ;;  %vm456_vm9 = vcmp.lt.f32.partialorder %v2160_v43, %v2172_v49  ;;  %vm474_vm10 = vcmp.eq.f32.partialorder %v473_v41, 8.507059e+37  ;;  %v746_v9 = vstv %s2207_s13  ;;  %s2485_s11 = sld [smem:[#allocation6 + $0x93]] }
  0x66   :  { %537 = vmax.xlane.f32.xlu1 %v536_v18  ;;  %1487 = vrcp.f32 %v2336_v15  ;;  %v468_v29 = vadd.f32 %v1486_v51, %v467_v58  ;;  %v2365_v24 = vmul.f32 %v814_v26, %v813_v63  ;;  %v748_v52 = vstv %s2217_s15  ;;  %vm2381_vm11 = vmand %vm455_vm7, %vm456_vm9  ;;  %s967_s12 = ssub.f32 %s2423_s6, %s2406_s30 }
  0x67   :  { %v750_v31 = vstv %s2250_s18  ;;  %v752_v44 = vstv %s2263_s19  ;;  %vm700_vm12 = vcmp.lt.f32.partialorder %v2240_v30, %v2259_v33  ;;  %vm701_vm13 = vcmp.lt.f32.partialorder %v2248_v32, %v2274_v36  ;;  %s968_s13 = ssub.f32 %s2429_s7, %s2412_s2 }
  0x68   :  { %v472_v40 = vsel %vm2355_vm8, %v1486_v51, %v468_v29  ;;  %v2390_v22 = vsub.f32 %v817_v28, %v2365_v24  ;;  %v2393_v7 = vmax.f32 %v1673_v0, %v746_v9  ;;  %v2396_v37 = vmin.f32 %v1677_v2, %v750_v31  ;;  %vm702_vm6 = vmand %vm700_vm12, %vm701_vm13  ;;  %s2568_s17 = sld [smem:[#allocation6 + $0x98]] }
  0x69   :  { %v477_v49 = vsel %vm474_vm10, %v476_v21, %v472_v40  ;;  %v720_v14 = vand.u32 2147483648, %v2336_v15  ;;  %v2401_v41 = vmax.f32 %v1675_v1, %v748_v52  ;;  %v2404_v39 = vmin.f32 %v1679_v3, %v752_v44  ;;  %s969_s14 = smul.f32 %s968_s13, %s967_s12  ;;  %s2576_s18 = sld [smem:[#allocation6 + $0x99]] }
  0x6a   :  { %v478_v50 = vmul.f32 %v477_v49, %v2202_v10  ;;  %1489 = vrcp.f32 %v2390_v22  ;;  %v760_v25 = vstv %s2367_s28  ;;  %v858_v47 = vstv %s2282_s20  ;;  %s911_s15 = ssub.f32 %s2476_s10, %s2459_s8 }
  0x6b   :  { %vm714_vm14 = vweird.f32 %v2336_v15  ;;  %v718_v48 = vand.u32 2147483647, %v2336_v15  ;;  %v860_v51 = vstv %s2290_s21  ;;  %v757_v56 = vsub.f32 %v2396_v37, %v2393_v7  ;;  %s912_s16 = ssub.f32 %s2485_s11, %s2468_s9 }
  0x6c   :  { %v1488_v42 = vpop.eup %1487  ;;  %v2416_v10 = vsel %vm2381_vm11, %v478_v50, 0.0  ;;  %v721_v59 = vor.u32 1.1754944e-38, %v720_v14  ;;  %v758_v60 = vsub.f32 %v2404_v39, %v2401_v41  ;;  %v761_v55 = vadd.f32 %v760_v25, %v1708_v13  ;;  %s2584_s20 = sld [smem:[#allocation6 + $0x9a]] }
  0x6d   :  { %v710_v46 = vmul.f32 %v1488_v42, %v2336_v15  ;;  %v480_v53 = vsel %vm145_vm3, %v2416_v10, -inf  ;;  %vm715_vm15 = vweird.f32 %v1488_v42  ;;  %v2435_v20 = vmax.f32 %v1673_v0, %v858_v47  ;;  %s2582_s19 = smul.f32 %s912_s16, %s911_s15  ;;  %s2602_s21 = sld [smem:[#allocation6 + $0x9b]] }
  0x6e   :  { %481 = vmax.xlane.f32.xlu0 %v480_v53  ;;  %v2438_v62 = vmax.f32 %v1675_v1, %v860_v51  ;;  %v862_v18 = vstv %s2313_s25  ;;  %v864_v63 = vstv %s2319_s26  ;;  %vm2444_vm0 = vmor %vm714_vm14, %vm715_vm15  ;;  %vm810_vm1 = vcmp.lt.f32.partialorder %v2322_v8, %v2328_v34  ;;  %s2615_s22 = sld [smem:[#allocation6 + $0x9c]] }
  0x6f   :  { %v711_v54 = vsub.f32 1.0, %v710_v46  ;;  %v2450_v58 = vmul.f32 %v758_v60, %v757_v56  ;;  %v2453_v35 = vmin.f32 %v1677_v2, %v862_v18  ;;  %v2456_v21 = vmin.f32 %v1679_v3, %v864_v63  ;;  %s2623_s25 = sld [smem:[#allocation6 + $0x9d]] }
  0x70   :  { %v872_v26 = vstv %s2420_s5  ;;  %v1490_v28 = vpop.eup %1489  ;;  %vm2461_vm2 = vcmp.eq.f32.partialorder %v718_v48, 8.507059e+37  ;;  %vm811_vm4 = vcmp.lt.f32.partialorder %v2325_v23, %v2339_v16  ;;  %v828_v9 = vand.u32 2147483647, %v2390_v22  ;;  %s2628_s26 = sld [smem:[#allocation6 + $0x9e]] }
  0x71   :  { %v712_v61 = vmul.f32 %v1488_v42, %v711_v54  ;;  %v820_v52 = vmul.f32 %v1490_v28, %v2390_v22  ;;  %vm824_vm5 = vweird.f32 %v2390_v22  ;;  %v830_v40 = vand.u32 2147483648, %v2390_v22  ;;  %vm812_vm13 = vmand %vm810_vm1, %vm811_vm4  ;;  %s2640_s27 = sld [smem:[#allocation6 + $0x9f]] }
  0x72   :  { %v2474_v31 = vsub.f32 %v761_v55, %v2450_v58  ;;  %v869_v43 = vsub.f32 %v2453_v35, %v2435_v20  ;;  %v870_v49 = vsub.f32 %v2456_v21, %v2438_v62  ;;  %v873_v50 = vadd.f32 %v872_v26, %v1708_v13  ;;  %s1023_s0 = ssub.f32 %s2584_s20, %s2568_s17 }
  0x73   :  { %v713_v15 = vadd.f32 %v1488_v42, %v712_v61  ;;  %v821_v14 = vsub.f32 1.0, %v820_v52  ;;  %vm825_vm7 = vweird.f32 %v1490_v28  ;;  %vm2499_vm8 = vcmp.eq.f32.partialorder %v828_v9, 8.507059e+37  ;;  %s1024_s28 = ssub.f32 %s2602_s21, %s2576_s18 }
  0x74   :  { %1491 = vrcp.f32 %v2474_v31  ;;  %v2503_v47 = vmul.f32 %v870_v49, %v869_v43  ;;  %v970_v32 = vstv %s2406_s30  ;;  %v831_v33 = vor.u32 1.1754944e-38, %v830_v40  ;;  %vm2514_vm9 = vmor %vm824_vm5, %vm825_vm7  ;;  %s2828_s12 = sld [smem:[#allocation7 + $0x2]] }
  0x75   :  { %v717_v44 = vsel %vm2444_vm0, %v1488_v42, %v713_v15  ;;  %v822_v30 = vmul.f32 %v1490_v28, %v821_v14  ;;  %v972_v36 = vstv %s2412_s2  ;;  %v974_v48 = vstv %s2423_s6  ;;  %s1025_s29 = smul.f32 %s1024_s28, %s1023_s0  ;;  %s2832_s13 = sld [smem:[#allocation7 + $0x3]] }
  0x76   :  { %v722_v42 = vsel %vm2461_vm2, %v721_v59, %v717_v44  ;;  %v774_v54 = vand.u32 2147483648, %v2474_v31  ;;  %v2521_v56 = vsub.f32 %v873_v50, %v2503_v47  ;;  %v2526_v22 = vmax.f32 %v1673_v0, %v970_v32  ;;  %s1079_s1 = ssub.f32 %s2628_s26, %s2615_s22 }
  0x77   :  { %v723_v46 = vmul.f32 %v722_v42, %v2317_v17  ;;  %v772_v17 = vand.u32 2147483647, %v2474_v31  ;;  %v823_v60 = vadd.f32 %v1490_v28, %v822_v30  ;;  %v2529_v55 = vmin.f32 %v1677_v2, %v974_v48  ;;  %s1080_s30 = ssub.f32 %s2640_s27, %s2623_s25 }
  0x78   :  { %vm754_vm10 = vcmp.lt.f32.partialorder %v2393_v7, %v2396_v37  ;;  %vm755_vm11 = vcmp.lt.f32.partialorder %v2401_v41, %v2404_v39  ;;  %1493 = vrcp.f32 %v2521_v56  ;;  %vm768_vm12 = vweird.f32 %v2474_v31  ;;  %s2842_s15 = sld [smem:[#allocation7 + $0x80]] }
  0x79   :  { %v2510_v51 = vsel %vm702_vm6, %v723_v46, 0.0  ;;  %v827_v0 = vsel %vm2514_vm9, %v1490_v28, %v823_v60  ;;  %v2540_v2 = vmax.f32 %v1675_v1, %v972_v36  ;;  %v976_v18 = vstv %s2429_s7  ;;  %v2596_v46 = vld [vmem:[#allocation2] sm:$0xf]  ;;  %v2609_v36 = vld [vmem:[#allocation2 + $0x8] sm:$0xf]  ;;  %vm756_vm4 = vmand %vm754_vm10, %vm755_vm11  ;;  %s1081_s2 = smul.f32 %s1080_s30, %s1079_s1  ;;  %s2855_s16 = sld [smem:[#allocation7 + $0x81]] }
  0x7a   :  { %v725_v59 = vsel %vm145_vm3, %v2510_v51, -inf  ;;  %v1492_v61 = vpop.eup %1491  ;;  %v832_v63 = vsel %vm2499_vm8, %v831_v33, %v827_v0  ;;  %vm2554_vm14 = vcmp.eq.f32.partialorder %v772_v17, 8.507059e+37  ;;  %v775_v1 = vor.u32 1.1754944e-38, %v774_v54  ;;  %v2604_v33 = vld [vmem:[#allocation2 + $0x4] sm:$0xf]  ;;  %s2978_s0 = sld [smem:[#allocation7 + $0x183]] }
  0x7b   :  { %726 = vmax.xlane.f32.xlu2 %v725_v59  ;;  %v764_v19 = vmul.f32 %v1492_v61, %v2474_v31  ;;  %v833_v28 = vmul.f32 %v832_v63, %v2365_v24  ;;  %vm880_vm15 = vweird.f32 %v2521_v56  ;;  %v2563_v23 = vmin.f32 %v1679_v3, %v976_v18  ;;  %v2618_v59 = vld [vmem:[#allocation2 + $0xc] sm:$0xf]  ;;  %s2986_s1 = sld [smem:[#allocation7 + $0x200]] }
  0x7c   :  { %v981_v8 = vsub.f32 %v2529_v55, %v2526_v22  ;;  %vm769_vm0 = vweird.f32 %v1492_v61  ;;  %v984_v16 = vstv %s969_s14  ;;  %v914_v15 = vstv %s2459_s8  ;;  %s2993_s30 = sld [smem:[#allocation7 + $0x201]] }
  0x7d   :  { %v765_v34 = vsub.f32 1.0, %v764_v19  ;;  %v2570_v29 = vsel %vm812_vm13, %v833_v28, 0.0  ;;  %v982_v9 = vsub.f32 %v2563_v23, %v2540_v2  ;;  %v985_v24 = vadd.f32 %v984_v16, %v1708_v13  ;;  %vm2589_vm1 = vmor %vm768_vm12, %vm769_vm0  ;;  %s3090_s23 = sld [smem:[#allocation7 + $0x303]] }
  0x7e   :  { %v916_v52 = vstv %s2468_s9  ;;  %v1494_v3 = vpop.eup %1493  ;;  %v835_v40 = vsel %vm145_vm3, %v2570_v29, -inf  ;;  %v884_v43 = vand.u32 2147483647, %v2521_v56  ;;  %v886_v49 = vand.u32 2147483648, %v2521_v56  ;;  %s2818_s9 = sld [smem:[#allocation7]] }
  0x7f   :  { %v766_v44 = vmul.f32 %v1492_v61, %v765_v34  ;;  %836 = vmax.xlane.f32.xlu1 %v835_v40  ;;  %v876_v42 = vmul.f32 %v1494_v3, %v2521_v56  ;;  %v2594_v14 = vmul.f32 %v982_v9, %v981_v8  ;;  %v2599_v25 = vmax.f32 %v2596_v46, %v914_v15  ;;  %s3129_s24 = sld [smem:[#allocation7 + $0x380]] }
  0x80   :  { %v918_v32 = vstv %s2476_s10  ;;  %v2607_v31 = vmax.f32 %v2604_v33, %v916_v52  ;;  %v920_v53 = vstv %s2485_s11  ;;  %vm881_vm2 = vweird.f32 %v1494_v3  ;;  %s2820_s10 = sld [smem:[#allocation7 + $0x1]] }
  0x81   :  { %v767_v30 = vadd.f32 %v1492_v61, %v766_v44  ;;  %v2612_v48 = vmin.f32 %v2609_v36, %v918_v32  ;;  %v877_v17 = vsub.f32 1.0, %v876_v42  ;;  %v986_v54 = vsub.f32 %v985_v24, %v2594_v14  ;;  %vm882_vm7 = vmor %vm880_vm15, %vm881_vm2  ;;  %s3145_s3 = sld [smem:[#allocation7 + $0x381]] }
  0x82   :  { %v2621_v60 = vmin.f32 %v2618_v59, %v920_v53  ;;  %v928_v18 = vstv %s2582_s19  ;;  %vm866_vm5 = vcmp.lt.f32.partialorder %v2435_v20, %v2453_v35  ;;  %vm867_vm6 = vcmp.lt.f32.partialorder %v2438_v62, %v2456_v21  ;;  %s2887_s19 = sld [smem:[#allocation7 + $0x100]] }
  0x83   :  { %v771_v0 = vsel %vm2589_vm1, %v1492_v61, %v767_v30  ;;  %v878_v19 = vmul.f32 %v1494_v3, %v877_v17  ;;  %1495 = vrcp.f32 %v986_v54  ;;  %v925_v61 = vsub.f32 %v2612_v48, %v2599_v25  ;;  %vm868_vm9 = vmand %vm866_vm5, %vm867_vm6  ;;  %s3161_s4 = sld [smem:[#allocation7 + $0x382]] }
  0x84   :  { %v776_v63 = vsel %vm2554_vm14, %v775_v1, %v771_v0  ;;  %v887_v7 = vor.u32 1.1754944e-38, %v886_v49  ;;  %vm885_vm8 = vcmp.eq.f32.partialorder %v884_v43, 8.507059e+37  ;;  %v926_v39 = vsub.f32 %v2621_v60, %v2607_v31 }
  0x85   :  { %v777_v41 = vmul.f32 %v776_v63, %v2450_v58  ;;  %v879_v37 = vadd.f32 %v1494_v3, %v878_v19  ;;  %v929_v58 = vadd.f32 %v928_v18, %v1708_v13  ;;  %v1026_v28 = vstv %s2568_s17  ;;  %s2867_s17 = sld [smem:[#allocation7 + $0x82]] }
  0x86   :  { %v2659_v56 = vmul.f32 %v926_v39, %v925_v61  ;;  %v1030_v8 = vstv %s2584_s20  ;;  %v996_v15 = vand.u32 2147483647, %v986_v54  ;;  %v1028_v24 = vstv %s2576_s18  ;;  %s2880_s18 = sld [smem:[#allocation7 + $0x83]] }
  0x87   :  { %v2653_v26 = vsel %vm756_vm4, %v777_v41, 0.0  ;;  %v883_v21 = vsel %vm882_vm7, %v1494_v3, %v879_v37  ;;  %vm992_vm10 = vweird.f32 %v986_v54  ;;  %v998_v3 = vand.u32 2147483648, %v986_v54  ;;  %s2900_s20 = sld [smem:[#allocation7 + $0x101]] }
  0x88   :  { %v779_v62 = vsel %vm145_vm3, %v2653_v26, -inf  ;;  %v888_v1 = vsel %vm885_vm8, %v887_v7, %v883_v21  ;;  %v2670_v9 = vsub.f32 %v929_v58, %v2659_v56  ;;  %v2679_v35 = vmax.f32 %v2596_v46, %v1026_v28 }
  0x89   :  { %780 = vmax.xlane.f32.xlu0 %v779_v62  ;;  %v1496_v34 = vpop.eup %1495  ;;  %v889_v16 = vmul.f32 %v888_v1, %v2503_v47  ;;  %v2682_v47 = vmin.f32 %v2609_v36, %v1030_v8  ;;  %v2689_v43 = vmax.f32 %v2604_v33, %v1028_v24  ;;  %vm978_vm12 = vcmp.lt.f32.partialorder %v2526_v22, %v2529_v55 }
  0x8a   :  { %v988_v52 = vmul.f32 %v1496_v34, %v986_v54  ;;  %1497 = vrcp.f32 %v2670_v9  ;;  %vm993_vm11 = vweird.f32 %v1496_v34  ;;  %vm979_vm13 = vcmp.lt.f32.partialorder %v2540_v2, %v2563_v23 }
  0x8b   :  { %v2675_v20 = vsel %vm868_vm9, %v889_v16, 0.0  ;;  %vm2695_vm14 = vcmp.eq.f32.partialorder %v996_v15, 8.507059e+37  ;;  %v1032_v50 = vstv %s2602_s21  ;;  %v999_v32 = vor.u32 1.1754944e-38, %v998_v3  ;;  %vm2705_vm0 = vmor %vm992_vm10, %vm993_vm11  ;;  %s2925_s21 = sld [smem:[#allocation7 + $0x102]] }
  0x8c   :  { %v891_v40 = vsel %vm145_vm3, %v2675_v20, -inf  ;;  %v989_v44 = vsub.f32 1.0, %v988_v52  ;;  %vm936_vm15 = vweird.f32 %v2670_v9  ;;  %v2702_v30 = vmin.f32 %v2618_v59, %v1032_v50  ;;  %vm980_vm1 = vmand %vm978_vm12, %vm979_vm13 }
  0x8d   :  { %892 = vmax.xlane.f32.xlu2 %v891_v40  ;;  %v1037_v17 = vsub.f32 %v2682_v47, %v2679_v35  ;;  %v1040_v0 = vstv %s1025_s29  ;;  %v1082_v18 = vstv %s2615_s22  ;;  %v1084_v63 = vstv %s2623_s25  ;;  %s2931_s22 = sld [smem:[#allocation7 + $0x103]] }
  0x8e   :  { %v990_v42 = vmul.f32 %v1496_v34, %v989_v44  ;;  %v940_v61 = vand.u32 2147483647, %v2670_v9  ;;  %v1038_v41 = vsub.f32 %v2702_v30, %v2689_v43  ;;  %v1041_v7 = vadd.f32 %v1040_v0, %v1708_v13  ;;  %s2939_s25 = sld [smem:[#allocation7 + $0x180]] }
  0x8f   :  { %v2718_v37 = vmax.f32 %v2596_v46, %v1082_v18  ;;  %v2721_v39 = vmax.f32 %v2604_v33, %v1084_v63  ;;  %v1086_v58 = vstv %s2628_s26  ;;  %v1088_v62 = vstv %s2640_s27  ;;  %s2947_s26 = sld [smem:[#allocation7 + $0x181]] }
  0x90   :  { %v991_v19 = vadd.f32 %v1496_v34, %v990_v42  ;;  %v1498_v54 = vpop.eup %1497  ;;  %v942_v28 = vand.u32 2147483648, %v2670_v9  ;;  %v1039_v8 = vmul.f32 %v1038_v41, %v1037_v17  ;;  %v2738_v33 = vmin.f32 %v2609_v36, %v1086_v58  ;;  %s2955_s27 = sld [smem:[#allocation7 + $0x182]] }
  0x91   :  { %v932_v1 = vmul.f32 %v1498_v54, %v2670_v9  ;;  %v1096_v16 = vstv %s1081_s2  ;;  %vm937_vm2 = vweird.f32 %v1498_v54  ;;  %vm922_vm5 = vcmp.lt.f32.partialorder %v2599_v25, %v2612_v48  ;;  %s3008_s2 = sld [smem:[#allocation7 + $0x202]] }
  0x92   :  { %v995_v21 = vsel %vm2705_vm0, %v1496_v34, %v991_v19  ;;  %v2741_v34 = vmin.f32 %v2618_v59, %v1088_v62  ;;  %v1042_v52 = vsub.f32 %v1041_v7, %v1039_v8  ;;  %v1093_v2 = vsub.f32 %v2738_v33, %v2718_v37  ;;  %vm938_vm4 = vmor %vm936_vm15, %vm937_vm2 }
  0x93   :  { %v1000_v46 = vsel %vm2695_vm14, %v999_v32, %v995_v21  ;;  %v933_v24 = vsub.f32 1.0, %v932_v1  ;;  %v1097_v55 = vadd.f32 %v1096_v16, %v1708_v13  ;;  %vm923_vm6 = vcmp.lt.f32.partialorder %v2607_v31, %v2621_v60 }
  0x94   :  { %v1001_v15 = vmul.f32 %v1000_v46, %v2594_v14  ;;  %v1094_v22 = vsub.f32 %v2741_v34, %v2721_v39  ;;  %1499 = vrcp.f32 %v1042_v52  ;;  %v943_v14 = vor.u32 1.1754944e-38, %v942_v28  ;;  %vm924_vm8 = vmand %vm922_vm5, %vm923_vm6 }
  0x95   :  { %v934_v36 = vmul.f32 %v1498_v54, %v933_v24  ;;  %vm941_vm7 = vcmp.eq.f32.partialorder %v940_v61, 8.507059e+37  ;;  %vm1048_vm9 = vweird.f32 %v1042_v52  ;;  %v1054_v53 = vand.u32 2147483648, %v1042_v52 }
  0x96   :  { %v2749_v23 = vsel %vm980_vm1, %v1001_v15, 0.0  ;;  %v1095_v3 = vmul.f32 %v1094_v22, %v1093_v2  ;;  %v1052_v31 = vand.u32 2147483647, %v1042_v52  ;;  %vm1034_vm11 = vcmp.lt.f32.partialorder %v2679_v35, %v2682_v47 }
  0x97   :  { %v1003_v59 = vsel %vm145_vm3, %v2749_v23, -inf  ;;  %v935_v13 = vadd.f32 %v1498_v54, %v934_v36  ;;  %v1055_v0 = vor.u32 1.1754944e-38, %v1054_v53  ;;  %vm1035_vm13 = vcmp.lt.f32.partialorder %v2689_v43, %v2702_v30 }
  0x98   :  { %1004 = vmax.xlane.f32.xlu1 %v1003_v59  ;;  %v1098_v40 = vsub.f32 %v1097_v55, %v1095_v3  ;;  %vm1053_vm14 = vcmp.eq.f32.partialorder %v1052_v31, 8.507059e+37  ;;  %vm1036_vm1 = vmand %vm1034_vm11, %vm1035_vm13  ;;  %vm1091_vm5 = vcmp.lt.f32.partialorder %v2721_v39, %v2741_v34 }
  0x99   :  { %v939_v44 = vsel %vm938_vm4, %v1498_v54, %v935_v13  ;;  %vm1090_vm4 = vcmp.lt.f32.partialorder %v2718_v37, %v2738_v33 }
  0x9a   :  { %v944_v49 = vsel %vm941_vm7, %v943_v14, %v939_v44  ;;  %1501 = vrcp.f32 %v1098_v40  ;;  %v1500_v50 = vpop.eup %1499  ;;  %v1110_v63 = vand.u32 2147483648, %v1098_v40  ;;  %vm1104_vm15 = vweird.f32 %v1098_v40  ;;  %vm1092_vm7 = vmand %vm1090_vm4, %vm1091_vm5 }
  0x9b   :  { %v945_v9 = vmul.f32 %v944_v49, %v2659_v56  ;;  %v1044_v42 = vmul.f32 %v1500_v50, %v1042_v52  ;;  %vm1049_vm10 = vweird.f32 %v1500_v50  ;;  %v1108_v61 = vand.u32 2147483647, %v1098_v40 }
  0x9c   :  { %vm1050_vm12 = vmor %vm1048_vm9, %vm1049_vm10  ;;  %v1111_v35 = vor.u32 1.1754944e-38, %v1110_v63 }
  0x9d   :  { %v2760_v32 = vsel %vm924_vm8, %v945_v9, 0.0  ;;  %v1045_v48 = vsub.f32 1.0, %v1044_v42  ;;  %vm1109_vm6 = vcmp.eq.f32.partialorder %v1108_v61, 8.507059e+37  ;;  %vm158_vm8 = vcmp.gt.f32.partialorder %v1957_v27, -1.0 }
  0x9e   :  { %v947_v25 = vsel %vm145_vm3, %v2760_v32, -inf }
  0x9f   :  { %948 = vmax.xlane.f32.xlu0 %v947_v25  ;;  %v1046_v17 = vmul.f32 %v1500_v50, %v1045_v48 }
  0xa0   :  { %v1502_v60 = vpop.eup %1501 }
  0xa1   :  { %v1100_v56 = vmul.f32 %v1502_v60, %v1098_v40  ;;  %v1047_v18 = vadd.f32 %v1500_v50, %v1046_v17  ;;  %vm1105_vm0 = vweird.f32 %v1502_v60 }
  0xa2   :  { %vm1106_vm2 = vmor %vm1104_vm15, %vm1105_vm0 }
  0xa3   :  { %v1101_v19 = vsub.f32 1.0, %v1100_v56  ;;  %v1051_v41 = vsel %vm1050_vm12, %v1500_v50, %v1047_v18 }
  0xa4   :  { %v1056_v7 = vsel %vm1053_vm14, %v1055_v0, %v1051_v41 }
  0xa5   :  { %v1102_v54 = vmul.f32 %v1502_v60, %v1101_v19  ;;  %v1057_v58 = vmul.f32 %v1056_v7, %v1039_v8 }
  0xa7   :  { %v1103_v47 = vadd.f32 %v1502_v60, %v1102_v54  ;;  %v2772_v43 = vsel %vm1036_vm1, %v1057_v58, 0.0 }
  0xa8   :  { %v1059_v30 = vsel %vm145_vm3, %v2772_v43, -inf }
  0xa9   :  { %v1107_v62 = vsel %vm1106_vm2, %v1502_v60, %v1103_v47  ;;  %1060 = vmax.xlane.f32.xlu2 %v1059_v30 }
  0xaa   :  { %v1112_v21 = vsel %vm1109_vm6, %v1111_v35, %v1107_v62 }
  0xab   :  { %v1113_v1 = vmul.f32 %v1112_v21, %v1095_v3 }
  0xad   :  { %v2776_v28 = vsel %vm1092_vm7, %v1113_v1, 0.0 }
  0xae   :  { %v1115_v37 = vsel %vm145_vm3, %v2776_v28, -inf  ;;  %vm737_vm3 = vcmp.gt.f32.partialorder %v2510_v51, -1.0 }
  0xaf   :  { %1116 = vmax.xlane.f32.xlu0 %v1115_v37 }
  0xb0   :  { %v258_v16 = vpop.xlane.xlu1 %257 }
  0xb1   :  { %v259_v22 = vrot.slane %v258_v16, 4 }
  0xb3   :  { %v260_v3 = vmax.f32 %v258_v16, %v259_v22 }
  0xb4   :  { %v148_v8 = vpop.xlane.xlu0 %147 }
  0xb5   :  { %v149_v46 = vrot.slane %v148_v8, 4  ;;  %v261_v49 = vrot.slane %v260_v3, 2 }
  0xb7   :  { %v150_v39 = vmax.f32 %v148_v8, %v149_v46  ;;  %v262_v48 = vmax.f32 %v260_v3, %v261_v49 }
  0xb9   :  { %v151_v33 = vrot.slane %v150_v39, 2  ;;  %v263_v56 = vrot.slane %v262_v48, 1 }
  0xbb   :  { %v152_v34 = vmax.f32 %v150_v39, %v151_v33  ;;  %v264_v54 = vmax.f32 %v262_v48, %v263_v56 }
  0xbc   :  { %v370_v52 = vpop.xlane.xlu2 %369 }
  0xbd   :  { %v153_v15 = vrot.slane %v152_v34, 1  ;;  %v371_v55 = vrot.slane %v370_v52, 4 }
  0xbf   :  { %v154_v24 = vmax.f32 %v152_v34, %v153_v15  ;;  %v372_v13 = vmax.f32 %v370_v52, %v371_v55 }
  0xc1   :  { %1430 = vpush %v154_v24  ;;  %v373_v50 = vrot.slane %v372_v13, 2 }
  0xc2   :  { %v314_v2 = vpop.xlane.xlu1 %313 }
  0xc3   :  { %v315_v36 = vrot.slane %v314_v2, 4  ;;  %v374_v60 = vmax.f32 %v372_v13, %v373_v50 }
  0xc5   :  { %v316_v40 = vmax.f32 %v314_v2, %v315_v36  ;;  %v375_v19 = vrot.slane %v374_v60, 1 }
  0xc7   :  { %v317_v9 = vrot.slane %v316_v40, 2  ;;  %v376_v35 = vmax.f32 %v374_v60, %v375_v19 }
  0xc9   :  { %v318_v31 = vmax.f32 %v316_v40, %v317_v9  ;;  %v738_v9 = vsel %vm737_vm3, %v2510_v51, -1.0 }
  0xca   :  { %v202_v59 = vpop.xlane.xlu0 %201  ;;  %vm792_vm9 = vcmp.gt.f32.partialorder %v2653_v26, %v738_v9 }
  0xcb   :  { %v203_v14 = vrot.slane %v202_v59, 4  ;;  %v319_v18 = vrot.slane %v318_v31, 1  ;;  %v793_v60 = vsel %vm792_vm9, %v2653_v26, %v738_v9 }
  0xcc   :  { %vm848_vm11 = vcmp.gt.f32.partialorder %v2570_v29, %v793_v60 }
  0xcd   :  { %v204_v44 = vmax.f32 %v202_v59, %v203_v14  ;;  %v320_v41 = vmax.f32 %v318_v31, %v319_v18 }
  0xcf   :  { %v205_v42 = vrot.slane %v204_v44, 2 }
  0xd1   :  { %v206_v25 = vmax.f32 %v204_v44, %v205_v42  ;;  %v159_v42 = vsel %vm158_vm8, %v1957_v27, -1.0 }
  0xd2   :  { %vm213_vm10 = vcmp.gt.f32.partialorder %v2178_v12, %v159_v42 }
  0xd3   :  { %v207_v0 = vrot.slane %v206_v25, 1  ;;  %v214_v56 = vsel %vm213_vm10, %v2178_v12, %v159_v42 }
  0xd4   :  { %v426_v53 = vpop.xlane.xlu2 %425  ;;  %vm269_vm12 = vcmp.gt.f32.partialorder %v1911_v45, %v214_v56 }
  0xd5   :  { %v427_v17 = vrot.slane %v426_v53, 4  ;;  %v208_v61 = vmax.f32 %v206_v25, %v207_v0 }
  0xd7   :  { %v428_v63 = vmax.f32 %v426_v53, %v427_v17  ;;  %1432 = vpush %v208_v61 }
  0xd8   :  { %1434 = vpush %v264_v54 }
  0xd9   :  { %v429_v7 = vrot.slane %v428_v63, 2  ;;  %v538_v58 = vpop.xlane.xlu1 %537  ;;  %1436 = vpush %v320_v41 }
  0xda   :  { %v539_v30 = vrot.slane %v538_v58, 4  ;;  %1438 = vpush %v376_v35 }
  0xdb   :  { %v430_v47 = vmax.f32 %v428_v63, %v429_v7 }
  0xdc   :  { %v540_v1 = vmax.f32 %v538_v58, %v539_v30  ;;  %v849_v58 = vsel %vm848_vm11, %v2570_v29, %v793_v60 }
  0xdd   :  { %v431_v62 = vrot.slane %v430_v47, 1  ;;  %vm904_vm13 = vcmp.gt.f32.partialorder %v2675_v20, %v849_v58 }
  0xde   :  { %v541_v37 = vrot.slane %v540_v1, 2 }
  0xdf   :  { %v432_v21 = vmax.f32 %v430_v47, %v431_v62  ;;  %v270_v47 = vsel %vm269_vm12, %v1911_v45, %v214_v56  ;;  %v1632_v62 = vmov 0  }
  0xe0   :  { %v542_v34 = vmax.f32 %v540_v1, %v541_v37  ;;  %vm325_vm14 = vcmp.gt.f32.partialorder %v2110_v57, %v270_v47 }
  0xe1   :  { %1440 = vpush %v432_v21  ;;  %v482_v8 = vpop.xlane.xlu0 %481  ;;  %v215_v21 = vsel %vm213_vm10, 1, %v1632_v62 }
  0xe2   :  { %v483_v46 = vrot.slane %v482_v8, 4  ;;  %v543_v15 = vrot.slane %v542_v34, 1 }
  0xe4   :  { %v484_v39 = vmax.f32 %v482_v8, %v483_v46  ;;  %v544_v52 = vmax.f32 %v542_v34, %v543_v15  ;;  %v271_v46 = vsel %vm269_vm12, 2, %v215_v21  ;;  %v326_v34 = vsel %vm325_vm14, %v2110_v57, %v270_v47 }
  0xe5   :  { %v327_v15 = vsel %vm325_vm14, 3, %v271_v46  ;;  %vm381_vm0 = vcmp.gt.f32.partialorder %v2042_v11, %v326_v34  ;;  %v1633_v47 = vmov 4294967295   ;;  %v576_v21 = vstv %s2855_s16 }
  0xe6   :  { %v485_v33 = vrot.slane %v484_v39, 2  ;;  %v615_v46 = vstv %s2993_s30  ;;  %s1635_s30 = smov [#allocation9]  }
  0xe8   :  { %v486_v16 = vmax.f32 %v484_v39, %v485_v33  ;;  %v2813_v39 = vsel %vm904_vm13, %v2675_v20, %v849_v58 }
  0xe9   :  { %vm960_vm15 = vcmp.gt.f32.partialorder %v2760_v32, %v2813_v39 }
  0xea   :  { %v487_v24 = vrot.slane %v486_v16, 1 }
  0xec   :  { %v488_v22 = vmax.f32 %v486_v16, %v487_v24  ;;  %v794_v24 = vsel %vm792_vm9, 1, %v1632_v62 }
  0xee   :  { %v727_v2 = vpop.xlane.xlu2 %726  ;;  %1442 = vpush %v488_v22 }
  0xef   :  { %v728_v55 = vrot.slane %v727_v2, 4  ;;  %1444 = vpush %v544_v52 }
  0xf1   :  { %v729_v36 = vmax.f32 %v727_v2, %v728_v55  ;;  %v589_v55 = vstv %s2900_s20  ;;  %s3428_s20 = smov 4  }
  0xf2   :  { %v837_v14 = vpop.xlane.xlu1 %836  ;;  %s2800_s5 = spop %1430 }
  0xf3   :  { %v730_v59 = vrot.slane %v729_v36, 2  ;;  %v838_v13 = vrot.slane %v837_v14, 4  ;;  %v156_v2 = vstv %s2800_s5  ;;  %s3013_s5 = sld [smem:[#allocation7 + $0x203]] }
  0xf4   :  { %vm2858_vm2 = vcmp.eq.f32.partialorder %v1957_v27, %v156_v2 }
  0xf5   :  { %v731_v3 = vmax.f32 %v729_v36, %v730_v59  ;;  %v839_v44 = vmax.f32 %v837_v14, %v838_v13  ;;  %v383_v59 = vsel %vm381_vm0, 4, %v327_v15  ;;  %v850_v14 = vsel %vm848_vm11, 2, %v794_v24 }
  0xf6   :  { %v586_v15 = vstv %s2887_s19 }
  0xf7   :  { %v732_v40 = vrot.slane %v731_v3, 1  ;;  %v840_v50 = vrot.slane %v839_v44, 2 }
  0xf9   :  { %v733_v49 = vmax.f32 %v731_v3, %v732_v40  ;;  %v841_v48 = vmax.f32 %v839_v44, %v840_v50  ;;  %v382_v50 = vsel %vm381_vm0, %v2042_v11, %v326_v34 }
  0xfa   :  { %vm437_vm6 = vcmp.gt.f32.partialorder %v2267_v38, %v382_v50 }
  0xfb   :  { %1446 = vpush %v733_v49  ;;  %v842_v63 = vrot.slane %v841_v48, 1 }
  0xfc   :  { %v781_v53 = vpop.xlane.xlu0 %780 }
  0xfd   :  { %v782_v25 = vrot.slane %v781_v53, 4  ;;  %v843_v54 = vmax.f32 %v841_v48, %v842_v63  ;;  %v438_v48 = vsel %vm437_vm6, %v2267_v38, %v382_v50 }
  0xfe   :  { %vm493_vm8 = vcmp.gt.f32.partialorder %v2416_v10, %v438_v48 }
  0xff   :  { %v783_v31 = vmax.f32 %v781_v53, %v782_v25  ;;  %v2884_v53 = vsel %vm904_vm13, 3, %v850_v14 }
 0x100   :  { %v893_v0 = vpop.xlane.xlu2 %892  ;;  %v962_v50 = vsel %vm960_vm15, 4, %v2884_v53  ;;  %v599_v53 = vstv %s2939_s25 }
 0x101   :  { %v784_v17 = vrot.slane %v783_v31, 2  ;;  %v894_v18 = vrot.slane %v893_v0, 4 }
 0x103   :  { %v785_v19 = vmax.f32 %v783_v31, %v784_v17  ;;  %v895_v61 = vmax.f32 %v893_v0, %v894_v18  ;;  %v439_v31 = vsel %vm437_vm6, 5, %v383_v59  ;;  %v494_v0 = vsel %vm493_vm8, %v2416_v10, %v438_v48 }
 0x104   :  { %v495_v56 = vsel %vm493_vm8, 6, %v439_v31  ;;  %v560_v18 = vstv %s2818_s9  ;;  %vm549_vm12 = vcmp.gt.f32.partialorder %v2333_v6, %v494_v0  ;;  %v602_v17 = vstv %s2947_s26  ;;  %s1634_s9 = smov [#allocation10]  }
 0x105   :  { %v786_v41 = vrot.slane %v785_v19, 1  ;;  %v896_v7 = vrot.slane %v895_v61, 2 }
 0x107   :  { %v787_v35 = vmax.f32 %v785_v19, %v786_v41  ;;  %v897_v30 = vmax.f32 %v895_v61, %v896_v7  ;;  %v563_v19 = vstv %s2820_s10  ;;  %v566_v61 = vstv %s2828_s12  ;;  %s1283_s10 = sshll.u32 %s1634_s9, 4  ;;  %s1284_s10 = int_to_ptr.vmem [resolvable:$true] %s1283_s10 }
 0x108   :  { %s1433_s6 = spop %1432  ;;  %v2928_v7 = vsel %vm549_vm12, 7, %v495_v56 }
 0x109   :  { %1448 = vpush %v787_v35  ;;  %v898_v1 = vrot.slane %v897_v30, 1  ;;  %s2806_s7 = spop %1434  ;;  %v210_v22 = vstv %s1433_s6  ;;  %vm558_vm0 = vcmp.eq.s32.totalorder %v2928_v7, 0  ;;  %v573_v35 = vstv %s2842_s15  ;;  %s3028_s6 = sld [smem:[#allocation7 + $0x280]] }
 0x10a   :  { %1450 = vpush %v843_v54  ;;  %s2816_s8 = spop %1436  ;;  %vm2835_vm1 = vcmp.eq.f32.partialorder %v2178_v12, %v210_v22  ;;  %v266_v36 = vstv %s2806_s7  ;;  %v2853_v12 = vsel %vm960_vm15, %v2760_v32, %v2813_v39  ;;  %v569_v54 = vstv %s2832_s13  ;;  %s3032_s7 = sld [smem:[#allocation7 + $0x281]] }
 0x10b   :  { %v1005_v8 = vpop.xlane.xlu1 %1004  ;;  %v899_v37 = vmax.f32 %v897_v30, %v898_v1  ;;  %s2826_s11 = spop %1438  ;;  %v322_v44 = vstv %s2816_s8  ;;  %vm212_vm4 = vmor %vm2858_vm2, %vm2835_vm1  ;;  %vm2874_vm5 = vcmp.eq.f32.partialorder %v1911_v45, %v266_v36  ;;  %vm1016_vm9 = vcmp.gt.f32.partialorder %v2749_v23, %v2853_v12  ;;  %s3046_s8 = sld [smem:[#allocation7 + $0x282]] }
 0x10c   :  { %v1006_v33 = vrot.slane %v1005_v8, 4  ;;  %v378_v49 = vstv %s2826_s11  ;;  %vm2890_vm7 = vcmp.eq.f32.partialorder %v2110_v57, %v322_v44  ;;  %vm2911_vm10 = vmor %vm212_vm4, %vm2874_vm5  ;;  %v561_v62 = vsel %vm558_vm0, %v560_v18, 0.0  ;;  %s3051_s11 = sld [smem:[#allocation7 + $0x283]] }
 0x10d   :  { %1452 = vpush %v899_v37  ;;  %vm2895_vm3 = vcmp.eq.f32.partialorder %v2042_v11, %v378_v49  ;;  %vm324_vm13 = vmor %vm2911_vm10, %vm2890_vm7  ;;  %vm571_vm2 = vcmp.eq.s32.totalorder %v2928_v7, 1  ;;  %v579_v37 = vstv %s2867_s17  ;;  %v570_v34 = vsel %vm558_vm0, %v569_v54, 0.0  ;;  %s3425_s15 = sld [smem:[#allocation18_spill]] }
 0x10e   :  { %v1007_v16 = vmax.f32 %v1005_v8, %v1006_v33  ;;  %v564_v8 = vsel %vm558_vm0, %v563_v19, 0.0  ;;  %vm2964_vm4 = vmor %vm324_vm13, %vm2895_vm3  ;;  %v567_v33 = vsel %vm558_vm0, %v566_v61, 0.0  ;;  %v574_v22 = vsel %vm571_vm2, %v573_v35, %v561_v62 }
 0x10f   :  { %v577_v14 = vsel %vm571_vm2, %v576_v21, %v564_v8  ;;  %vm584_vm5 = vcmp.eq.s32.totalorder %v2928_v7, 2  ;;  %v592_v49 = vstv %s2925_s21  ;;  %vm597_vm15 = vcmp.eq.s32.totalorder %v2928_v7, 3  ;;  %s3429_s21 = smov 64  }
 0x110   :  { %v1008_v52 = vrot.slane %v1007_v16, 2  ;;  %v590_v48 = vsel %vm584_vm5, %v589_v55, %v577_v14  ;;  %v605_v11 = vstv %s2955_s27  ;;  %v608_v57 = vstv %s2978_s0  ;;  %s3430_s27 = sld [smem:[#allocation17_spill]] }
 0x111   :  { %vm636_vm13 = vcmp.eq.s32.totalorder %v2928_v7, 6 }
 0x112   :  { %s2840_s14 = spop %1440  ;;  %v1009_v3 = vmax.f32 %v1007_v16, %v1008_v52  ;;  %v949_v13 = vpop.xlane.xlu0 %948  ;;  %v582_v16 = vstv %s2880_s18 }
 0x113   :  { %v950_v9 = vrot.slane %v949_v13, 4  ;;  %v434_v42 = vstv %s2840_s14  ;;  %v583_v40 = vsel %vm571_vm2, %v582_v16, %v570_v34  ;;  %s3059_s14 = sld [smem:[#allocation7 + $0x300]]  ;;  %s1285_s16 = sshll.u32 %s3425_s15, 4  ;;  %s1286_s16 = int_to_ptr.hbm [resolvable:$true] %s1285_s16 }
 0x114   :  { %v1010_v25 = vrot.slane %v1009_v3, 1  ;;  %vm2916_vm11 = vcmp.eq.f32.partialorder %v2267_v38, %v434_v42  ;;  %v550_v38 = vsel %vm549_vm12, %v2333_v6, %v494_v0 }
 0x115   :  { %v951_v45 = vmax.f32 %v949_v13, %v950_v9  ;;  %vm552_vm14 = vcmp.lt.f32.partialorder %v550_v38, 0.3  ;;  %vm554_vm1 = vcmp.ge.f32.partialorder %v550_v38, 0.7  ;;  %vm436_vm6 = vmor %vm2964_vm4, %vm2916_vm11  ;;  %v580_v13 = vsel %vm571_vm2, %v579_v37, %v567_v33 }
 0x116   :  { %v1011_v41 = vmax.f32 %v1009_v3, %v1010_v25  ;;  %v553_v30 = vsel %vm552_vm14, 0, %v1633_v47  ;;  %v1017_v9 = vsel %vm1016_vm9, %v2749_v23, %v2853_v12  ;;  %v593_v31 = vsel %vm584_vm5, %v592_v49, %v580_v13  ;;  %s1272_s0 = sshll.u32 %s3430_s27, 4  ;;  %s1273_s0 = int_to_ptr.hbm [resolvable:$true] %s1272_s0 }
 0x117   :  { %v952_v63 = vrot.slane %v951_v45, 2  ;;  %v555_v2 = vsel %vm554_vm1, 1, %v553_v30  ;;  %vm610_vm11 = vcmp.eq.s32.totalorder %v2928_v7, 4  ;;  %vm1072_vm12 = vcmp.gt.f32.partialorder %v2772_v43, %v1017_v9 }
 0x118   :  { %v603_v30 = vsel %vm597_vm15, %v602_v17, %v590_v48  ;;  %v606_v62 = vsel %vm597_vm15, %v605_v11, %v593_v31  ;;  %v618_v33 = vstv %s3008_s2  ;;  %v3134_v48 = vmax.f32 %v1687_v4, 1.1920929e-07  ;;  %s1270_s2 = sshll.u32 %s1635_s30, 4  ;;  %s1271_s2 = int_to_ptr.vmem [resolvable:$true] %s1270_s2 }
 0x119   :  { %v953_v58 = vmax.f32 %v951_v45, %v952_v63  ;;  %v612_v63 = vstv %s2986_s1  ;;  %v619_v14 = vsel %vm610_vm11, %v618_v33, %v606_v62  ;;  %vm649_vm1 = vcmp.eq.s32.totalorder %v2928_v7, 7 }
 0x11a   :  { %1503 = vrcp.f32 %v3134_v48 }
 0x11b   :  { %v954_v1 = vrot.slane %v953_v58, 1 }
 0x11c   :  { %v1061_v24 = vpop.xlane.xlu2 %1060 }
 0x11d   :  { %v955_v52 = vmax.f32 %v953_v58, %v954_v1  ;;  %v1062_v36 = vrot.slane %v1061_v24, 4 }
 0x11f   :  { %s1443_s28 = spop %1442  ;;  %1454 = vpush %v955_v52  ;;  %v1063_v44 = vmax.f32 %v1061_v24, %v1062_v36  ;;  %v621_v24 = vstv %s3013_s5  ;;  %v625_v52 = vstv %s3028_s6  ;;  %v616_v36 = vsel %vm610_vm11, %v615_v46, %v603_v30 }
 0x120   :  { %v490_v59 = vstv %s1443_s28  ;;  %s1445_s29 = spop %1444  ;;  %1456 = vpush %v1011_v41  ;;  %v1018_v41 = vsel %vm1016_vm9, 5, %v962_v50  ;;  %s3065_s28 = sld [smem:[#allocation7 + $0x301]]  ;;  %vm623_vm9 = vcmp.eq.s32.totalorder %v2928_v7, 5  ;;  %v634_v50 = vstv %s3051_s11 }
 0x121   :  { %vm491_vm7 = vcmp.eq.f32.partialorder %v2416_v10, %v490_v59  ;;  %v546_v3 = vstv %s1445_s29  ;;  %v595_v10 = vstv %s2931_s22  ;;  %v1064_v27 = vrot.slane %v1063_v44, 2  ;;  %s3085_s29 = sld [smem:[#allocation7 + $0x302]] }
 0x122   :  { %vm492_vm3 = vmor %vm436_vm6, %vm491_vm7  ;;  %vm547_vm8 = vcmp.eq.f32.partialorder %v2333_v6, %v546_v3  ;;  %v587_v6 = vsel %vm584_vm5, %v586_v15, %v574_v22  ;;  %v1117_v42 = vpop.xlane.xlu0 %1116  ;;  %v596_v45 = vsel %vm584_vm5, %v595_v10, %v583_v40  ;;  %v628_v59 = vstv %s3032_s7 }
 0x123   :  { %vm548_vm10 = vmor %vm492_vm3, %vm547_vm8  ;;  %v1118_v25 = vrot.slane %v1117_v42, 4  ;;  %v1065_v60 = vmax.f32 %v1063_v44, %v1064_v27  ;;  %v600_v56 = vsel %vm597_vm15, %v599_v53, %v587_v6  ;;  %v609_v12 = vsel %vm597_vm15, %v608_v57, %v596_v45 }
 0x124   :  { %v556_v39 = vsel %vm548_vm10, 1, %v555_v2  ;;  %v613_v8 = vsel %vm610_vm11, %v612_v63, %v600_v56  ;;  %v1074_v2 = vsel %vm1072_vm12, 6, %v1018_v41  ;;  %v622_v3 = vsel %vm610_vm11, %v621_v24, %v609_v12 }
 0x125   :  { %557 = vst [vmem:[#allocation9] sm:$0xf] %v556_v39  ;;  %v1119_v0 = vmax.f32 %v1117_v42, %v1118_v25  ;;  %v1066_v38 = vrot.slane %v1065_v60, 1  ;;  %v626_v13 = vsel %vm623_vm9, %v625_v52, %v613_v8  ;;  %v631_v40 = vstv %s3046_s8 }
 0x126   :  { %v638_v6 = vstv %s3059_s14  ;;  %v629_v27 = vsel %vm623_vm9, %v628_v59, %v616_v36  ;;  %v641_v42 = vstv %s3065_s28  ;;  %v3123_v39 = vsel %vm1072_vm12, %v2772_v43, %v1017_v9 }
 0x127   :  { %v1120_v58 = vrot.slane %v1119_v0, 2  ;;  %v1067_v1 = vmax.f32 %v1065_v60, %v1066_v38  ;;  %v632_v25 = vsel %vm623_vm9, %v631_v40, %v619_v14  ;;  %vm1128_vm14 = vcmp.gt.f32.partialorder %v2776_v28, %v3123_v39 }
 0x128   :  { %v635_v9 = vsel %vm623_vm9, %v634_v50, %v622_v3  ;;  %v639_v31 = vsel %vm636_vm13, %v638_v6, %v626_v13  ;;  %v644_v45 = vstv %s3085_s29  ;;  %v3150_v60 = vsel %vm1128_vm14, 7, %v1074_v2  ;;  %v1504_v2 = vpop.eup %1503 }
 0x129   :  { %v1121_v34 = vmax.f32 %v1119_v0, %v1120_v58  ;;  %1458 = vpush %v1067_v1  ;;  %v642_v0 = vsel %vm636_vm13, %v641_v42, %v629_v27  ;;  %v647_v56 = vstv %s3090_s23  ;;  %vm1138_vm0 = vcmp.eq.s32.totalorder %v3150_v60, 0  ;;  %s3175_s23 = sld [smem:[#allocation7 + $0x383]] }
 0x12a   :  { %v3159_v41 = vmax.f32 %v1691_v5, 1.1920929e-07  ;;  %v1141_v38 = vsel %vm1138_vm0, %v560_v18, 0.0  ;;  %v1144_v58 = vsel %vm1138_vm0, %v563_v19, 0.0  ;;  %v1147_v30 = vsel %vm1138_vm0, %v566_v61, 0.0 }
 0x12b   :  { %v1122_v22 = vrot.slane %v1121_v34, 1  ;;  %v1150_v62 = vsel %vm1138_vm0, %v569_v54, 0.0  ;;  %vm1151_vm2 = vcmp.eq.s32.totalorder %v3150_v60, 1  ;;  %vm1164_vm4 = vcmp.eq.s32.totalorder %v3150_v60, 2 }
 0x12c   :  { %v1154_v18 = vsel %vm1151_vm2, %v573_v35, %v1141_v38  ;;  %v1157_v19 = vsel %vm1151_vm2, %v576_v21, %v1144_v58  ;;  %v1160_v61 = vsel %vm1151_vm2, %v579_v37, %v1147_v30  ;;  %v1163_v54 = vsel %vm1151_vm2, %v582_v16, %v1150_v62 }
 0x12d   :  { %v1123_v44 = vmax.f32 %v1121_v34, %v1122_v22  ;;  %v1167_v12 = vsel %vm1164_vm4, %v586_v15, %v1154_v18  ;;  %v1170_v1 = vsel %vm1164_vm4, %v589_v55, %v1157_v19  ;;  %v1173_v8 = vsel %vm1164_vm4, %v592_v49, %v1160_v61 }
 0x12e   :  { %v1176_v35 = vsel %vm1164_vm4, %v595_v10, %v1163_v54  ;;  %vm1177_vm5 = vcmp.eq.s32.totalorder %v3150_v60, 3  ;;  %vm1190_vm6 = vcmp.eq.s32.totalorder %v3150_v60, 4  ;;  %vm1203_vm7 = vcmp.eq.s32.totalorder %v3150_v60, 5 }
 0x12f   :  { %1460 = vpush %v1123_v44  ;;  %1505 = vrcp.f32 %v3159_v41  ;;  %v1180_v21 = vsel %vm1177_vm5, %v599_v53, %v1167_v12  ;;  %v1183_v37 = vsel %vm1177_vm5, %v602_v17, %v1170_v1  ;;  %v1186_v16 = vsel %vm1177_vm5, %v605_v11, %v1173_v8  ;;  %v1519_v12 = vld [vmem:[#allocation2 + $0x4] sm:$0xf] }
 0x130   :  { %v1189_v15 = vsel %vm1177_vm5, %v608_v57, %v1176_v35  ;;  %v651_v55 = vstv %s3129_s24  ;;  %v654_v49 = vstv %s3145_s3  ;;  %v1193_v10 = vsel %vm1190_vm6, %v612_v63, %v1180_v21  ;;  %s3301_s3 = spop %1446 }
 0x131   :  { %v1196_v34 = vsel %vm1190_vm6, %v615_v46, %v1183_v37  ;;  %v645_v53 = vsel %vm636_vm13, %v644_v45, %v632_v25  ;;  %v1199_v17 = vsel %vm1190_vm6, %v618_v33, %v1186_v16  ;;  %v1202_v11 = vsel %vm1190_vm6, %v621_v24, %v1189_v15 }
 0x132   :  { %v657_v57 = vstv %s3161_s4  ;;  %v1206_v22 = vsel %vm1203_vm7, %v625_v52, %v1193_v10  ;;  %v1209_v63 = vsel %vm1203_vm7, %v628_v59, %v1196_v34  ;;  %vm1216_vm3 = vcmp.eq.s32.totalorder %v3150_v60, 6  ;;  %v1520_v34 = vld [vmem:[#allocation2] sm:$0xf] }
 0x133   :  { %v648_v46 = vsel %vm636_vm13, %v647_v56, %v635_v9  ;;  %v652_v33 = vsel %vm649_vm1, %v651_v55, %v639_v31  ;;  %v655_v24 = vsel %vm649_vm1, %v654_v49, %v642_v0  ;;  %v660_v14 = vstv %s3175_s23 }
 0x134   :  { %v1212_v52 = vsel %vm1203_vm7, %v631_v40, %v1199_v17  ;;  %v1215_v59 = vsel %vm1203_vm7, %v634_v50, %v1202_v11  ;;  %v76_v3 = vmul.f32 %v1504_v2, %v3134_v48  ;;  %v658_v13 = vsel %vm649_vm1, %v657_v57, %v645_v53 }
 0x135   :  { %v1506_v36 = vpop.eup %1505  ;;  %v1219_v44 = vsel %vm1216_vm3, %v638_v6, %v1206_v22  ;;  %v1222_v27 = vsel %vm1216_vm3, %v641_v42, %v1209_v63  ;;  %vm1229_vm8 = vcmp.eq.s32.totalorder %v3150_v60, 7  ;;  %vm80_vm10 = vweird.f32 %v3134_v48 }
 0x136   :  { %v77_v40 = vsub.f32 1.0, %v76_v3  ;;  %vm81_vm15 = vweird.f32 %v1504_v2  ;;  %v84_v50 = vand.u32 2147483647, %v3134_v48  ;;  %v661_v25 = vsel %vm649_vm1, %v660_v14, %v648_v46 }
 0x137   :  { %v1225_v9 = vsel %vm1216_vm3, %v644_v45, %v1212_v52  ;;  %v1228_v6 = vsel %vm1216_vm3, %v647_v56, %v1215_v59  ;;  %v86_v42 = vand.u32 2147483648, %v3134_v48  ;;  %v1232_v31 = vsel %vm1229_vm8, %v651_v55, %v1219_v44  ;;  %vm3273_vm11 = vmor %vm80_vm10, %vm81_vm15 }
 0x138   :  { %v71_v0 = vmul.f32 0.5, %v1691_v5  ;;  %v78_v38 = vmul.f32 %v1504_v2, %v77_v40  ;;  %v91_v58 = vmul.f32 %v1506_v36, %v3159_v41  ;;  %v1235_v7 = vsel %vm1229_vm8, %v654_v49, %v1222_v27 }
 0x139   :  { %vm3277_vm12 = vcmp.eq.f32.partialorder %v84_v50, 8.507059e+37  ;;  %v87_v48 = vor.u32 1.1754944e-38, %v86_v42  ;;  %vm95_vm9 = vweird.f32 %v3159_v41  ;;  %vm96_vm13 = vweird.f32 %v1506_v36 }
 0x13a   :  { %v79_v56 = vadd.f32 %v1504_v2, %v78_v38  ;;  %v92_v62 = vsub.f32 1.0, %v91_v58  ;;  %v99_v5 = vand.u32 2147483647, %v3159_v41  ;;  %v1238_v18 = vsel %vm1229_vm8, %v657_v57, %v1225_v9  ;;  %vm3295_vm0 = vmor %vm95_vm9, %vm96_vm13  ;;  %s1449_s4 = spop %1448 }
 0x13b   :  { %v1241_v19 = vsel %vm1229_vm8, %v660_v14, %v1228_v6  ;;  %v69_v61 = vmul.f32 0.5, %v1687_v4  ;;  %v101_v54 = vand.u32 2147483648, %v3159_v41  ;;  %v72_v1 = vadd.f32 %v1519_v12, %v71_v0  ;;  %s1451_s24 = spop %1450 }
 0x13c   :  { %v83_v8 = vsel %vm3273_vm11, %v1504_v2, %v79_v56  ;;  %v93_v35 = vmul.f32 %v1506_v36, %v92_v62  ;;  %v662_v21 = vsub.f32 %v661_v25, %v655_v24  ;;  %vm100_vm1 = vcmp.eq.f32.partialorder %v99_v5, 8.507059e+37 }
 0x13d   :  { %v88_v37 = vsel %vm3277_vm12, %v87_v48, %v83_v8  ;;  %v102_v4 = vor.u32 1.1754944e-38, %v101_v54  ;;  %v663_v60 = vsub.f32 %v658_v13, %v652_v33  ;;  %v1242_v49 = vsub.f32 %v1241_v19, %v1235_v7 }
 0x13e   :  { %v94_v15 = vadd.f32 %v1506_v36, %v93_v35  ;;  %v666_v55 = vmul.f32 0.5, %v662_v21  ;;  %v1243_v10 = vsub.f32 %v1238_v18, %v1232_v31  ;;  %v70_v2 = vsub.f32 %v1520_v34, %v69_v61  ;;  %s1453_s17 = spop %1452 }
 0x13f   :  { %v664_v53 = vmul.f32 0.5, %v663_v60  ;;  %v675_v17 = vmul.f32 %v663_v60, %v88_v37  ;;  %v1246_v22 = vmul.f32 0.5, %v1242_v49  ;;  %v789_v6 = vstv %s1449_s4 }
 0x140   :  { %v98_v11 = vsel %vm3295_vm0, %v1506_v36, %v94_v15  ;;  %v667_v57 = vadd.f32 %v666_v55, %v655_v24  ;;  %v1244_v41 = vmul.f32 0.5, %v1243_v10  ;;  %v1256_v14 = vmul.f32 %v1243_v10, %v88_v37 }
 0x141   :  { %v103_v63 = vsel %vm100_vm1, %v102_v4, %v98_v11  ;;  %v665_v46 = vadd.f32 %v664_v53, %v652_v33  ;;  %1507 = vlog2.f32 %v675_v17  ;;  %v1247_v13 = vadd.f32 %v1246_v22, %v1235_v7 }
 0x142   :  { %v671_v52 = vsub.f32 %v667_v57, %v72_v1  ;;  %v680_v59 = vmul.f32 %v662_v21, %v103_v63  ;;  %v1245_v3 = vadd.f32 %v1244_v41, %v1232_v31  ;;  %1509 = vlog2.f32 %v1256_v14 }
 0x143   :  { %v668_v44 = vsub.f32 %v665_v46, %v70_v2  ;;  %v1261_v27 = vmul.f32 %v1242_v49, %v103_v63  ;;  %v1252_v36 = vsub.f32 %v1247_v13, %v72_v1  ;;  %v735_v0 = vstv %s3301_s3 }
 0x144   :  { %v672_v40 = vmul.f32 %v671_v52, %v103_v63  ;;  %1511 = vlog2.f32 %v680_v59  ;;  %v1248_v24 = vsub.f32 %v1245_v3, %v70_v2  ;;  %vm3308_vm2 = vcmp.eq.f32.partialorder %v2653_v26, %v789_v6 }
 0x145   :  { %v669_v50 = vmul.f32 %v668_v44, %v88_v37  ;;  %1513 = vlog2.f32 %v1261_v27  ;;  %v1253_v25 = vmul.f32 %v1252_v36, %v103_v63  ;;  %v845_v7 = vstv %s1451_s24 }
 0x146   :  { %674 = vst [vmem:[#allocation10 + $0x4] sm:$0xf] %v672_v40  ;;  %v1249_v33 = vmul.f32 %v1248_v24, %v88_v37  ;;  %vm736_vm4 = vcmp.eq.f32.partialorder %v2510_v51, %v735_v0  ;;  %vm846_vm6 = vcmp.eq.f32.partialorder %v2570_v29, %v845_v7  ;;  %v901_v26 = vstv %s1453_s17 }
 0x147   :  { %v1508_v9 = vpop.eup %1507  ;;  %670 = vst [vmem:[#allocation10] sm:$0xf] %v669_v50  ;;  %vm791_vm5 = vmor %vm736_vm4, %vm3308_vm2  ;;  %vm902_vm3 = vcmp.eq.f32.partialorder %v2675_v20, %v901_v26  ;;  %v1129_v51 = vsel %vm1128_vm14, %v2776_v28, %v3123_v39 }
 0x148   :  { %v677_v42 = vmul.f32 0.6931472, %v1508_v9  ;;  %1251 = vst [vmem:[#allocation10 + $0x10] sm:$0xf] %v1249_v33  ;;  %v1510_v31 = vpop.eup %1509  ;;  %vm847_vm7 = vmor %vm791_vm5, %vm846_vm6  ;;  %vm1131_vm15 = vcmp.lt.f32.partialorder %v1129_v51, 0.3 }
 0x149   :  { %1255 = vst [vmem:[#allocation10 + $0x14] sm:$0xf] %v1253_v25  ;;  %v1258_v30 = vmul.f32 0.6931472, %v1510_v31  ;;  %vm903_vm10 = vmor %vm847_vm7, %vm902_vm3  ;;  %v1132_v18 = vsel %vm1131_vm15, 0, %v1633_v47 }
 0x14a   :  { %v1512_v38 = vpop.eup %1511  ;;  %679 = vst [vmem:[#allocation10 + $0x8] sm:$0xf] %v677_v42  ;;  %vm1133_vm9 = vcmp.ge.f32.partialorder %v1129_v51, 0.7 }
 0x14b   :  { %v1514_v45 = vpop.eup %1513  ;;  %v682_v48 = vmul.f32 0.6931472, %v1512_v38  ;;  %1260 = vst [vmem:[#allocation10 + $0x18] sm:$0xf] %v1258_v30 }
 0x14c   :  { %v1263_v56 = vmul.f32 0.6931472, %v1514_v45 }
 0x14d   :  { %684 = vst [vmem:[#allocation10 + $0xc] sm:$0xf] %v682_v48 }
 0x14e   :  { %1265 = vst [vmem:[#allocation10 + $0x1c] sm:$0xf] %v1263_v56 }
 0x14f   :  { %1291 = dma.vmem_to_hbm [thread:$0]  %s1284_s10, 512, %s1286_s16, [#allocation11], %s3429_s21, %s3429_s21, %s3428_s20  }
 0x150   :  { %s1455_s18 = spop %1454 }
 0x151   :  { %v957_v62 = vstv %s1455_s18  ;;  %s1457_s19 = spop %1456 }
 0x152   :  { %vm958_vm8 = vcmp.eq.f32.partialorder %v2760_v32, %v957_v62  ;;  %v1013_v29 = vstv %s1457_s19  ;;  %v1134_v32 = vsel %vm1133_vm9, 1, %v1132_v18 }
 0x153   :  { %vm959_vm11 = vmor %vm903_vm10, %vm958_vm8  ;;  %vm1014_vm12 = vcmp.eq.f32.partialorder %v2749_v23, %v1013_v29 }
 0x154   :  { %vm1015_vm13 = vmor %vm959_vm11, %vm1014_vm12 }
 0x15a   :  { %s1459_s22 = spop %1458 }
 0x15b   :  { %v1069_v5 = vstv %s1459_s22 }
 0x15c   :  { %vm1070_vm0 = vcmp.eq.f32.partialorder %v2772_v43, %v1069_v5 }
 0x15d   :  { %vm1071_vm14 = vmor %vm1015_vm13, %vm1070_vm0 }
 0x160   :  { %s1461_s1 = spop %1460 }
 0x161   :  { %v1125_v20 = vstv %s1461_s1 }
 0x162   :  { %vm1126_vm1 = vcmp.eq.f32.partialorder %v2776_v28, %v1125_v20 }
 0x163   :  { %vm1127_vm2 = vmor %vm1071_vm14, %vm1126_vm1 }
 0x164   :  { %v1135_v23 = vsel %vm1127_vm2, 1, %v1134_v32 }
 0x165   :  { %1137 = vst [vmem:[#allocation9 + $0x4] sm:$0xf] %v1135_v23 }
 0x166   :  { %1278 = dma.vmem_to_hbm [thread:$0]  %s1271_s2, 128, %s1273_s0, [#allocation4], %s3429_s21, %s3429_s21, %s3428_s20  }
 0x167   :  { %1623 = dma.done.wait [#allocation4], 128  }
 0x168   :  { %1624 = vsyncadd [#allocation4], 4294967168 }
 0x169   :  { %1625 = dma.done.wait [#allocation11], 512  }
 0x16a   :  { %1626 = vsyncadd [#allocation11], 4294966784 }
 0x16b   :  { %1300 = vsyncpa [#allocation3], 1 }
 0x16c   :  { %1301 = vsyncpa [#allocation4], 1 }
 0x16d   :  { %1302 = vsyncpa [#allocation11], 1 }
 0x16e   :  { %1303 = vsyncpa [#allocation5], 1 }
 0x16f   :  { %1304 = vsyncpa [#allocation8], 1 }

</bundles_post_ra>
